<compile_context>
chip_gen: v5e
topology: v5e:2x2
jax: 0.10.0
libtpu: 0.0.40
codegen_flags: <defaults>
</compile_context>

<pallas_src>
import jax
import jax.numpy as jnp
from jax import lax
from jax.experimental import pallas as pl
from jax.experimental.pallas import tpu as pltpu

# ----- model dims (small, but consistent with the DAE constructor constraints:
#       attention_lstm in = emb + 2*cap + dec = 3*emb ; language_lstm in = dec + 2*cap = 2*emb)
V = 50          # vocab size (len(word_map))
E = 32          # emb_dim
D = 32          # decoder_dim
A = 16          # attention_dim
H = 16          # caption_features_dim (encoder hidden per direction)
B = 2           # batch
L = 8           # previous-caption max length
MAX_LEN = 18
START_IDX = 48  # word_map['<start>']
END_IDX = 49    # word_map['<end>']
NEG_INF = -10000000000.0


def _vmem():
    return pl.BlockSpec(memory_space=pltpu.MemorySpace.VMEM)


# ----------------------------------------------------------------------------
# Single fused kernel: encoder + greedy decoder.
# ----------------------------------------------------------------------------
def dae_kernel(src_ref, len_ref,
               enc_xw_ref, enc_whh_ref, wc_ref, bc_ref,
               a_w_fh_ref, a_b_ref,
               enc_post_w_ref, cfb_ref,
               att_in_w_ref, lang_cd_w_ref, l_b_ref,
               cfull_bd_ref, cfull_b_ref,
               fc_w_ref, fc_b_ref,
               seq_ref, lp_ref):

    def lstm_gates(pre, c, n):
        # fused gate layout [i, f, o, g]: one sigmoid over 3n lanes + one tanh
        ifo = jax.nn.sigmoid(pre[:, 0:3 * n])
        g = jnp.tanh(pre[:, 3 * n:4 * n])
        i = ifo[:, 0:n]
        f = ifo[:, n:2 * n]
        o = ifo[:, 2 * n:3 * n]
        c_new = f * c + i * g
        return o * jnp.tanh(c_new), c_new

    # ---------------- encoder (bidirectional LSTM, 8 steps unrolled) --------
    lens = len_ref[...]                    # (B, 1) int32
    src = src_ref[...]                     # (L*B, 1) int32 (row = t*B + b)
    onehot_src = (lax.broadcasted_iota(jnp.int32, (L * B, V), 1)
                  == src).astype(jnp.float32)                                  # (L*B, V)
    # embedding + input projection (+ biases) for all L timesteps in one matmul
    xproj = jnp.dot(onehot_src, enc_xw_ref[...],
                    preferred_element_type=jnp.float32)                        # (L*B, 8H)

    enc_whh = enc_whh_ref[...]             # (2H, 8H) block-diag [Whh_f, Whh_b] (gate-permuted)
    hf = jnp.zeros((B, H), jnp.float32)
    cf = jnp.zeros((B, H), jnp.float32)
    hb = jnp.zeros((B, H), jnp.float32)
    cb = jnp.zeros((B, H), jnp.float32)
    out_f = [None] * L
    out_b = [None] * L
    for i in range(L):
        t_f = i
        t_b = L - 1 - i
        hcat = jnp.concatenate([hf, hb], axis=1)                               # (B, 2H)
        pre = jnp.dot(hcat, enc_whh, preferred_element_type=jnp.float32)       # (B, 8H)
        pre_f = pre[:, 0:4 * H] + xproj[t_f * B:(t_f + 1) * B, 0:4 * H]
        pre_b = pre[:, 4 * H:8 * H] + xproj[t_b * B:(t_b + 1) * B, 4 * H:8 * H]
        hfn, cfn = lstm_gates(pre_f, cf, H)
        hbn, cbn = lstm_gates(pre_b, cb, H)
        vf = lens > t_f                                                        # packed-seq validity
        vb = lens > t_b
        hf = jnp.where(vf, hfn, hf)
        cf = jnp.where(vf, cfn, cf)
        hb = jnp.where(vb, hbn, hb)
        cb = jnp.where(vb, cbn, cb)
        out_f[t_f] = jnp.where(vf, hfn, 0.0)   # padded positions -> 0 (pad_packed_sequence)
        out_b[t_b] = jnp.where(vb, hbn, 0.0)

    # final_hidden = tanh(Linear(cat(h_fwd_final, h_bwd_final)))
    fh = jnp.tanh(jnp.dot(jnp.concatenate([hf, hb], axis=1), wc_ref[...],
                          preferred_element_type=jnp.float32) + bc_ref[...])   # (B, 2H)
    # constant part of the attention-LSTM pre-activation (final_hidden proj + bias)
    att_const = (jnp.dot(fh, a_w_fh_ref[...], preferred_element_type=jnp.float32)
                 + a_b_ref[...])                                               # (B, 4D)

    # lane-dense caption layout + ONE post-encoder matmul producing
    #   [ l_w_c projection per position | att1 per position | per-position sums ]
    enc_lanes = jnp.concatenate(
        [x for t in range(L) for x in (out_f[t], out_b[t])], axis=1)           # (B, L*2H)
    enc_post = jnp.dot(enc_lanes, enc_post_w_ref[...],
                       preferred_element_type=jnp.float32)                     # (B, L*4D+L*A+L)
    capproj_lanes = enc_post[:, 0:L * 4 * D]                                   # (B, L*4D)
    att1_lanes = enc_post[:, L * 4 * D:L * 4 * D + L * A] + cfb_ref[...]       # (B, L*A)
    mask_lanes = enc_post[:, L * 4 * D + L * A:] != 0.0                        # (B, L) prev_cap_mask

    # ---------------- greedy decode (rolled 18-step fori_loop) ----------------
    def step(t, carry):
        it, h1, c1, h2, c2, unfinished, stopped, seq_acc, lp_acc = carry

        # attention LSTM: one fused matmul over [h2 | h1 | onehot(it)]
        lane_v = lax.broadcasted_iota(jnp.int32, (B, V), 1)
        onehot_it = (lane_v == it).astype(jnp.float32)                         # (B, V)
        x_in = jnp.concatenate([h2, h1, onehot_it], axis=1)                    # (B, 2D+V)
        pre1 = (jnp.dot(x_in, att_in_w_ref[...], preferred_element_type=jnp.float32)
                + att_const)                                                   # (B, 4D)
        h1n, c1n = lstm_gates(pre1, c1, D)

        # language-LSTM pre-activation base AND tiled attention query, one matmul
        big = jnp.dot(jnp.concatenate([h1n, h2], axis=1), lang_cd_w_ref[...],
                      preferred_element_type=jnp.float32)                      # (B, 4D+L*A)
        pre2_base = big[:, 0:4 * D]
        att2_tiled = big[:, 4 * D:4 * D + L * A]

        # CaptionAttention: one matmul for all L scores + lane-dense masked softmax
        scores = (jnp.dot(jnp.tanh(att1_lanes + att2_tiled), cfull_bd_ref[...],
                          preferred_element_type=jnp.float32)
                  + cfull_b_ref[...])                                          # (B, L)
        scores = jnp.where(mask_lanes, scores, NEG_INF)
        m = jnp.max(scores, axis=1, keepdims=True)
        e = jnp.exp(scores - m)                                                # (B, L)
        inv = pl.reciprocal(jnp.sum(e, axis=1, keepdims=True), approx=True)    # (B, 1)
        # context enters the language LSTM only through its l_w_c projection ->
        # weighted sum of the precomputed per-position projections (tree sum)
        terms = [e[:, j:j + 1] * capproj_lanes[:, j * 4 * D:(j + 1) * 4 * D]
                 for j in range(L)]
        while len(terms) > 1:
            terms = [terms[k] + terms[k + 1] for k in range(0, len(terms), 2)]
        ctx = terms[0] * inv                                                   # (B, 4D)

        pre2 = pre2_base + ctx + l_b_ref[...]
        h2n, c2n = lstm_gates(pre2, c2, D)

        # fc + log_softmax (implicit) + greedy argmax (first maximal index)
        pt = (jnp.dot(h2n, fc_w_ref[...], preferred_element_type=jnp.float32)
              + fc_b_ref[...])                                                 # (B, V)
        mx = jnp.max(pt, axis=1, keepdims=True)
        lse = mx + jnp.log(jnp.sum(jnp.exp(pt - mx), axis=1, keepdims=True))
        maxv = mx - lse                                                        # max log-prob (B, 1)
        idx = jnp.min(jnp.where(pt == mx, lane_v.astype(jnp.float32), jnp.float32(V)),
                      axis=1, keepdims=True)
        it_new = idx.astype(jnp.int32)                                         # (B, 1)

        # it[it == <end>] = 0 ; unfinished bookkeeping ; it = it * unfinished
        it_new = jnp.where(it_new == END_IDX, 0, it_new)
        unfinished = unfinished * (it_new > 0).astype(jnp.int32)
        it_new = it_new * unfinished

        # PyTorch breaks *after* the step where everything finished; later steps
        # remain zero. it_new is already 0 once finished, so only lp needs the gate.
        col = lax.broadcasted_iota(jnp.int32, (B, MAX_LEN), 1) == t
        seq_acc = jnp.where(col, it_new, seq_acc)
        lp_acc = jnp.where(col, jnp.where(stopped == 1, 0.0, maxv), lp_acc)

        all_done = jnp.sum(unfinished.astype(jnp.float32)) == 0.0
        stopped = jnp.where(all_done, 1, stopped)

        return (it_new, h1n, c1n, h2n, c2n, unfinished, stopped, seq_acc, lp_acc)

    init = (jnp.full((B, 1), START_IDX, jnp.int32),
            jnp.zeros((B, D), jnp.float32), jnp.zeros((B, D), jnp.float32),
            jnp.zeros((B, D), jnp.float32), jnp.zeros((B, D), jnp.float32),
            jnp.ones((B, 1), jnp.int32),
            jnp.zeros((), jnp.int32),
            jnp.zeros((B, MAX_LEN), jnp.int32),
            jnp.zeros((B, MAX_LEN), jnp.float32))
    final = lax.fori_loop(0, MAX_LEN, step, init)

    # single lane-dense, batch-major stores
    seq_ref[...] = final[7]
    lp_ref[...] = final[8]


# ----------------------------------------------------------------------------
# Wrappers (parameter-only math: fusion, gate reordering, block-diagonals)
# ----------------------------------------------------------------------------
def _perm_gates(w):
    """Reorder the 4 gate column blocks from [i, f, g, o] to [i, f, o, g]."""
    n = w.shape[-1] // 4
    return jnp.concatenate([w[..., 0:2 * n], w[..., 3 * n:4 * n], w[..., 2 * n:3 * n]],
                           axis=-1)


def _fuse_params(p):
    relu_emb = jnp.maximum(p['emb'], 0.0)                                      # (V, E)

    # encoder input projection with biases folded (one-hot selects rows exactly)
    enc_xw_f = _perm_gates(jnp.dot(relu_emb, p['enc_wih_f']) + p['enc_b_f'])   # (V, 4H)
    enc_xw_b = _perm_gates(jnp.dot(relu_emb, p['enc_wih_b']) + p['enc_b_b'])
    enc_xw = jnp.concatenate([enc_xw_f, enc_xw_b], axis=1)                     # (V, 8H)
    zH = jnp.zeros((H, 4 * H), jnp.float32)
    enc_whh = jnp.concatenate(
        [jnp.concatenate([_perm_gates(p['enc_whh_f']), zH], axis=1),
         jnp.concatenate([zH, _perm_gates(p['enc_whh_b'])], axis=1)], axis=0)  # (2H, 8H)
    wc_cat = jnp.concatenate([p['wc_f'], p['wc_b']], axis=0)                   # (2H, 2H)

    a_w_fh = _perm_gates(p['a_w_fh'])                                          # (2H, 4D)
    a_b = _perm_gates(p['a_b'])                                                # (1, 4D)

    # attention-LSTM fused input weight for concat([h2, h1, onehot(it)])
    tok_att = jnp.dot(relu_emb, p['a_w_e'])                                    # (V, 4D)
    att_in_w = jnp.concatenate([_perm_gates(p['a_w_h2']),
                                _perm_gates(p['a_whh']),
                                _perm_gates(tok_att)], axis=0)                 # (2D+V, 4D)

    # language-LSTM + cap_decoder_att fused weight for concat([h1, h2])
    lang_gate = jnp.concatenate([_perm_gates(p['l_w_h1']),
                                 _perm_gates(p['l_whh'])], axis=0)             # (2D, 4D)
    cd_tiled = jnp.concatenate([jnp.tile(p['cd_w'], (1, L)),
                                jnp.zeros((D, L * A), jnp.float32)], axis=0)   # (2D, L*A)
    lang_cd_w = jnp.concatenate([lang_gate, cd_tiled], axis=1)                 # (2D, 4D+L*A)
    l_b = _perm_gates(p['l_b'])                                                # (1, 4D)

    # post-encoder block-diagonal weight over the L caption positions:
    #   [ lcap projection | cap_features_att | block-sum (for prev_cap_mask) ]
    lcap = _perm_gates(jnp.concatenate([p['l_w_cf'], p['l_w_cb']], axis=0))    # (2H, 4D)
    cfw_cat = jnp.concatenate([p['cf_wf'], p['cf_wb']], axis=0)                # (2H, A)
    eyeL = jnp.eye(L, dtype=jnp.float32)
    lcap_bd = (eyeL[:, None, :, None] * lcap[None, :, None, :]
               ).reshape(L * 2 * H, L * 4 * D)                                 # (L*2H, L*4D)
    cfw_bd = (eyeL[:, None, :, None] * cfw_cat[None, :, None, :]
              ).reshape(L * 2 * H, L * A)                                      # (L*2H, L*A)
    ones_bs = (eyeL[:, None, :] * jnp.ones((1, 2 * H, 1), jnp.float32)
               ).reshape(L * 2 * H, L)                                         # (L*2H, L)
    enc_post_w = jnp.concatenate([lcap_bd, cfw_bd, ones_bs], axis=1)           # (L*2H, L*4D+L*A+L)
    cfb = jnp.tile(p['cf_b'] + p['cd_b'], (1, L))                              # (1, L*A)
    cfull_bd = (p['cfull_w'].reshape(1, A, 1) * eyeL[:, None, :]
                ).reshape(L * A, L)                                            # (L*A, L)

    return dict(enc_xw=enc_xw, enc_whh=enc_whh, wc=wc_cat, bc=p['bc'],
                a_w_fh=a_w_fh, a_b=a_b,
                enc_post_w=enc_post_w, cfb=cfb,
                att_in_w=att_in_w, lang_cd_w=lang_cd_w, l_b=l_b,
                cfull_bd=cfull_bd, cfull_b=p['cfull_b'],
                fc_w=p['fc_w'], fc_b=p['fc_b'])


def dae_forward(encoded_previous_captions, previous_cap_length, params,
                sample_max=True, sample_rl=False):
    """encoded_previous_captions: (B, L) int32; previous_cap_length: (B, 1) int32.
    Returns (seq (B, MAX_LEN) int32, seqLogprobs (B, MAX_LEN) float32)."""
    assert sample_max and not sample_rl  # TODO(synk): multinomial path not impl.
    fp = _fuse_params(params)
    # time-major flat token ids: row = t*B + b
    src_flat = jnp.transpose(encoded_previous_captions.astype(jnp.int32)
                             ).reshape(L * B, 1)
    lens = previous_cap_length.astype(jnp.int32)

    ins = (src_flat, lens,
           fp['enc_xw'], fp['enc_whh'], fp['wc'], fp['bc'],
           fp['a_w_fh'], fp['a_b'],
           fp['enc_post_w'], fp['cfb'],
           fp['att_in_w'], fp['lang_cd_w'], fp['l_b'],
           fp['cfull_bd'], fp['cfull_b'],
           fp['fc_w'], fp['fc_b'])

    seq, seqlp = pl.pallas_call(
        dae_kernel,
        out_shape=(jax.ShapeDtypeStruct((B, MAX_LEN), jnp.int32),
                   jax.ShapeDtypeStruct((B, MAX_LEN), jnp.float32)),
        in_specs=[_vmem() for _ in ins],
        out_specs=(_vmem(), _vmem()),
    )(*ins)
    return seq, seqlp


# ----------------------------------------------------------------------------
# Deterministic parameter init + run
# ----------------------------------------------------------------------------
def init_params(key):
    shapes = {
        'emb': (V, E),
        'enc_wih_f': (E, 4 * H), 'enc_whh_f': (H, 4 * H), 'enc_b_f': (1, 4 * H),
        'enc_wih_b': (E, 4 * H), 'enc_whh_b': (H, 4 * H), 'enc_b_b': (1, 4 * H),
        'wc_f': (H, 2 * H), 'wc_b': (H, 2 * H), 'bc': (1, 2 * H),
        'a_w_e': (E, 4 * D), 'a_w_fh': (2 * H, 4 * D), 'a_w_h2': (D, 4 * D),
        'a_whh': (D, 4 * D), 'a_b': (1, 4 * D),
        'l_w_h1': (D, 4 * D), 'l_w_cf': (H, 4 * D), 'l_w_cb': (H, 4 * D),
        'l_whh': (D, 4 * D), 'l_b': (1, 4 * D),
        'cf_wf': (H, A), 'cf_wb': (H, A), 'cf_b': (1, A),
        'cd_w': (D, A), 'cd_b': (1, A),
        'cfull_w': (1, A), 'cfull_b': (1, 1),
        'fc_w': (D, V), 'fc_b': (1, V),
    }
    keys = jax.random.split(key, len(shapes))
    return {name: (jax.random.normal(k, shp, jnp.float32) * 0.1)
            for (name, shp), k in zip(shapes.items(), keys)}


if __name__ == "__main__":
    root = jax.random.PRNGKey(0)
    k_param, k_src = jax.random.split(root)
    params = init_params(k_param)

    # previous captions: (B, L) token ids in [1, V-3); lengths (B, 1)
    encoded_previous_captions = jax.random.randint(
        k_src, (B, L), minval=1, maxval=V - 2, dtype=jnp.int32)
    previous_cap_length = jnp.array([[L], [5]], dtype=jnp.int32)

    seq, seqLogprobs = dae_forward(encoded_previous_captions,
                                   previous_cap_length, params,
                                   sample_max=True, sample_rl=False)
    (seq, seqLogprobs) = jax.block_until_ready((seq, seqLogprobs))

    assert seq.shape == (B, MAX_LEN) and seq.dtype == jnp.int32
    assert seqLogprobs.shape == (B, MAX_LEN) and seqLogprobs.dtype == jnp.float32
    assert bool(jnp.all(jnp.isfinite(seqLogprobs)))
    assert bool(jnp.all((seq >= 0) & (seq < V)))
    print("KERNEL_OK")
</pallas_src>

<mosaic_0001>
module attributes {stable_mosaic.version = 11 : i64} {
  func.func @dae_kernel(%arg0: memref<16x1xi32, #tpu.memory_space<vmem>>, %arg1: memref<2x1xi32, #tpu.memory_space<vmem>>, %arg2: memref<50x128xf32, #tpu.memory_space<vmem>>, %arg3: memref<32x128xf32, #tpu.memory_space<vmem>>, %arg4: memref<32x32xf32, #tpu.memory_space<vmem>>, %arg5: memref<1x32xf32, #tpu.memory_space<vmem>>, %arg6: memref<32x128xf32, #tpu.memory_space<vmem>>, %arg7: memref<1x128xf32, #tpu.memory_space<vmem>>, %arg8: memref<256x1160xf32, #tpu.memory_space<vmem>>, %arg9: memref<1x128xf32, #tpu.memory_space<vmem>>, %arg10: memref<114x128xf32, #tpu.memory_space<vmem>>, %arg11: memref<64x256xf32, #tpu.memory_space<vmem>>, %arg12: memref<1x128xf32, #tpu.memory_space<vmem>>, %arg13: memref<128x8xf32, #tpu.memory_space<vmem>>, %arg14: memref<1x1xf32, #tpu.memory_space<vmem>>, %arg15: memref<32x50xf32, #tpu.memory_space<vmem>>, %arg16: memref<1x50xf32, #tpu.memory_space<vmem>>, %arg17: memref<2x18xi32, #tpu.memory_space<vmem>>, %arg18: memref<2x18xf32, #tpu.memory_space<vmem>>) attributes {dimension_semantics = [], scalar_prefetch = 0 : i64, scratch_operands = 0 : i64, tpu.core_type = #tpu.core_type<tc>} {
    %c0 = arith.constant 0 : index
    %c0_0 = arith.constant 0 : index
    %0 = vector.load %arg1[%c0, %c0_0] : memref<2x1xi32, #tpu.memory_space<vmem>>, vector<2x1xi32>
    %c0_1 = arith.constant 0 : index
    %c0_2 = arith.constant 0 : index
    %1 = vector.load %arg0[%c0_1, %c0_2] : memref<16x1xi32, #tpu.memory_space<vmem>>, vector<16x1xi32>
    %2 = tpu.iota {dimensions = array<i32: 1>} : vector<16x50xi32>
    %3 = vector.broadcast %1 : vector<16x1xi32> to vector<16x50xi32>
    %4 = arith.cmpi eq, %2, %3 : vector<16x50xi32>
    %5 = arith.extui %4 : vector<16x50xi1> to vector<16x50xi32>
    %6 = arith.sitofp %5 : vector<16x50xi32> to vector<16x50xf32>
    %c0_3 = arith.constant 0 : index
    %c0_4 = arith.constant 0 : index
    %7 = vector.load %arg2[%c0_3, %c0_4] : memref<50x128xf32, #tpu.memory_space<vmem>>, vector<50x128xf32>
    %cst = arith.constant dense<0.000000e+00> : vector<16x128xf32>
    %8 = tpu.matmul %6, %7, %cst {dimension_numbers = #tpu.dot_dimension_numbers<[1], [0], [0], [1], [0, 0, 1, 1], [], []>} : vector<16x50xf32>, vector<50x128xf32>, vector<16x128xf32> -> vector<16x128xf32>
    %c0_5 = arith.constant 0 : index
    %c0_6 = arith.constant 0 : index
    %9 = vector.load %arg3[%c0_5, %c0_6] : memref<32x128xf32, #tpu.memory_space<vmem>>, vector<32x128xf32>
    %cst_7 = arith.constant 0.000000e+00 : f32
    %10 = vector.broadcast %cst_7 : f32 to vector<2x16xf32>
    %cst_8 = arith.constant 0.000000e+00 : f32
    %11 = vector.broadcast %cst_8 : f32 to vector<2x16xf32>
    %cst_9 = arith.constant 0.000000e+00 : f32
    %12 = vector.broadcast %cst_9 : f32 to vector<2x16xf32>
    %cst_10 = arith.constant 0.000000e+00 : f32
    %13 = vector.broadcast %cst_10 : f32 to vector<2x16xf32>
    %14 = tpu.concatenate %10, %12 in 1 : vector<2x16xf32>, vector<2x16xf32> -> vector<2x32xf32>
    %cst_11 = arith.constant dense<0.000000e+00> : vector<2x128xf32>
    %15 = tpu.matmul %14, %9, %cst_11 {dimension_numbers = #tpu.dot_dimension_numbers<[1], [0], [0], [1], [0, 0, 1, 1], [], []>} : vector<2x32xf32>, vector<32x128xf32>, vector<2x128xf32> -> vector<2x128xf32>
    %16 = vector.extract_strided_slice %15 {offsets = [0, 0], sizes = [2, 64], strides = [1, 1]} : vector<2x128xf32> to vector<2x64xf32>
    %17 = vector.extract_strided_slice %8 {offsets = [0, 0], sizes = [2, 64], strides = [1, 1]} : vector<16x128xf32> to vector<2x64xf32>
    %18 = arith.addf %16, %17 : vector<2x64xf32>
    %19 = vector.extract_strided_slice %15 {offsets = [0, 64], sizes = [2, 64], strides = [1, 1]} : vector<2x128xf32> to vector<2x64xf32>
    %20 = vector.extract_strided_slice %8 {offsets = [14, 64], sizes = [2, 64], strides = [1, 1]} : vector<16x128xf32> to vector<2x64xf32>
    %21 = arith.addf %19, %20 : vector<2x64xf32>
    %22 = vector.extract_strided_slice %18 {offsets = [0, 0], sizes = [2, 48], strides = [1, 1]} : vector<2x64xf32> to vector<2x48xf32>
    %23 = arith.negf %22 : vector<2x48xf32>
    %24 = math.exp %23 : vector<2x48xf32>
    %cst_12 = arith.constant 1.000000e+00 : f32
    %25 = vector.broadcast %cst_12 : f32 to vector<2x48xf32>
    %26 = arith.addf %25, %24 : vector<2x48xf32>
    %27 = arith.divf %25, %26 : vector<2x48xf32>
    %28 = vector.extract_strided_slice %18 {offsets = [0, 48], sizes = [2, 16], strides = [1, 1]} : vector<2x64xf32> to vector<2x16xf32>
    %29 = math.tanh %28 : vector<2x16xf32>
    %30 = vector.extract_strided_slice %27 {offsets = [0, 0], sizes = [2, 16], strides = [1, 1]} : vector<2x48xf32> to vector<2x16xf32>
    %31 = vector.extract_strided_slice %27 {offsets = [0, 16], sizes = [2, 16], strides = [1, 1]} : vector<2x48xf32> to vector<2x16xf32>
    %32 = vector.extract_strided_slice %27 {offsets = [0, 32], sizes = [2, 16], strides = [1, 1]} : vector<2x48xf32> to vector<2x16xf32>
    %33 = arith.mulf %31, %11 : vector<2x16xf32>
    %34 = arith.mulf %30, %29 : vector<2x16xf32>
    %35 = arith.addf %33, %34 : vector<2x16xf32>
    %36 = math.tanh %35 : vector<2x16xf32>
    %37 = arith.mulf %32, %36 : vector<2x16xf32>
    %38 = vector.extract_strided_slice %21 {offsets = [0, 0], sizes = [2, 48], strides = [1, 1]} : vector<2x64xf32> to vector<2x48xf32>
    %39 = arith.negf %38 : vector<2x48xf32>
    %40 = math.exp %39 : vector<2x48xf32>
    %cst_13 = arith.constant 1.000000e+00 : f32
    %41 = vector.broadcast %cst_13 : f32 to vector<2x48xf32>
    %42 = arith.addf %41, %40 : vector<2x48xf32>
    %43 = arith.divf %41, %42 : vector<2x48xf32>
    %44 = vector.extract_strided_slice %21 {offsets = [0, 48], sizes = [2, 16], strides = [1, 1]} : vector<2x64xf32> to vector<2x16xf32>
    %45 = math.tanh %44 : vector<2x16xf32>
    %46 = vector.extract_strided_slice %43 {offsets = [0, 0], sizes = [2, 16], strides = [1, 1]} : vector<2x48xf32> to vector<2x16xf32>
    %47 = vector.extract_strided_slice %43 {offsets = [0, 16], sizes = [2, 16], strides = [1, 1]} : vector<2x48xf32> to vector<2x16xf32>
    %48 = vector.extract_strided_slice %43 {offsets = [0, 32], sizes = [2, 16], strides = [1, 1]} : vector<2x48xf32> to vector<2x16xf32>
    %49 = arith.mulf %47, %13 : vector<2x16xf32>
    %50 = arith.mulf %46, %45 : vector<2x16xf32>
    %51 = arith.addf %49, %50 : vector<2x16xf32>
    %52 = math.tanh %51 : vector<2x16xf32>
    %53 = arith.mulf %48, %52 : vector<2x16xf32>
    %c0_i32 = arith.constant 0 : i32
    %54 = vector.broadcast %c0_i32 : i32 to vector<2x1xi32>
    %55 = arith.cmpi sgt, %0, %54 : vector<2x1xi32>
    %c7_i32 = arith.constant 7 : i32
    %56 = vector.broadcast %c7_i32 : i32 to vector<2x1xi32>
    %57 = arith.cmpi sgt, %0, %56 : vector<2x1xi32>
    %58 = vector.shape_cast %55 : vector<2x1xi1> to vector<2x1xi1>
    %59 = vector.broadcast %58 : vector<2x1xi1> to vector<2x16xi1>
    %60 = arith.select %59, %37, %10 : vector<2x16xi1>, vector<2x16xf32>
    %61 = vector.shape_cast %55 : vector<2x1xi1> to vector<2x1xi1>
    %62 = vector.broadcast %61 : vector<2x1xi1> to vector<2x16xi1>
    %63 = arith.select %62, %35, %11 : vector<2x16xi1>, vector<2x16xf32>
    %64 = vector.shape_cast %57 : vector<2x1xi1> to vector<2x1xi1>
    %65 = vector.broadcast %64 : vector<2x1xi1> to vector<2x16xi1>
    %66 = arith.select %65, %53, %12 : vector<2x16xi1>, vector<2x16xf32>
    %67 = vector.shape_cast %57 : vector<2x1xi1> to vector<2x1xi1>
    %68 = vector.broadcast %67 : vector<2x1xi1> to vector<2x16xi1>
    %69 = arith.select %68, %51, %13 : vector<2x16xi1>, vector<2x16xf32>
    %cst_14 = arith.constant 0.000000e+00 : f32
    %70 = vector.shape_cast %55 : vector<2x1xi1> to vector<2x1xi1>
    %71 = vector.broadcast %70 : vector<2x1xi1> to vector<2x16xi1>
    %72 = vector.broadcast %cst_14 : f32 to vector<2x16xf32>
    %73 = arith.select %71, %37, %72 : vector<2x16xi1>, vector<2x16xf32>
    %cst_15 = arith.constant 0.000000e+00 : f32
    %74 = vector.shape_cast %57 : vector<2x1xi1> to vector<2x1xi1>
    %75 = vector.broadcast %74 : vector<2x1xi1> to vector<2x16xi1>
    %76 = vector.broadcast %cst_15 : f32 to vector<2x16xf32>
    %77 = arith.select %75, %53, %76 : vector<2x16xi1>, vector<2x16xf32>
    %78 = tpu.concatenate %60, %66 in 1 : vector<2x16xf32>, vector<2x16xf32> -> vector<2x32xf32>
    %cst_16 = arith.constant dense<0.000000e+00> : vector<2x128xf32>
    %79 = tpu.matmul %78, %9, %cst_16 {dimension_numbers = #tpu.dot_dimension_numbers<[1], [0], [0], [1], [0, 0, 1, 1], [], []>} : vector<2x32xf32>, vector<32x128xf32>, vector<2x128xf32> -> vector<2x128xf32>
    %80 = vector.extract_strided_slice %79 {offsets = [0, 0], sizes = [2, 64], strides = [1, 1]} : vector<2x128xf32> to vector<2x64xf32>
    %81 = vector.extract_strided_slice %8 {offsets = [2, 0], sizes = [2, 64], strides = [1, 1]} : vector<16x128xf32> to vector<2x64xf32>
    %82 = arith.addf %80, %81 : vector<2x64xf32>
    %83 = vector.extract_strided_slice %79 {offsets = [0, 64], sizes = [2, 64], strides = [1, 1]} : vector<2x128xf32> to vector<2x64xf32>
    %84 = vector.extract_strided_slice %8 {offsets = [12, 64], sizes = [2, 64], strides = [1, 1]} : vector<16x128xf32> to vector<2x64xf32>
    %85 = arith.addf %83, %84 : vector<2x64xf32>
    %86 = vector.extract_strided_slice %82 {offsets = [0, 0], sizes = [2, 48], strides = [1, 1]} : vector<2x64xf32> to vector<2x48xf32>
    %87 = arith.negf %86 : vector<2x48xf32>
    %88 = math.exp %87 : vector<2x48xf32>
    %cst_17 = arith.constant 1.000000e+00 : f32
    %89 = vector.broadcast %cst_17 : f32 to vector<2x48xf32>
    %90 = arith.addf %89, %88 : vector<2x48xf32>
    %91 = arith.divf %89, %90 : vector<2x48xf32>
    %92 = vector.extract_strided_slice %82 {offsets = [0, 48], sizes = [2, 16], strides = [1, 1]} : vector<2x64xf32> to vector<2x16xf32>
    %93 = math.tanh %92 : vector<2x16xf32>
    %94 = vector.extract_strided_slice %91 {offsets = [0, 0], sizes = [2, 16], strides = [1, 1]} : vector<2x48xf32> to vector<2x16xf32>
    %95 = vector.extract_strided_slice %91 {offsets = [0, 16], sizes = [2, 16], strides = [1, 1]} : vector<2x48xf32> to vector<2x16xf32>
    %96 = vector.extract_strided_slice %91 {offsets = [0, 32], sizes = [2, 16], strides = [1, 1]} : vector<2x48xf32> to vector<2x16xf32>
    %97 = arith.mulf %95, %63 : vector<2x16xf32>
    %98 = arith.mulf %94, %93 : vector<2x16xf32>
    %99 = arith.addf %97, %98 : vector<2x16xf32>
    %100 = math.tanh %99 : vector<2x16xf32>
    %101 = arith.mulf %96, %100 : vector<2x16xf32>
    %102 = vector.extract_strided_slice %85 {offsets = [0, 0], sizes = [2, 48], strides = [1, 1]} : vector<2x64xf32> to vector<2x48xf32>
    %103 = arith.negf %102 : vector<2x48xf32>
    %104 = math.exp %103 : vector<2x48xf32>
    %cst_18 = arith.constant 1.000000e+00 : f32
    %105 = vector.broadcast %cst_18 : f32 to vector<2x48xf32>
    %106 = arith.addf %105, %104 : vector<2x48xf32>
    %107 = arith.divf %105, %106 : vector<2x48xf32>
    %108 = vector.extract_strided_slice %85 {offsets = [0, 48], sizes = [2, 16], strides = [1, 1]} : vector<2x64xf32> to vector<2x16xf32>
    %109 = math.tanh %108 : vector<2x16xf32>
    %110 = vector.extract_strided_slice %107 {offsets = [0, 0], sizes = [2, 16], strides = [1, 1]} : vector<2x48xf32> to vector<2x16xf32>
    %111 = vector.extract_strided_slice %107 {offsets = [0, 16], sizes = [2, 16], strides = [1, 1]} : vector<2x48xf32> to vector<2x16xf32>
    %112 = vector.extract_strided_slice %107 {offsets = [0, 32], sizes = [2, 16], strides = [1, 1]} : vector<2x48xf32> to vector<2x16xf32>
    %113 = arith.mulf %111, %69 : vector<2x16xf32>
    %114 = arith.mulf %110, %109 : vector<2x16xf32>
    %115 = arith.addf %113, %114 : vector<2x16xf32>
    %116 = math.tanh %115 : vector<2x16xf32>
    %117 = arith.mulf %112, %116 : vector<2x16xf32>
    %c1_i32 = arith.constant 1 : i32
    %118 = vector.broadcast %c1_i32 : i32 to vector<2x1xi32>
    %119 = arith.cmpi sgt, %0, %118 : vector<2x1xi32>
    %c6_i32 = arith.constant 6 : i32
    %120 = vector.broadcast %c6_i32 : i32 to vector<2x1xi32>
    %121 = arith.cmpi sgt, %0, %120 : vector<2x1xi32>
    %122 = vector.shape_cast %119 : vector<2x1xi1> to vector<2x1xi1>
    %123 = vector.broadcast %122 : vector<2x1xi1> to vector<2x16xi1>
    %124 = arith.select %123, %101, %60 : vector<2x16xi1>, vector<2x16xf32>
    %125 = vector.shape_cast %119 : vector<2x1xi1> to vector<2x1xi1>
    %126 = vector.broadcast %125 : vector<2x1xi1> to vector<2x16xi1>
    %127 = arith.select %126, %99, %63 : vector<2x16xi1>, vector<2x16xf32>
    %128 = vector.shape_cast %121 : vector<2x1xi1> to vector<2x1xi1>
    %129 = vector.broadcast %128 : vector<2x1xi1> to vector<2x16xi1>
    %130 = arith.select %129, %117, %66 : vector<2x16xi1>, vector<2x16xf32>
    %131 = vector.shape_cast %121 : vector<2x1xi1> to vector<2x1xi1>
    %132 = vector.broadcast %131 : vector<2x1xi1> to vector<2x16xi1>
    %133 = arith.select %132, %115, %69 : vector<2x16xi1>, vector<2x16xf32>
    %cst_19 = arith.constant 0.000000e+00 : f32
    %134 = vector.shape_cast %119 : vector<2x1xi1> to vector<2x1xi1>
    %135 = vector.broadcast %134 : vector<2x1xi1> to vector<2x16xi1>
    %136 = vector.broadcast %cst_19 : f32 to vector<2x16xf32>
    %137 = arith.select %135, %101, %136 : vector<2x16xi1>, vector<2x16xf32>
    %cst_20 = arith.constant 0.000000e+00 : f32
    %138 = vector.shape_cast %121 : vector<2x1xi1> to vector<2x1xi1>
    %139 = vector.broadcast %138 : vector<2x1xi1> to vector<2x16xi1>
    %140 = vector.broadcast %cst_20 : f32 to vector<2x16xf32>
    %141 = arith.select %139, %117, %140 : vector<2x16xi1>, vector<2x16xf32>
    %142 = tpu.concatenate %124, %130 in 1 : vector<2x16xf32>, vector<2x16xf32> -> vector<2x32xf32>
    %cst_21 = arith.constant dense<0.000000e+00> : vector<2x128xf32>
    %143 = tpu.matmul %142, %9, %cst_21 {dimension_numbers = #tpu.dot_dimension_numbers<[1], [0], [0], [1], [0, 0, 1, 1], [], []>} : vector<2x32xf32>, vector<32x128xf32>, vector<2x128xf32> -> vector<2x128xf32>
    %144 = vector.extract_strided_slice %143 {offsets = [0, 0], sizes = [2, 64], strides = [1, 1]} : vector<2x128xf32> to vector<2x64xf32>
    %145 = vector.extract_strided_slice %8 {offsets = [4, 0], sizes = [2, 64], strides = [1, 1]} : vector<16x128xf32> to vector<2x64xf32>
    %146 = arith.addf %144, %145 : vector<2x64xf32>
    %147 = vector.extract_strided_slice %143 {offsets = [0, 64], sizes = [2, 64], strides = [1, 1]} : vector<2x128xf32> to vector<2x64xf32>
    %148 = vector.extract_strided_slice %8 {offsets = [10, 64], sizes = [2, 64], strides = [1, 1]} : vector<16x128xf32> to vector<2x64xf32>
    %149 = arith.addf %147, %148 : vector<2x64xf32>
    %150 = vector.extract_strided_slice %146 {offsets = [0, 0], sizes = [2, 48], strides = [1, 1]} : vector<2x64xf32> to vector<2x48xf32>
    %151 = arith.negf %150 : vector<2x48xf32>
    %152 = math.exp %151 : vector<2x48xf32>
    %cst_22 = arith.constant 1.000000e+00 : f32
    %153 = vector.broadcast %cst_22 : f32 to vector<2x48xf32>
    %154 = arith.addf %153, %152 : vector<2x48xf32>
    %155 = arith.divf %153, %154 : vector<2x48xf32>
    %156 = vector.extract_strided_slice %146 {offsets = [0, 48], sizes = [2, 16], strides = [1, 1]} : vector<2x64xf32> to vector<2x16xf32>
    %157 = math.tanh %156 : vector<2x16xf32>
    %158 = vector.extract_strided_slice %155 {offsets = [0, 0], sizes = [2, 16], strides = [1, 1]} : vector<2x48xf32> to vector<2x16xf32>
    %159 = vector.extract_strided_slice %155 {offsets = [0, 16], sizes = [2, 16], strides = [1, 1]} : vector<2x48xf32> to vector<2x16xf32>
    %160 = vector.extract_strided_slice %155 {offsets = [0, 32], sizes = [2, 16], strides = [1, 1]} : vector<2x48xf32> to vector<2x16xf32>
    %161 = arith.mulf %159, %127 : vector<2x16xf32>
    %162 = arith.mulf %158, %157 : vector<2x16xf32>
    %163 = arith.addf %161, %162 : vector<2x16xf32>
    %164 = math.tanh %163 : vector<2x16xf32>
    %165 = arith.mulf %160, %164 : vector<2x16xf32>
    %166 = vector.extract_strided_slice %149 {offsets = [0, 0], sizes = [2, 48], strides = [1, 1]} : vector<2x64xf32> to vector<2x48xf32>
    %167 = arith.negf %166 : vector<2x48xf32>
    %168 = math.exp %167 : vector<2x48xf32>
    %cst_23 = arith.constant 1.000000e+00 : f32
    %169 = vector.broadcast %cst_23 : f32 to vector<2x48xf32>
    %170 = arith.addf %169, %168 : vector<2x48xf32>
    %171 = arith.divf %169, %170 : vector<2x48xf32>
    %172 = vector.extract_strided_slice %149 {offsets = [0, 48], sizes = [2, 16], strides = [1, 1]} : vector<2x64xf32> to vector<2x16xf32>
    %173 = math.tanh %172 : vector<2x16xf32>
    %174 = vector.extract_strided_slice %171 {offsets = [0, 0], sizes = [2, 16], strides = [1, 1]} : vector<2x48xf32> to vector<2x16xf32>
    %175 = vector.extract_strided_slice %171 {offsets = [0, 16], sizes = [2, 16], strides = [1, 1]} : vector<2x48xf32> to vector<2x16xf32>
    %176 = vector.extract_strided_slice %171 {offsets = [0, 32], sizes = [2, 16], strides = [1, 1]} : vector<2x48xf32> to vector<2x16xf32>
    %177 = arith.mulf %175, %133 : vector<2x16xf32>
    %178 = arith.mulf %174, %173 : vector<2x16xf32>
    %179 = arith.addf %177, %178 : vector<2x16xf32>
    %180 = math.tanh %179 : vector<2x16xf32>
    %181 = arith.mulf %176, %180 : vector<2x16xf32>
    %c2_i32 = arith.constant 2 : i32
    %182 = vector.broadcast %c2_i32 : i32 to vector<2x1xi32>
    %183 = arith.cmpi sgt, %0, %182 : vector<2x1xi32>
    %c5_i32 = arith.constant 5 : i32
    %184 = vector.broadcast %c5_i32 : i32 to vector<2x1xi32>
    %185 = arith.cmpi sgt, %0, %184 : vector<2x1xi32>
    %186 = vector.shape_cast %183 : vector<2x1xi1> to vector<2x1xi1>
    %187 = vector.broadcast %186 : vector<2x1xi1> to vector<2x16xi1>
    %188 = arith.select %187, %165, %124 : vector<2x16xi1>, vector<2x16xf32>
    %189 = vector.shape_cast %183 : vector<2x1xi1> to vector<2x1xi1>
    %190 = vector.broadcast %189 : vector<2x1xi1> to vector<2x16xi1>
    %191 = arith.select %190, %163, %127 : vector<2x16xi1>, vector<2x16xf32>
    %192 = vector.shape_cast %185 : vector<2x1xi1> to vector<2x1xi1>
    %193 = vector.broadcast %192 : vector<2x1xi1> to vector<2x16xi1>
    %194 = arith.select %193, %181, %130 : vector<2x16xi1>, vector<2x16xf32>
    %195 = vector.shape_cast %185 : vector<2x1xi1> to vector<2x1xi1>
    %196 = vector.broadcast %195 : vector<2x1xi1> to vector<2x16xi1>
    %197 = arith.select %196, %179, %133 : vector<2x16xi1>, vector<2x16xf32>
    %cst_24 = arith.constant 0.000000e+00 : f32
    %198 = vector.shape_cast %183 : vector<2x1xi1> to vector<2x1xi1>
    %199 = vector.broadcast %198 : vector<2x1xi1> to vector<2x16xi1>
    %200 = vector.broadcast %cst_24 : f32 to vector<2x16xf32>
    %201 = arith.select %199, %165, %200 : vector<2x16xi1>, vector<2x16xf32>
    %cst_25 = arith.constant 0.000000e+00 : f32
    %202 = vector.shape_cast %185 : vector<2x1xi1> to vector<2x1xi1>
    %203 = vector.broadcast %202 : vector<2x1xi1> to vector<2x16xi1>
    %204 = vector.broadcast %cst_25 : f32 to vector<2x16xf32>
    %205 = arith.select %203, %181, %204 : vector<2x16xi1>, vector<2x16xf32>
    %206 = tpu.concatenate %188, %194 in 1 : vector<2x16xf32>, vector<2x16xf32> -> vector<2x32xf32>
    %cst_26 = arith.constant dense<0.000000e+00> : vector<2x128xf32>
    %207 = tpu.matmul %206, %9, %cst_26 {dimension_numbers = #tpu.dot_dimension_numbers<[1], [0], [0], [1], [0, 0, 1, 1], [], []>} : vector<2x32xf32>, vector<32x128xf32>, vector<2x128xf32> -> vector<2x128xf32>
    %208 = vector.extract_strided_slice %207 {offsets = [0, 0], sizes = [2, 64], strides = [1, 1]} : vector<2x128xf32> to vector<2x64xf32>
    %209 = vector.extract_strided_slice %8 {offsets = [6, 0], sizes = [2, 64], strides = [1, 1]} : vector<16x128xf32> to vector<2x64xf32>
    %210 = arith.addf %208, %209 : vector<2x64xf32>
    %211 = vector.extract_strided_slice %207 {offsets = [0, 64], sizes = [2, 64], strides = [1, 1]} : vector<2x128xf32> to vector<2x64xf32>
    %212 = vector.extract_strided_slice %8 {offsets = [8, 64], sizes = [2, 64], strides = [1, 1]} : vector<16x128xf32> to vector<2x64xf32>
    %213 = arith.addf %211, %212 : vector<2x64xf32>
    %214 = vector.extract_strided_slice %210 {offsets = [0, 0], sizes = [2, 48], strides = [1, 1]} : vector<2x64xf32> to vector<2x48xf32>
    %215 = arith.negf %214 : vector<2x48xf32>
    %216 = math.exp %215 : vector<2x48xf32>
    %cst_27 = arith.constant 1.000000e+00 : f32
    %217 = vector.broadcast %cst_27 : f32 to vector<2x48xf32>
    %218 = arith.addf %217, %216 : vector<2x48xf32>
    %219 = arith.divf %217, %218 : vector<2x48xf32>
    %220 = vector.extract_strided_slice %210 {offsets = [0, 48], sizes = [2, 16], strides = [1, 1]} : vector<2x64xf32> to vector<2x16xf32>
    %221 = math.tanh %220 : vector<2x16xf32>
    %222 = vector.extract_strided_slice %219 {offsets = [0, 0], sizes = [2, 16], strides = [1, 1]} : vector<2x48xf32> to vector<2x16xf32>
    %223 = vector.extract_strided_slice %219 {offsets = [0, 16], sizes = [2, 16], strides = [1, 1]} : vector<2x48xf32> to vector<2x16xf32>
    %224 = vector.extract_strided_slice %219 {offsets = [0, 32], sizes = [2, 16], strides = [1, 1]} : vector<2x48xf32> to vector<2x16xf32>
    %225 = arith.mulf %223, %191 : vector<2x16xf32>
    %226 = arith.mulf %222, %221 : vector<2x16xf32>
    %227 = arith.addf %225, %226 : vector<2x16xf32>
    %228 = math.tanh %227 : vector<2x16xf32>
    %229 = arith.mulf %224, %228 : vector<2x16xf32>
    %230 = vector.extract_strided_slice %213 {offsets = [0, 0], sizes = [2, 48], strides = [1, 1]} : vector<2x64xf32> to vector<2x48xf32>
    %231 = arith.negf %230 : vector<2x48xf32>
    %232 = math.exp %231 : vector<2x48xf32>
    %cst_28 = arith.constant 1.000000e+00 : f32
    %233 = vector.broadcast %cst_28 : f32 to vector<2x48xf32>
    %234 = arith.addf %233, %232 : vector<2x48xf32>
    %235 = arith.divf %233, %234 : vector<2x48xf32>
    %236 = vector.extract_strided_slice %213 {offsets = [0, 48], sizes = [2, 16], strides = [1, 1]} : vector<2x64xf32> to vector<2x16xf32>
    %237 = math.tanh %236 : vector<2x16xf32>
    %238 = vector.extract_strided_slice %235 {offsets = [0, 0], sizes = [2, 16], strides = [1, 1]} : vector<2x48xf32> to vector<2x16xf32>
    %239 = vector.extract_strided_slice %235 {offsets = [0, 16], sizes = [2, 16], strides = [1, 1]} : vector<2x48xf32> to vector<2x16xf32>
    %240 = vector.extract_strided_slice %235 {offsets = [0, 32], sizes = [2, 16], strides = [1, 1]} : vector<2x48xf32> to vector<2x16xf32>
    %241 = arith.mulf %239, %197 : vector<2x16xf32>
    %242 = arith.mulf %238, %237 : vector<2x16xf32>
    %243 = arith.addf %241, %242 : vector<2x16xf32>
    %244 = math.tanh %243 : vector<2x16xf32>
    %245 = arith.mulf %240, %244 : vector<2x16xf32>
    %c3_i32 = arith.constant 3 : i32
    %246 = vector.broadcast %c3_i32 : i32 to vector<2x1xi32>
    %247 = arith.cmpi sgt, %0, %246 : vector<2x1xi32>
    %c4_i32 = arith.constant 4 : i32
    %248 = vector.broadcast %c4_i32 : i32 to vector<2x1xi32>
    %249 = arith.cmpi sgt, %0, %248 : vector<2x1xi32>
    %250 = vector.shape_cast %247 : vector<2x1xi1> to vector<2x1xi1>
    %251 = vector.broadcast %250 : vector<2x1xi1> to vector<2x16xi1>
    %252 = arith.select %251, %229, %188 : vector<2x16xi1>, vector<2x16xf32>
    %253 = vector.shape_cast %247 : vector<2x1xi1> to vector<2x1xi1>
    %254 = vector.broadcast %253 : vector<2x1xi1> to vector<2x16xi1>
    %255 = arith.select %254, %227, %191 : vector<2x16xi1>, vector<2x16xf32>
    %256 = vector.shape_cast %249 : vector<2x1xi1> to vector<2x1xi1>
    %257 = vector.broadcast %256 : vector<2x1xi1> to vector<2x16xi1>
    %258 = arith.select %257, %245, %194 : vector<2x16xi1>, vector<2x16xf32>
    %259 = vector.shape_cast %249 : vector<2x1xi1> to vector<2x1xi1>
    %260 = vector.broadcast %259 : vector<2x1xi1> to vector<2x16xi1>
    %261 = arith.select %260, %243, %197 : vector<2x16xi1>, vector<2x16xf32>
    %cst_29 = arith.constant 0.000000e+00 : f32
    %262 = vector.shape_cast %247 : vector<2x1xi1> to vector<2x1xi1>
    %263 = vector.broadcast %262 : vector<2x1xi1> to vector<2x16xi1>
    %264 = vector.broadcast %cst_29 : f32 to vector<2x16xf32>
    %265 = arith.select %263, %229, %264 : vector<2x16xi1>, vector<2x16xf32>
    %cst_30 = arith.constant 0.000000e+00 : f32
    %266 = vector.shape_cast %249 : vector<2x1xi1> to vector<2x1xi1>
    %267 = vector.broadcast %266 : vector<2x1xi1> to vector<2x16xi1>
    %268 = vector.broadcast %cst_30 : f32 to vector<2x16xf32>
    %269 = arith.select %267, %245, %268 : vector<2x16xi1>, vector<2x16xf32>
    %270 = tpu.concatenate %252, %258 in 1 : vector<2x16xf32>, vector<2x16xf32> -> vector<2x32xf32>
    %cst_31 = arith.constant dense<0.000000e+00> : vector<2x128xf32>
    %271 = tpu.matmul %270, %9, %cst_31 {dimension_numbers = #tpu.dot_dimension_numbers<[1], [0], [0], [1], [0, 0, 1, 1], [], []>} : vector<2x32xf32>, vector<32x128xf32>, vector<2x128xf32> -> vector<2x128xf32>
    %272 = vector.extract_strided_slice %271 {offsets = [0, 0], sizes = [2, 64], strides = [1, 1]} : vector<2x128xf32> to vector<2x64xf32>
    %273 = vector.extract_strided_slice %8 {offsets = [8, 0], sizes = [2, 64], strides = [1, 1]} : vector<16x128xf32> to vector<2x64xf32>
    %274 = arith.addf %272, %273 : vector<2x64xf32>
    %275 = vector.extract_strided_slice %271 {offsets = [0, 64], sizes = [2, 64], strides = [1, 1]} : vector<2x128xf32> to vector<2x64xf32>
    %276 = vector.extract_strided_slice %8 {offsets = [6, 64], sizes = [2, 64], strides = [1, 1]} : vector<16x128xf32> to vector<2x64xf32>
    %277 = arith.addf %275, %276 : vector<2x64xf32>
    %278 = vector.extract_strided_slice %274 {offsets = [0, 0], sizes = [2, 48], strides = [1, 1]} : vector<2x64xf32> to vector<2x48xf32>
    %279 = arith.negf %278 : vector<2x48xf32>
    %280 = math.exp %279 : vector<2x48xf32>
    %cst_32 = arith.constant 1.000000e+00 : f32
    %281 = vector.broadcast %cst_32 : f32 to vector<2x48xf32>
    %282 = arith.addf %281, %280 : vector<2x48xf32>
    %283 = arith.divf %281, %282 : vector<2x48xf32>
    %284 = vector.extract_strided_slice %274 {offsets = [0, 48], sizes = [2, 16], strides = [1, 1]} : vector<2x64xf32> to vector<2x16xf32>
    %285 = math.tanh %284 : vector<2x16xf32>
    %286 = vector.extract_strided_slice %283 {offsets = [0, 0], sizes = [2, 16], strides = [1, 1]} : vector<2x48xf32> to vector<2x16xf32>
    %287 = vector.extract_strided_slice %283 {offsets = [0, 16], sizes = [2, 16], strides = [1, 1]} : vector<2x48xf32> to vector<2x16xf32>
    %288 = vector.extract_strided_slice %283 {offsets = [0, 32], sizes = [2, 16], strides = [1, 1]} : vector<2x48xf32> to vector<2x16xf32>
    %289 = arith.mulf %287, %255 : vector<2x16xf32>
    %290 = arith.mulf %286, %285 : vector<2x16xf32>
    %291 = arith.addf %289, %290 : vector<2x16xf32>
    %292 = math.tanh %291 : vector<2x16xf32>
    %293 = arith.mulf %288, %292 : vector<2x16xf32>
    %294 = vector.extract_strided_slice %277 {offsets = [0, 0], sizes = [2, 48], strides = [1, 1]} : vector<2x64xf32> to vector<2x48xf32>
    %295 = arith.negf %294 : vector<2x48xf32>
    %296 = math.exp %295 : vector<2x48xf32>
    %cst_33 = arith.constant 1.000000e+00 : f32
    %297 = vector.broadcast %cst_33 : f32 to vector<2x48xf32>
    %298 = arith.addf %297, %296 : vector<2x48xf32>
    %299 = arith.divf %297, %298 : vector<2x48xf32>
    %300 = vector.extract_strided_slice %277 {offsets = [0, 48], sizes = [2, 16], strides = [1, 1]} : vector<2x64xf32> to vector<2x16xf32>
    %301 = math.tanh %300 : vector<2x16xf32>
    %302 = vector.extract_strided_slice %299 {offsets = [0, 0], sizes = [2, 16], strides = [1, 1]} : vector<2x48xf32> to vector<2x16xf32>
    %303 = vector.extract_strided_slice %299 {offsets = [0, 16], sizes = [2, 16], strides = [1, 1]} : vector<2x48xf32> to vector<2x16xf32>
    %304 = vector.extract_strided_slice %299 {offsets = [0, 32], sizes = [2, 16], strides = [1, 1]} : vector<2x48xf32> to vector<2x16xf32>
    %305 = arith.mulf %303, %261 : vector<2x16xf32>
    %306 = arith.mulf %302, %301 : vector<2x16xf32>
    %307 = arith.addf %305, %306 : vector<2x16xf32>
    %308 = math.tanh %307 : vector<2x16xf32>
    %309 = arith.mulf %304, %308 : vector<2x16xf32>
    %c4_i32_34 = arith.constant 4 : i32
    %310 = vector.broadcast %c4_i32_34 : i32 to vector<2x1xi32>
    %311 = arith.cmpi sgt, %0, %310 : vector<2x1xi32>
    %c3_i32_35 = arith.constant 3 : i32
    %312 = vector.broadcast %c3_i32_35 : i32 to vector<2x1xi32>
    %313 = arith.cmpi sgt, %0, %312 : vector<2x1xi32>
    %314 = vector.shape_cast %311 : vector<2x1xi1> to vector<2x1xi1>
    %315 = vector.broadcast %314 : vector<2x1xi1> to vector<2x16xi1>
    %316 = arith.select %315, %293, %252 : vector<2x16xi1>, vector<2x16xf32>
    %317 = vector.shape_cast %311 : vector<2x1xi1> to vector<2x1xi1>
    %318 = vector.broadcast %317 : vector<2x1xi1> to vector<2x16xi1>
    %319 = arith.select %318, %291, %255 : vector<2x16xi1>, vector<2x16xf32>
    %320 = vector.shape_cast %313 : vector<2x1xi1> to vector<2x1xi1>
    %321 = vector.broadcast %320 : vector<2x1xi1> to vector<2x16xi1>
    %322 = arith.select %321, %309, %258 : vector<2x16xi1>, vector<2x16xf32>
    %323 = vector.shape_cast %313 : vector<2x1xi1> to vector<2x1xi1>
    %324 = vector.broadcast %323 : vector<2x1xi1> to vector<2x16xi1>
    %325 = arith.select %324, %307, %261 : vector<2x16xi1>, vector<2x16xf32>
    %cst_36 = arith.constant 0.000000e+00 : f32
    %326 = vector.shape_cast %311 : vector<2x1xi1> to vector<2x1xi1>
    %327 = vector.broadcast %326 : vector<2x1xi1> to vector<2x16xi1>
    %328 = vector.broadcast %cst_36 : f32 to vector<2x16xf32>
    %329 = arith.select %327, %293, %328 : vector<2x16xi1>, vector<2x16xf32>
    %cst_37 = arith.constant 0.000000e+00 : f32
    %330 = vector.shape_cast %313 : vector<2x1xi1> to vector<2x1xi1>
    %331 = vector.broadcast %330 : vector<2x1xi1> to vector<2x16xi1>
    %332 = vector.broadcast %cst_37 : f32 to vector<2x16xf32>
    %333 = arith.select %331, %309, %332 : vector<2x16xi1>, vector<2x16xf32>
    %334 = tpu.concatenate %316, %322 in 1 : vector<2x16xf32>, vector<2x16xf32> -> vector<2x32xf32>
    %cst_38 = arith.constant dense<0.000000e+00> : vector<2x128xf32>
    %335 = tpu.matmul %334, %9, %cst_38 {dimension_numbers = #tpu.dot_dimension_numbers<[1], [0], [0], [1], [0, 0, 1, 1], [], []>} : vector<2x32xf32>, vector<32x128xf32>, vector<2x128xf32> -> vector<2x128xf32>
    %336 = vector.extract_strided_slice %335 {offsets = [0, 0], sizes = [2, 64], strides = [1, 1]} : vector<2x128xf32> to vector<2x64xf32>
    %337 = vector.extract_strided_slice %8 {offsets = [10, 0], sizes = [2, 64], strides = [1, 1]} : vector<16x128xf32> to vector<2x64xf32>
    %338 = arith.addf %336, %337 : vector<2x64xf32>
    %339 = vector.extract_strided_slice %335 {offsets = [0, 64], sizes = [2, 64], strides = [1, 1]} : vector<2x128xf32> to vector<2x64xf32>
    %340 = vector.extract_strided_slice %8 {offsets = [4, 64], sizes = [2, 64], strides = [1, 1]} : vector<16x128xf32> to vector<2x64xf32>
    %341 = arith.addf %339, %340 : vector<2x64xf32>
    %342 = vector.extract_strided_slice %338 {offsets = [0, 0], sizes = [2, 48], strides = [1, 1]} : vector<2x64xf32> to vector<2x48xf32>
    %343 = arith.negf %342 : vector<2x48xf32>
    %344 = math.exp %343 : vector<2x48xf32>
    %cst_39 = arith.constant 1.000000e+00 : f32
    %345 = vector.broadcast %cst_39 : f32 to vector<2x48xf32>
    %346 = arith.addf %345, %344 : vector<2x48xf32>
    %347 = arith.divf %345, %346 : vector<2x48xf32>
    %348 = vector.extract_strided_slice %338 {offsets = [0, 48], sizes = [2, 16], strides = [1, 1]} : vector<2x64xf32> to vector<2x16xf32>
    %349 = math.tanh %348 : vector<2x16xf32>
    %350 = vector.extract_strided_slice %347 {offsets = [0, 0], sizes = [2, 16], strides = [1, 1]} : vector<2x48xf32> to vector<2x16xf32>
    %351 = vector.extract_strided_slice %347 {offsets = [0, 16], sizes = [2, 16], strides = [1, 1]} : vector<2x48xf32> to vector<2x16xf32>
    %352 = vector.extract_strided_slice %347 {offsets = [0, 32], sizes = [2, 16], strides = [1, 1]} : vector<2x48xf32> to vector<2x16xf32>
    %353 = arith.mulf %351, %319 : vector<2x16xf32>
    %354 = arith.mulf %350, %349 : vector<2x16xf32>
    %355 = arith.addf %353, %354 : vector<2x16xf32>
    %356 = math.tanh %355 : vector<2x16xf32>
    %357 = arith.mulf %352, %356 : vector<2x16xf32>
    %358 = vector.extract_strided_slice %341 {offsets = [0, 0], sizes = [2, 48], strides = [1, 1]} : vector<2x64xf32> to vector<2x48xf32>
    %359 = arith.negf %358 : vector<2x48xf32>
    %360 = math.exp %359 : vector<2x48xf32>
    %cst_40 = arith.constant 1.000000e+00 : f32
    %361 = vector.broadcast %cst_40 : f32 to vector<2x48xf32>
    %362 = arith.addf %361, %360 : vector<2x48xf32>
    %363 = arith.divf %361, %362 : vector<2x48xf32>
    %364 = vector.extract_strided_slice %341 {offsets = [0, 48], sizes = [2, 16], strides = [1, 1]} : vector<2x64xf32> to vector<2x16xf32>
    %365 = math.tanh %364 : vector<2x16xf32>
    %366 = vector.extract_strided_slice %363 {offsets = [0, 0], sizes = [2, 16], strides = [1, 1]} : vector<2x48xf32> to vector<2x16xf32>
    %367 = vector.extract_strided_slice %363 {offsets = [0, 16], sizes = [2, 16], strides = [1, 1]} : vector<2x48xf32> to vector<2x16xf32>
    %368 = vector.extract_strided_slice %363 {offsets = [0, 32], sizes = [2, 16], strides = [1, 1]} : vector<2x48xf32> to vector<2x16xf32>
    %369 = arith.mulf %367, %325 : vector<2x16xf32>
    %370 = arith.mulf %366, %365 : vector<2x16xf32>
    %371 = arith.addf %369, %370 : vector<2x16xf32>
    %372 = math.tanh %371 : vector<2x16xf32>
    %373 = arith.mulf %368, %372 : vector<2x16xf32>
    %c5_i32_41 = arith.constant 5 : i32
    %374 = vector.broadcast %c5_i32_41 : i32 to vector<2x1xi32>
    %375 = arith.cmpi sgt, %0, %374 : vector<2x1xi32>
    %c2_i32_42 = arith.constant 2 : i32
    %376 = vector.broadcast %c2_i32_42 : i32 to vector<2x1xi32>
    %377 = arith.cmpi sgt, %0, %376 : vector<2x1xi32>
    %378 = vector.shape_cast %375 : vector<2x1xi1> to vector<2x1xi1>
    %379 = vector.broadcast %378 : vector<2x1xi1> to vector<2x16xi1>
    %380 = arith.select %379, %357, %316 : vector<2x16xi1>, vector<2x16xf32>
    %381 = vector.shape_cast %375 : vector<2x1xi1> to vector<2x1xi1>
    %382 = vector.broadcast %381 : vector<2x1xi1> to vector<2x16xi1>
    %383 = arith.select %382, %355, %319 : vector<2x16xi1>, vector<2x16xf32>
    %384 = vector.shape_cast %377 : vector<2x1xi1> to vector<2x1xi1>
    %385 = vector.broadcast %384 : vector<2x1xi1> to vector<2x16xi1>
    %386 = arith.select %385, %373, %322 : vector<2x16xi1>, vector<2x16xf32>
    %387 = vector.shape_cast %377 : vector<2x1xi1> to vector<2x1xi1>
    %388 = vector.broadcast %387 : vector<2x1xi1> to vector<2x16xi1>
    %389 = arith.select %388, %371, %325 : vector<2x16xi1>, vector<2x16xf32>
    %cst_43 = arith.constant 0.000000e+00 : f32
    %390 = vector.shape_cast %375 : vector<2x1xi1> to vector<2x1xi1>
    %391 = vector.broadcast %390 : vector<2x1xi1> to vector<2x16xi1>
    %392 = vector.broadcast %cst_43 : f32 to vector<2x16xf32>
    %393 = arith.select %391, %357, %392 : vector<2x16xi1>, vector<2x16xf32>
    %cst_44 = arith.constant 0.000000e+00 : f32
    %394 = vector.shape_cast %377 : vector<2x1xi1> to vector<2x1xi1>
    %395 = vector.broadcast %394 : vector<2x1xi1> to vector<2x16xi1>
    %396 = vector.broadcast %cst_44 : f32 to vector<2x16xf32>
    %397 = arith.select %395, %373, %396 : vector<2x16xi1>, vector<2x16xf32>
    %398 = tpu.concatenate %380, %386 in 1 : vector<2x16xf32>, vector<2x16xf32> -> vector<2x32xf32>
    %cst_45 = arith.constant dense<0.000000e+00> : vector<2x128xf32>
    %399 = tpu.matmul %398, %9, %cst_45 {dimension_numbers = #tpu.dot_dimension_numbers<[1], [0], [0], [1], [0, 0, 1, 1], [], []>} : vector<2x32xf32>, vector<32x128xf32>, vector<2x128xf32> -> vector<2x128xf32>
    %400 = vector.extract_strided_slice %399 {offsets = [0, 0], sizes = [2, 64], strides = [1, 1]} : vector<2x128xf32> to vector<2x64xf32>
    %401 = vector.extract_strided_slice %8 {offsets = [12, 0], sizes = [2, 64], strides = [1, 1]} : vector<16x128xf32> to vector<2x64xf32>
    %402 = arith.addf %400, %401 : vector<2x64xf32>
    %403 = vector.extract_strided_slice %399 {offsets = [0, 64], sizes = [2, 64], strides = [1, 1]} : vector<2x128xf32> to vector<2x64xf32>
    %404 = vector.extract_strided_slice %8 {offsets = [2, 64], sizes = [2, 64], strides = [1, 1]} : vector<16x128xf32> to vector<2x64xf32>
    %405 = arith.addf %403, %404 : vector<2x64xf32>
    %406 = vector.extract_strided_slice %402 {offsets = [0, 0], sizes = [2, 48], strides = [1, 1]} : vector<2x64xf32> to vector<2x48xf32>
    %407 = arith.negf %406 : vector<2x48xf32>
    %408 = math.exp %407 : vector<2x48xf32>
    %cst_46 = arith.constant 1.000000e+00 : f32
    %409 = vector.broadcast %cst_46 : f32 to vector<2x48xf32>
    %410 = arith.addf %409, %408 : vector<2x48xf32>
    %411 = arith.divf %409, %410 : vector<2x48xf32>
    %412 = vector.extract_strided_slice %402 {offsets = [0, 48], sizes = [2, 16], strides = [1, 1]} : vector<2x64xf32> to vector<2x16xf32>
    %413 = math.tanh %412 : vector<2x16xf32>
    %414 = vector.extract_strided_slice %411 {offsets = [0, 0], sizes = [2, 16], strides = [1, 1]} : vector<2x48xf32> to vector<2x16xf32>
    %415 = vector.extract_strided_slice %411 {offsets = [0, 16], sizes = [2, 16], strides = [1, 1]} : vector<2x48xf32> to vector<2x16xf32>
    %416 = vector.extract_strided_slice %411 {offsets = [0, 32], sizes = [2, 16], strides = [1, 1]} : vector<2x48xf32> to vector<2x16xf32>
    %417 = arith.mulf %415, %383 : vector<2x16xf32>
    %418 = arith.mulf %414, %413 : vector<2x16xf32>
    %419 = arith.addf %417, %418 : vector<2x16xf32>
    %420 = math.tanh %419 : vector<2x16xf32>
    %421 = arith.mulf %416, %420 : vector<2x16xf32>
    %422 = vector.extract_strided_slice %405 {offsets = [0, 0], sizes = [2, 48], strides = [1, 1]} : vector<2x64xf32> to vector<2x48xf32>
    %423 = arith.negf %422 : vector<2x48xf32>
    %424 = math.exp %423 : vector<2x48xf32>
    %cst_47 = arith.constant 1.000000e+00 : f32
    %425 = vector.broadcast %cst_47 : f32 to vector<2x48xf32>
    %426 = arith.addf %425, %424 : vector<2x48xf32>
    %427 = arith.divf %425, %426 : vector<2x48xf32>
    %428 = vector.extract_strided_slice %405 {offsets = [0, 48], sizes = [2, 16], strides = [1, 1]} : vector<2x64xf32> to vector<2x16xf32>
    %429 = math.tanh %428 : vector<2x16xf32>
    %430 = vector.extract_strided_slice %427 {offsets = [0, 0], sizes = [2, 16], strides = [1, 1]} : vector<2x48xf32> to vector<2x16xf32>
    %431 = vector.extract_strided_slice %427 {offsets = [0, 16], sizes = [2, 16], strides = [1, 1]} : vector<2x48xf32> to vector<2x16xf32>
    %432 = vector.extract_strided_slice %427 {offsets = [0, 32], sizes = [2, 16], strides = [1, 1]} : vector<2x48xf32> to vector<2x16xf32>
    %433 = arith.mulf %431, %389 : vector<2x16xf32>
    %434 = arith.mulf %430, %429 : vector<2x16xf32>
    %435 = arith.addf %433, %434 : vector<2x16xf32>
    %436 = math.tanh %435 : vector<2x16xf32>
    %437 = arith.mulf %432, %436 : vector<2x16xf32>
    %c6_i32_48 = arith.constant 6 : i32
    %438 = vector.broadcast %c6_i32_48 : i32 to vector<2x1xi32>
    %439 = arith.cmpi sgt, %0, %438 : vector<2x1xi32>
    %c1_i32_49 = arith.constant 1 : i32
    %440 = vector.broadcast %c1_i32_49 : i32 to vector<2x1xi32>
    %441 = arith.cmpi sgt, %0, %440 : vector<2x1xi32>
    %442 = vector.shape_cast %439 : vector<2x1xi1> to vector<2x1xi1>
    %443 = vector.broadcast %442 : vector<2x1xi1> to vector<2x16xi1>
    %444 = arith.select %443, %421, %380 : vector<2x16xi1>, vector<2x16xf32>
    %445 = vector.shape_cast %439 : vector<2x1xi1> to vector<2x1xi1>
    %446 = vector.broadcast %445 : vector<2x1xi1> to vector<2x16xi1>
    %447 = arith.select %446, %419, %383 : vector<2x16xi1>, vector<2x16xf32>
    %448 = vector.shape_cast %441 : vector<2x1xi1> to vector<2x1xi1>
    %449 = vector.broadcast %448 : vector<2x1xi1> to vector<2x16xi1>
    %450 = arith.select %449, %437, %386 : vector<2x16xi1>, vector<2x16xf32>
    %451 = vector.shape_cast %441 : vector<2x1xi1> to vector<2x1xi1>
    %452 = vector.broadcast %451 : vector<2x1xi1> to vector<2x16xi1>
    %453 = arith.select %452, %435, %389 : vector<2x16xi1>, vector<2x16xf32>
    %cst_50 = arith.constant 0.000000e+00 : f32
    %454 = vector.shape_cast %439 : vector<2x1xi1> to vector<2x1xi1>
    %455 = vector.broadcast %454 : vector<2x1xi1> to vector<2x16xi1>
    %456 = vector.broadcast %cst_50 : f32 to vector<2x16xf32>
    %457 = arith.select %455, %421, %456 : vector<2x16xi1>, vector<2x16xf32>
    %cst_51 = arith.constant 0.000000e+00 : f32
    %458 = vector.shape_cast %441 : vector<2x1xi1> to vector<2x1xi1>
    %459 = vector.broadcast %458 : vector<2x1xi1> to vector<2x16xi1>
    %460 = vector.broadcast %cst_51 : f32 to vector<2x16xf32>
    %461 = arith.select %459, %437, %460 : vector<2x16xi1>, vector<2x16xf32>
    %462 = tpu.concatenate %444, %450 in 1 : vector<2x16xf32>, vector<2x16xf32> -> vector<2x32xf32>
    %cst_52 = arith.constant dense<0.000000e+00> : vector<2x128xf32>
    %463 = tpu.matmul %462, %9, %cst_52 {dimension_numbers = #tpu.dot_dimension_numbers<[1], [0], [0], [1], [0, 0, 1, 1], [], []>} : vector<2x32xf32>, vector<32x128xf32>, vector<2x128xf32> -> vector<2x128xf32>
    %464 = vector.extract_strided_slice %463 {offsets = [0, 0], sizes = [2, 64], strides = [1, 1]} : vector<2x128xf32> to vector<2x64xf32>
    %465 = vector.extract_strided_slice %8 {offsets = [14, 0], sizes = [2, 64], strides = [1, 1]} : vector<16x128xf32> to vector<2x64xf32>
    %466 = arith.addf %464, %465 : vector<2x64xf32>
    %467 = vector.extract_strided_slice %463 {offsets = [0, 64], sizes = [2, 64], strides = [1, 1]} : vector<2x128xf32> to vector<2x64xf32>
    %468 = vector.extract_strided_slice %8 {offsets = [0, 64], sizes = [2, 64], strides = [1, 1]} : vector<16x128xf32> to vector<2x64xf32>
    %469 = arith.addf %467, %468 : vector<2x64xf32>
    %470 = vector.extract_strided_slice %466 {offsets = [0, 0], sizes = [2, 48], strides = [1, 1]} : vector<2x64xf32> to vector<2x48xf32>
    %471 = arith.negf %470 : vector<2x48xf32>
    %472 = math.exp %471 : vector<2x48xf32>
    %cst_53 = arith.constant 1.000000e+00 : f32
    %473 = vector.broadcast %cst_53 : f32 to vector<2x48xf32>
    %474 = arith.addf %473, %472 : vector<2x48xf32>
    %475 = arith.divf %473, %474 : vector<2x48xf32>
    %476 = vector.extract_strided_slice %466 {offsets = [0, 48], sizes = [2, 16], strides = [1, 1]} : vector<2x64xf32> to vector<2x16xf32>
    %477 = math.tanh %476 : vector<2x16xf32>
    %478 = vector.extract_strided_slice %475 {offsets = [0, 0], sizes = [2, 16], strides = [1, 1]} : vector<2x48xf32> to vector<2x16xf32>
    %479 = vector.extract_strided_slice %475 {offsets = [0, 16], sizes = [2, 16], strides = [1, 1]} : vector<2x48xf32> to vector<2x16xf32>
    %480 = vector.extract_strided_slice %475 {offsets = [0, 32], sizes = [2, 16], strides = [1, 1]} : vector<2x48xf32> to vector<2x16xf32>
    %481 = arith.mulf %479, %447 : vector<2x16xf32>
    %482 = arith.mulf %478, %477 : vector<2x16xf32>
    %483 = arith.addf %481, %482 : vector<2x16xf32>
    %484 = math.tanh %483 : vector<2x16xf32>
    %485 = arith.mulf %480, %484 : vector<2x16xf32>
    %486 = vector.extract_strided_slice %469 {offsets = [0, 0], sizes = [2, 48], strides = [1, 1]} : vector<2x64xf32> to vector<2x48xf32>
    %487 = arith.negf %486 : vector<2x48xf32>
    %488 = math.exp %487 : vector<2x48xf32>
    %cst_54 = arith.constant 1.000000e+00 : f32
    %489 = vector.broadcast %cst_54 : f32 to vector<2x48xf32>
    %490 = arith.addf %489, %488 : vector<2x48xf32>
    %491 = arith.divf %489, %490 : vector<2x48xf32>
    %492 = vector.extract_strided_slice %469 {offsets = [0, 48], sizes = [2, 16], strides = [1, 1]} : vector<2x64xf32> to vector<2x16xf32>
    %493 = math.tanh %492 : vector<2x16xf32>
    %494 = vector.extract_strided_slice %491 {offsets = [0, 0], sizes = [2, 16], strides = [1, 1]} : vector<2x48xf32> to vector<2x16xf32>
    %495 = vector.extract_strided_slice %491 {offsets = [0, 16], sizes = [2, 16], strides = [1, 1]} : vector<2x48xf32> to vector<2x16xf32>
    %496 = vector.extract_strided_slice %491 {offsets = [0, 32], sizes = [2, 16], strides = [1, 1]} : vector<2x48xf32> to vector<2x16xf32>
    %497 = arith.mulf %495, %453 : vector<2x16xf32>
    %498 = arith.mulf %494, %493 : vector<2x16xf32>
    %499 = arith.addf %497, %498 : vector<2x16xf32>
    %500 = math.tanh %499 : vector<2x16xf32>
    %501 = arith.mulf %496, %500 : vector<2x16xf32>
    %c7_i32_55 = arith.constant 7 : i32
    %502 = vector.broadcast %c7_i32_55 : i32 to vector<2x1xi32>
    %503 = arith.cmpi sgt, %0, %502 : vector<2x1xi32>
    %c0_i32_56 = arith.constant 0 : i32
    %504 = vector.broadcast %c0_i32_56 : i32 to vector<2x1xi32>
    %505 = arith.cmpi sgt, %0, %504 : vector<2x1xi32>
    %506 = vector.shape_cast %503 : vector<2x1xi1> to vector<2x1xi1>
    %507 = vector.broadcast %506 : vector<2x1xi1> to vector<2x16xi1>
    %508 = arith.select %507, %485, %444 : vector<2x16xi1>, vector<2x16xf32>
    %509 = vector.shape_cast %505 : vector<2x1xi1> to vector<2x1xi1>
    %510 = vector.broadcast %509 : vector<2x1xi1> to vector<2x16xi1>
    %511 = arith.select %510, %501, %450 : vector<2x16xi1>, vector<2x16xf32>
    %cst_57 = arith.constant 0.000000e+00 : f32
    %512 = vector.shape_cast %503 : vector<2x1xi1> to vector<2x1xi1>
    %513 = vector.broadcast %512 : vector<2x1xi1> to vector<2x16xi1>
    %514 = vector.broadcast %cst_57 : f32 to vector<2x16xf32>
    %515 = arith.select %513, %485, %514 : vector<2x16xi1>, vector<2x16xf32>
    %cst_58 = arith.constant 0.000000e+00 : f32
    %516 = vector.shape_cast %505 : vector<2x1xi1> to vector<2x1xi1>
    %517 = vector.broadcast %516 : vector<2x1xi1> to vector<2x16xi1>
    %518 = vector.broadcast %cst_58 : f32 to vector<2x16xf32>
    %519 = arith.select %517, %501, %518 : vector<2x16xi1>, vector<2x16xf32>
    %520 = tpu.concatenate %508, %511 in 1 : vector<2x16xf32>, vector<2x16xf32> -> vector<2x32xf32>
    %c0_59 = arith.constant 0 : index
    %c0_60 = arith.constant 0 : index
    %521 = vector.load %arg4[%c0_59, %c0_60] : memref<32x32xf32, #tpu.memory_space<vmem>>, vector<32x32xf32>
    %cst_61 = arith.constant dense<0.000000e+00> : vector<2x32xf32>
    %522 = tpu.matmul %520, %521, %cst_61 {dimension_numbers = #tpu.dot_dimension_numbers<[1], [0], [0], [1], [0, 0, 1, 1], [], []>} : vector<2x32xf32>, vector<32x32xf32>, vector<2x32xf32> -> vector<2x32xf32>
    %c0_62 = arith.constant 0 : index
    %c0_63 = arith.constant 0 : index
    %523 = vector.load %arg5[%c0_62, %c0_63] : memref<1x32xf32, #tpu.memory_space<vmem>>, vector<1x32xf32>
    %524 = vector.broadcast %523 : vector<1x32xf32> to vector<2x32xf32>
    %525 = arith.addf %522, %524 : vector<2x32xf32>
    %526 = math.tanh %525 : vector<2x32xf32>
    %c0_64 = arith.constant 0 : index
    %c0_65 = arith.constant 0 : index
    %527 = vector.load %arg6[%c0_64, %c0_65] : memref<32x128xf32, #tpu.memory_space<vmem>>, vector<32x128xf32>
    %cst_66 = arith.constant dense<0.000000e+00> : vector<2x128xf32>
    %528 = tpu.matmul %526, %527, %cst_66 {dimension_numbers = #tpu.dot_dimension_numbers<[1], [0], [0], [1], [0, 0, 1, 1], [], []>} : vector<2x32xf32>, vector<32x128xf32>, vector<2x128xf32> -> vector<2x128xf32>
    %c0_67 = arith.constant 0 : index
    %c0_68 = arith.constant 0 : index
    %529 = vector.load %arg7[%c0_67, %c0_68] : memref<1x128xf32, #tpu.memory_space<vmem>>, vector<1x128xf32>
    %530 = vector.broadcast %529 : vector<1x128xf32> to vector<2x128xf32>
    %531 = arith.addf %528, %530 : vector<2x128xf32>
    %532 = tpu.concatenate %73, %519, %137, %461, %201, %397, %265, %333, %329, %269, %393, %205, %457, %141, %515, %77 in 1 : vector<2x16xf32>, vector<2x16xf32>, vector<2x16xf32>, vector<2x16xf32>, vector<2x16xf32>, vector<2x16xf32>, vector<2x16xf32>, vector<2x16xf32>, vector<2x16xf32>, vector<2x16xf32>, vector<2x16xf32>, vector<2x16xf32>, vector<2x16xf32>, vector<2x16xf32>, vector<2x16xf32>, vector<2x16xf32> -> vector<2x256xf32>
    %c0_69 = arith.constant 0 : index
    %c0_70 = arith.constant 0 : index
    %533 = vector.load %arg8[%c0_69, %c0_70] : memref<256x1160xf32, #tpu.memory_space<vmem>>, vector<256x1160xf32>
    %cst_71 = arith.constant dense<0.000000e+00> : vector<2x1160xf32>
    %534 = tpu.matmul %532, %533, %cst_71 {dimension_numbers = #tpu.dot_dimension_numbers<[1], [0], [0], [1], [0, 0, 1, 1], [], []>} : vector<2x256xf32>, vector<256x1160xf32>, vector<2x1160xf32> -> vector<2x1160xf32>
    %535 = vector.extract_strided_slice %534 {offsets = [0, 0], sizes = [2, 1024], strides = [1, 1]} : vector<2x1160xf32> to vector<2x1024xf32>
    %536 = vector.extract_strided_slice %534 {offsets = [0, 1024], sizes = [2, 128], strides = [1, 1]} : vector<2x1160xf32> to vector<2x128xf32>
    %c0_72 = arith.constant 0 : index
    %c0_73 = arith.constant 0 : index
    %537 = vector.load %arg9[%c0_72, %c0_73] : memref<1x128xf32, #tpu.memory_space<vmem>>, vector<1x128xf32>
    %538 = vector.broadcast %537 : vector<1x128xf32> to vector<2x128xf32>
    %539 = arith.addf %536, %538 : vector<2x128xf32>
    %540 = vector.extract_strided_slice %534 {offsets = [0, 1152], sizes = [2, 8], strides = [1, 1]} : vector<2x1160xf32> to vector<2x8xf32>
    %cst_74 = arith.constant 0.000000e+00 : f32
    %541 = vector.broadcast %cst_74 : f32 to vector<2x8xf32>
    %542 = arith.cmpf one, %540, %541 : vector<2x8xf32>
    %c48_i32 = arith.constant 48 : i32
    %543 = vector.broadcast %c48_i32 : i32 to vector<2x1xi32>
    %cst_75 = arith.constant 0.000000e+00 : f32
    %544 = vector.broadcast %cst_75 : f32 to vector<2x32xf32>
    %cst_76 = arith.constant 0.000000e+00 : f32
    %545 = vector.broadcast %cst_76 : f32 to vector<2x32xf32>
    %cst_77 = arith.constant 0.000000e+00 : f32
    %546 = vector.broadcast %cst_77 : f32 to vector<2x32xf32>
    %cst_78 = arith.constant 0.000000e+00 : f32
    %547 = vector.broadcast %cst_78 : f32 to vector<2x32xf32>
    %c1_i32_79 = arith.constant 1 : i32
    %548 = vector.broadcast %c1_i32_79 : i32 to vector<2x1xi32>
    %c0_i32_80 = arith.constant 0 : i32
    %549 = vector.broadcast %c0_i32_80 : i32 to vector<2x18xi32>
    %cst_81 = arith.constant 0.000000e+00 : f32
    %550 = vector.broadcast %cst_81 : f32 to vector<2x18xf32>
    %c0_i32_82 = arith.constant 0 : i32
    %c0_i32_83 = arith.constant 0 : i32
    %c18_i32 = arith.constant 18 : i32
    %551 = arith.addi %c0_i32_83, %c18_i32 : i32
    %c1_i32_84 = arith.constant 1 : i32
    %552:9 = scf.for %arg19 = %c0_i32_83 to %551 step %c1_i32_84 iter_args(%arg20 = %543, %arg21 = %544, %arg22 = %545, %arg23 = %546, %arg24 = %547, %arg25 = %548, %arg26 = %c0_i32_82, %arg27 = %549, %arg28 = %550) -> (vector<2x1xi32>, vector<2x32xf32>, vector<2x32xf32>, vector<2x32xf32>, vector<2x32xf32>, vector<2x1xi32>, i32, vector<2x18xi32>, vector<2x18xf32>)  : i32 {
      %555 = tpu.iota {dimensions = array<i32: 1>} : vector<2x50xi32>
      %556 = vector.broadcast %arg20 : vector<2x1xi32> to vector<2x50xi32>
      %557 = arith.cmpi eq, %555, %556 : vector<2x50xi32>
      %558 = arith.extui %557 : vector<2x50xi1> to vector<2x50xi32>
      %559 = arith.sitofp %558 : vector<2x50xi32> to vector<2x50xf32>
      %560 = tpu.concatenate %arg23, %arg21, %559 in 1 : vector<2x32xf32>, vector<2x32xf32>, vector<2x50xf32> -> vector<2x114xf32>
      %c0_90 = arith.constant 0 : index
      %c0_91 = arith.constant 0 : index
      %561 = vector.load %arg10[%c0_90, %c0_91] : memref<114x128xf32, #tpu.memory_space<vmem>>, vector<114x128xf32>
      %cst_92 = arith.constant dense<0.000000e+00> : vector<2x128xf32>
      %562 = tpu.matmul %560, %561, %cst_92 {dimension_numbers = #tpu.dot_dimension_numbers<[1], [0], [0], [1], [0, 0, 1, 1], [], []>} : vector<2x114xf32>, vector<114x128xf32>, vector<2x128xf32> -> vector<2x128xf32>
      %563 = arith.addf %562, %531 : vector<2x128xf32>
      %564 = vector.extract_strided_slice %563 {offsets = [0, 0], sizes = [2, 96], strides = [1, 1]} : vector<2x128xf32> to vector<2x96xf32>
      %565 = arith.negf %564 : vector<2x96xf32>
      %566 = math.exp %565 : vector<2x96xf32>
      %cst_93 = arith.constant 1.000000e+00 : f32
      %567 = vector.broadcast %cst_93 : f32 to vector<2x96xf32>
      %568 = arith.addf %567, %566 : vector<2x96xf32>
      %569 = arith.divf %567, %568 : vector<2x96xf32>
      %570 = vector.extract_strided_slice %563 {offsets = [0, 96], sizes = [2, 32], strides = [1, 1]} : vector<2x128xf32> to vector<2x32xf32>
      %571 = math.tanh %570 : vector<2x32xf32>
      %572 = vector.extract_strided_slice %569 {offsets = [0, 0], sizes = [2, 32], strides = [1, 1]} : vector<2x96xf32> to vector<2x32xf32>
      %573 = vector.extract_strided_slice %569 {offsets = [0, 32], sizes = [2, 32], strides = [1, 1]} : vector<2x96xf32> to vector<2x32xf32>
      %574 = vector.extract_strided_slice %569 {offsets = [0, 64], sizes = [2, 32], strides = [1, 1]} : vector<2x96xf32> to vector<2x32xf32>
      %575 = arith.mulf %573, %arg22 : vector<2x32xf32>
      %576 = arith.mulf %572, %571 : vector<2x32xf32>
      %577 = arith.addf %575, %576 : vector<2x32xf32>
      %578 = math.tanh %577 : vector<2x32xf32>
      %579 = arith.mulf %574, %578 : vector<2x32xf32>
      %580 = tpu.concatenate %579, %arg23 in 1 : vector<2x32xf32>, vector<2x32xf32> -> vector<2x64xf32>
      %c0_94 = arith.constant 0 : index
      %c0_95 = arith.constant 0 : index
      %581 = vector.load %arg11[%c0_94, %c0_95] : memref<64x256xf32, #tpu.memory_space<vmem>>, vector<64x256xf32>
      %cst_96 = arith.constant dense<0.000000e+00> : vector<2x256xf32>
      %582 = tpu.matmul %580, %581, %cst_96 {dimension_numbers = #tpu.dot_dimension_numbers<[1], [0], [0], [1], [0, 0, 1, 1], [], []>} : vector<2x64xf32>, vector<64x256xf32>, vector<2x256xf32> -> vector<2x256xf32>
      %583 = vector.extract_strided_slice %582 {offsets = [0, 0], sizes = [2, 128], strides = [1, 1]} : vector<2x256xf32> to vector<2x128xf32>
      %584 = vector.extract_strided_slice %582 {offsets = [0, 128], sizes = [2, 128], strides = [1, 1]} : vector<2x256xf32> to vector<2x128xf32>
      %585 = arith.addf %539, %584 : vector<2x128xf32>
      %586 = math.tanh %585 : vector<2x128xf32>
      %c0_97 = arith.constant 0 : index
      %c0_98 = arith.constant 0 : index
      %587 = vector.load %arg13[%c0_97, %c0_98] : memref<128x8xf32, #tpu.memory_space<vmem>>, vector<128x8xf32>
      %cst_99 = arith.constant dense<0.000000e+00> : vector<2x8xf32>
      %588 = tpu.matmul %586, %587, %cst_99 {dimension_numbers = #tpu.dot_dimension_numbers<[1], [0], [0], [1], [0, 0, 1, 1], [], []>} : vector<2x128xf32>, vector<128x8xf32>, vector<2x8xf32> -> vector<2x8xf32>
      %c0_100 = arith.constant 0 : index
      %c0_101 = arith.constant 0 : index
      %589 = vector.load %arg14[%c0_100, %c0_101] : memref<1x1xf32, #tpu.memory_space<vmem>>, vector<1x1xf32>
      %590 = vector.broadcast %589 : vector<1x1xf32> to vector<2x8xf32>
      %591 = arith.addf %588, %590 : vector<2x8xf32>
      %cst_102 = arith.constant -1.000000e+10 : f32
      %592 = vector.broadcast %cst_102 : f32 to vector<2x8xf32>
      %593 = arith.select %542, %591, %592 : vector<2x8xi1>, vector<2x8xf32>
      %cst_103 = arith.constant dense<0xFF800000> : vector<2xf32>
      %594 = vector.multi_reduction <maximumf>, %593, %cst_103 [1] : vector<2x8xf32> to vector<2xf32>
      %595 = vector.shape_cast %594 : vector<2xf32> to vector<2x1xf32>
      %596 = vector.broadcast %595 : vector<2x1xf32> to vector<2x8xf32>
      %597 = arith.subf %593, %596 : vector<2x8xf32>
      %598 = math.exp %597 : vector<2x8xf32>
      %cst_104 = arith.constant dense<0.000000e+00> : vector<2xf32>
      %599 = vector.multi_reduction <add>, %598, %cst_104 [1] : vector<2x8xf32> to vector<2xf32>
      %600 = vector.shape_cast %599 : vector<2xf32> to vector<2x1xf32>
      %601 = tpu.reciprocal %600 {approx = true} : vector<2x1xf32> -> vector<2x1xf32>
      %602 = vector.extract_strided_slice %598 {offsets = [0, 0], sizes = [2, 1], strides = [1, 1]} : vector<2x8xf32> to vector<2x1xf32>
      %603 = vector.extract_strided_slice %535 {offsets = [0, 0], sizes = [2, 128], strides = [1, 1]} : vector<2x1024xf32> to vector<2x128xf32>
      %604 = vector.broadcast %602 : vector<2x1xf32> to vector<2x128xf32>
      %605 = arith.mulf %604, %603 : vector<2x128xf32>
      %606 = vector.extract_strided_slice %598 {offsets = [0, 1], sizes = [2, 1], strides = [1, 1]} : vector<2x8xf32> to vector<2x1xf32>
      %607 = vector.extract_strided_slice %535 {offsets = [0, 128], sizes = [2, 128], strides = [1, 1]} : vector<2x1024xf32> to vector<2x128xf32>
      %608 = vector.broadcast %606 : vector<2x1xf32> to vector<2x128xf32>
      %609 = arith.mulf %608, %607 : vector<2x128xf32>
      %610 = vector.extract_strided_slice %598 {offsets = [0, 2], sizes = [2, 1], strides = [1, 1]} : vector<2x8xf32> to vector<2x1xf32>
      %611 = vector.extract_strided_slice %535 {offsets = [0, 256], sizes = [2, 128], strides = [1, 1]} : vector<2x1024xf32> to vector<2x128xf32>
      %612 = vector.broadcast %610 : vector<2x1xf32> to vector<2x128xf32>
      %613 = arith.mulf %612, %611 : vector<2x128xf32>
      %614 = vector.extract_strided_slice %598 {offsets = [0, 3], sizes = [2, 1], strides = [1, 1]} : vector<2x8xf32> to vector<2x1xf32>
      %615 = vector.extract_strided_slice %535 {offsets = [0, 384], sizes = [2, 128], strides = [1, 1]} : vector<2x1024xf32> to vector<2x128xf32>
      %616 = vector.broadcast %614 : vector<2x1xf32> to vector<2x128xf32>
      %617 = arith.mulf %616, %615 : vector<2x128xf32>
      %618 = vector.extract_strided_slice %598 {offsets = [0, 4], sizes = [2, 1], strides = [1, 1]} : vector<2x8xf32> to vector<2x1xf32>
      %619 = vector.extract_strided_slice %535 {offsets = [0, 512], sizes = [2, 128], strides = [1, 1]} : vector<2x1024xf32> to vector<2x128xf32>
      %620 = vector.broadcast %618 : vector<2x1xf32> to vector<2x128xf32>
      %621 = arith.mulf %620, %619 : vector<2x128xf32>
      %622 = vector.extract_strided_slice %598 {offsets = [0, 5], sizes = [2, 1], strides = [1, 1]} : vector<2x8xf32> to vector<2x1xf32>
      %623 = vector.extract_strided_slice %535 {offsets = [0, 640], sizes = [2, 128], strides = [1, 1]} : vector<2x1024xf32> to vector<2x128xf32>
      %624 = vector.broadcast %622 : vector<2x1xf32> to vector<2x128xf32>
      %625 = arith.mulf %624, %623 : vector<2x128xf32>
      %626 = vector.extract_strided_slice %598 {offsets = [0, 6], sizes = [2, 1], strides = [1, 1]} : vector<2x8xf32> to vector<2x1xf32>
      %627 = vector.extract_strided_slice %535 {offsets = [0, 768], sizes = [2, 128], strides = [1, 1]} : vector<2x1024xf32> to vector<2x128xf32>
      %628 = vector.broadcast %626 : vector<2x1xf32> to vector<2x128xf32>
      %629 = arith.mulf %628, %627 : vector<2x128xf32>
      %630 = vector.extract_strided_slice %598 {offsets = [0, 7], sizes = [2, 1], strides = [1, 1]} : vector<2x8xf32> to vector<2x1xf32>
      %631 = vector.extract_strided_slice %535 {offsets = [0, 896], sizes = [2, 128], strides = [1, 1]} : vector<2x1024xf32> to vector<2x128xf32>
      %632 = vector.broadcast %630 : vector<2x1xf32> to vector<2x128xf32>
      %633 = arith.mulf %632, %631 : vector<2x128xf32>
      %634 = arith.addf %605, %609 : vector<2x128xf32>
      %635 = arith.addf %613, %617 : vector<2x128xf32>
      %636 = arith.addf %621, %625 : vector<2x128xf32>
      %637 = arith.addf %629, %633 : vector<2x128xf32>
      %638 = arith.addf %634, %635 : vector<2x128xf32>
      %639 = arith.addf %636, %637 : vector<2x128xf32>
      %640 = arith.addf %638, %639 : vector<2x128xf32>
      %641 = vector.broadcast %601 : vector<2x1xf32> to vector<2x128xf32>
      %642 = arith.mulf %640, %641 : vector<2x128xf32>
      %643 = arith.addf %583, %642 : vector<2x128xf32>
      %c0_105 = arith.constant 0 : index
      %c0_106 = arith.constant 0 : index
      %644 = vector.load %arg12[%c0_105, %c0_106] : memref<1x128xf32, #tpu.memory_space<vmem>>, vector<1x128xf32>
      %645 = vector.broadcast %644 : vector<1x128xf32> to vector<2x128xf32>
      %646 = arith.addf %643, %645 : vector<2x128xf32>
      %647 = vector.extract_strided_slice %646 {offsets = [0, 0], sizes = [2, 96], strides = [1, 1]} : vector<2x128xf32> to vector<2x96xf32>
      %648 = arith.negf %647 : vector<2x96xf32>
      %649 = math.exp %648 : vector<2x96xf32>
      %cst_107 = arith.constant 1.000000e+00 : f32
      %650 = vector.broadcast %cst_107 : f32 to vector<2x96xf32>
      %651 = arith.addf %650, %649 : vector<2x96xf32>
      %652 = arith.divf %650, %651 : vector<2x96xf32>
      %653 = vector.extract_strided_slice %646 {offsets = [0, 96], sizes = [2, 32], strides = [1, 1]} : vector<2x128xf32> to vector<2x32xf32>
      %654 = math.tanh %653 : vector<2x32xf32>
      %655 = vector.extract_strided_slice %652 {offsets = [0, 0], sizes = [2, 32], strides = [1, 1]} : vector<2x96xf32> to vector<2x32xf32>
      %656 = vector.extract_strided_slice %652 {offsets = [0, 32], sizes = [2, 32], strides = [1, 1]} : vector<2x96xf32> to vector<2x32xf32>
      %657 = vector.extract_strided_slice %652 {offsets = [0, 64], sizes = [2, 32], strides = [1, 1]} : vector<2x96xf32> to vector<2x32xf32>
      %658 = arith.mulf %656, %arg24 : vector<2x32xf32>
      %659 = arith.mulf %655, %654 : vector<2x32xf32>
      %660 = arith.addf %658, %659 : vector<2x32xf32>
      %661 = math.tanh %660 : vector<2x32xf32>
      %662 = arith.mulf %657, %661 : vector<2x32xf32>
      %c0_108 = arith.constant 0 : index
      %c0_109 = arith.constant 0 : index
      %663 = vector.load %arg15[%c0_108, %c0_109] : memref<32x50xf32, #tpu.memory_space<vmem>>, vector<32x50xf32>
      %cst_110 = arith.constant dense<0.000000e+00> : vector<2x50xf32>
      %664 = tpu.matmul %662, %663, %cst_110 {dimension_numbers = #tpu.dot_dimension_numbers<[1], [0], [0], [1], [0, 0, 1, 1], [], []>} : vector<2x32xf32>, vector<32x50xf32>, vector<2x50xf32> -> vector<2x50xf32>
      %c0_111 = arith.constant 0 : index
      %c0_112 = arith.constant 0 : index
      %665 = vector.load %arg16[%c0_111, %c0_112] : memref<1x50xf32, #tpu.memory_space<vmem>>, vector<1x50xf32>
      %666 = vector.broadcast %665 : vector<1x50xf32> to vector<2x50xf32>
      %667 = arith.addf %664, %666 : vector<2x50xf32>
      %cst_113 = arith.constant dense<0xFF800000> : vector<2xf32>
      %668 = vector.multi_reduction <maximumf>, %667, %cst_113 [1] : vector<2x50xf32> to vector<2xf32>
      %669 = vector.shape_cast %668 : vector<2xf32> to vector<2x1xf32>
      %670 = vector.broadcast %669 : vector<2x1xf32> to vector<2x50xf32>
      %671 = arith.subf %667, %670 : vector<2x50xf32>
      %672 = math.exp %671 : vector<2x50xf32>
      %cst_114 = arith.constant dense<0.000000e+00> : vector<2xf32>
      %673 = vector.multi_reduction <add>, %672, %cst_114 [1] : vector<2x50xf32> to vector<2xf32>
      %674 = vector.shape_cast %673 : vector<2xf32> to vector<2x1xf32>
      %675 = math.log %674 : vector<2x1xf32>
      %676 = arith.addf %669, %675 : vector<2x1xf32>
      %677 = arith.subf %669, %676 : vector<2x1xf32>
      %678 = vector.broadcast %669 : vector<2x1xf32> to vector<2x50xf32>
      %679 = arith.cmpf oeq, %667, %678 : vector<2x50xf32>
      %680 = arith.sitofp %555 : vector<2x50xi32> to vector<2x50xf32>
      %cst_115 = arith.constant 5.000000e+01 : f32
      %681 = vector.broadcast %cst_115 : f32 to vector<2x50xf32>
      %682 = arith.select %679, %680, %681 : vector<2x50xi1>, vector<2x50xf32>
      %cst_116 = arith.constant dense<0x7F800000> : vector<2xf32>
      %683 = vector.multi_reduction <minimumf>, %682, %cst_116 [1] : vector<2x50xf32> to vector<2xf32>
      %684 = vector.shape_cast %683 : vector<2xf32> to vector<2x1xf32>
      %685 = arith.fptosi %684 : vector<2x1xf32> to vector<2x1xi32>
      %c49_i32 = arith.constant 49 : i32
      %686 = vector.broadcast %c49_i32 : i32 to vector<2x1xi32>
      %687 = arith.cmpi eq, %685, %686 : vector<2x1xi32>
      %c0_i32_117 = arith.constant 0 : i32
      %688 = vector.broadcast %c0_i32_117 : i32 to vector<2x1xi32>
      %689 = arith.select %687, %688, %685 : vector<2x1xi1>, vector<2x1xi32>
      %c0_i32_118 = arith.constant 0 : i32
      %690 = vector.broadcast %c0_i32_118 : i32 to vector<2x1xi32>
      %691 = arith.cmpi sgt, %689, %690 : vector<2x1xi32>
      %692 = arith.extui %691 : vector<2x1xi1> to vector<2x1xi32>
      %693 = arith.muli %arg25, %692 : vector<2x1xi32>
      %694 = arith.muli %689, %693 : vector<2x1xi32>
      %695 = tpu.iota {dimensions = array<i32: 1>} : vector<2x18xi32>
      %696 = vector.broadcast %arg19 : i32 to vector<2x18xi32>
      %697 = arith.cmpi eq, %695, %696 : vector<2x18xi32>
      %698 = vector.shape_cast %694 : vector<2x1xi32> to vector<2x1xi32>
      %699 = vector.broadcast %698 : vector<2x1xi32> to vector<2x18xi32>
      %700 = arith.select %697, %699, %arg27 : vector<2x18xi1>, vector<2x18xi32>
      %c1_i32_119 = arith.constant 1 : i32
      %701 = arith.cmpi eq, %arg26, %c1_i32_119 : i32
      %cst_120 = arith.constant 0.000000e+00 : f32
      %702 = vector.broadcast %cst_120 : f32 to vector<2x1xf32>
      %703 = arith.select %701, %702, %677 : vector<2x1xf32>
      %704 = vector.shape_cast %703 : vector<2x1xf32> to vector<2x1xf32>
      %705 = vector.broadcast %704 : vector<2x1xf32> to vector<2x18xf32>
      %706 = arith.select %697, %705, %arg28 : vector<2x18xi1>, vector<2x18xf32>
      %707 = arith.sitofp %693 : vector<2x1xi32> to vector<2x1xf32>
      %708 = vector.shape_cast %707 : vector<2x1xf32> to vector<1x2x1xf32>
      %cst_121 = arith.constant dense<0.000000e+00> : vector<1xf32>
      %709 = vector.multi_reduction <add>, %708, %cst_121 [1, 2] : vector<1x2x1xf32> to vector<1xf32>
      %710 = vector.shape_cast %709 : vector<1xf32> to vector<1x1x1xf32>
      %711 = vector.extract %710[0, 0, 0] : f32 from vector<1x1x1xf32>
      %cst_122 = arith.constant 0.000000e+00 : f32
      %712 = arith.cmpf oeq, %711, %cst_122 : f32
      %c1_i32_123 = arith.constant 1 : i32
      %713 = arith.select %712, %c1_i32_123, %arg26 : i32
      scf.yield %694, %579, %577, %662, %660, %693, %713, %700, %706 : vector<2x1xi32>, vector<2x32xf32>, vector<2x32xf32>, vector<2x32xf32>, vector<2x32xf32>, vector<2x1xi32>, i32, vector<2x18xi32>, vector<2x18xf32>
    }
    %c18_i32_85 = arith.constant 18 : i32
    %c0_86 = arith.constant 0 : index
    %c0_87 = arith.constant 0 : index
    %553 = vector.load %arg17[%c0_86, %c0_87] : memref<2x18xi32, #tpu.memory_space<vmem>>, vector<2x18xi32>
    tpu.vector_store %arg17[%c0_86, %c0_87], %552#7 {strides = array<i32>} : memref<2x18xi32, #tpu.memory_space<vmem>>, vector<2x18xi32>,
    %c0_88 = arith.constant 0 : index
    %c0_89 = arith.constant 0 : index
    %554 = vector.load %arg18[%c0_88, %c0_89] : memref<2x18xf32, #tpu.memory_space<vmem>>, vector<2x18xf32>
    tpu.vector_store %arg18[%c0_88, %c0_89], %552#8 {strides = array<i32>} : memref<2x18xf32, #tpu.memory_space<vmem>>, vector<2x18xf32>,
    return
  }
}

</mosaic_0001>

<bundles_post_ra>
// kernel: tpu_custom_call.1
= control target key start
LH: loop header
LB: loop body
LE: loop exit
PB: predicated region body
PF: predicated region fallthrough
CT: control target
= control target key end

     0   :  { %s4958_s0 = inlined_call_operand.vmem [shape: s32[16,1], index: 0, kind: input, shape index: {}]   ;;  %s4959_s1 = inlined_call_operand.vmem [shape: s32[2,1], index: 1, kind: input, shape index: {}]   ;;  %s4960_s2 = inlined_call_operand.vmem [shape: f32[50,128], index: 2, kind: input, shape index: {}]   ;;  %s4961_s3 = inlined_call_operand.vmem [shape: f32[32,128], index: 3, kind: input, shape index: {}]   ;;  %s4962_s4 = inlined_call_operand.vmem [shape: f32[32,32], index: 4, kind: input, shape index: {}]   ;;  %s4963_s5 = inlined_call_operand.vmem [shape: f32[1,32], index: 5, kind: input, shape index: {}]   ;;  %s4964_s6 = inlined_call_operand.vmem [shape: f32[32,128], index: 6, kind: input, shape index: {}]   ;;  %s4965_s7 = inlined_call_operand.vmem [shape: f32[1,128], index: 7, kind: input, shape index: {}]   ;;  %s4966_s8 = inlined_call_operand.vmem [shape: f32[256,1160], index: 8, kind: input, shape index: {}]   ;;  %s4967_s9 = inlined_call_operand.vmem [shape: f32[1,128], index: 9, kind: input, shape index: {}]   ;;  %s4968_s10 = inlined_call_operand.vmem [shape: f32[114,128], index: 10, kind: input, shape index: {}]   ;;  %s4969_s11 = inlined_call_operand.vmem [shape: f32[64,256], index: 11, kind: input, shape index: {}]   ;;  %s4970_s12 = inlined_call_operand.vmem [shape: f32[1,128], index: 12, kind: input, shape index: {}]   ;;  %s4971_s13 = inlined_call_operand.vmem [shape: f32[128,8], index: 13, kind: input, shape index: {}]   ;;  %s4972_s14 = inlined_call_operand.<no memory space> [shape: f32[1,1], index: 14, kind: input, shape index: {}]   ;;  %s4973_s15 = inlined_call_operand.vmem [shape: f32[32,50], index: 15, kind: input, shape index: {}]   ;;  %s4974_s16 = inlined_call_operand.vmem [shape: f32[1,50], index: 16, kind: input, shape index: {}]   ;;  %s4975_s17 = inlined_call_operand.hbm [shape: s32[2,18], index: 17, kind: output, shape index: {0}]   ;;  %s4976_s18 = inlined_call_operand.hbm [shape: f32[2,18], index: 18, kind: output, shape index: {1}]  }
   0x1   :  { %4982 = sst [smem:[#allocation9_spill]] %s4958_s0  ;;  %v24_v0 = vstv %s4972_s14 }
   0x2   :  { %4983 = sst [smem:[#allocation10_spill]] %s4959_s1  ;;  %25 = vst [vmem:[#allocation2] sm:$0x1] %v24_v0 }
   0x3   :  { %4984 = sst [smem:[#allocation11_spill]] %s4960_s2 }
   0x4   :  { %26 = vsyncpa [#allocation4], 0  ;;  %s4985_s0 = sld [smem:[#allocation9_spill]] }
   0xa   :  { %v63_v1 = vld [vmem:[%s4985_s0] sm:$0xff] }
   0xb   :  { %27 = vsyncpa [#allocation6], 0  ;;  %vm4979_vm0 = vcmask 1041408   ;;  %v2916_v2 = vmov 0   ;;  %s4986_s20 = sld [smem:[#allocation11_spill]]  ;;  %v3052_v5 = vld [vmem:[%s4961_s3 + $0x18] sm:$0xff]  ;;  %v65_v16 = vlaneseq }
   0xc   :  { %2580 = vset.pattern.permute.xlu0 %v2916_v2  ;;  %2581 = vset.pattern.permute.xlu2 %v2916_v2  ;;  %v3061_v7 = vld [vmem:[%s4961_s3 + $0x10] sm:$0xff]  ;;  %v3066_v8 = vld [vmem:[%s4961_s3 + $0x8] sm:$0xff]  ;;  %v3095_v14 = vld [vmem:[%s4961_s3] sm:$0xff]  ;;  %v2917_v15 = vmov 0.0   ;;  %vm86_vm1 = vcmask 408576   ;;  %s2918_s3 = smov 80  }
   0xd   :  { %68 = vperm.xlu0 %2580, %v63_v1   ;;  %140 = vmatpush.msra.mxu1 %v3052_v5  ;;  %v64_v10 = vld [vmem:[%s4985_s0 + $0x8] sm:$0xff]  ;;  %v3116_v17 = vand.u32 127, %v65_v16  ;;  %s4987_s28 = sld [smem:[#allocation10_spill]]  ;;  %s2920_s29 = smov 96  }
   0xe   :  { %268 = vmatpush.msra.mxu2 %v3052_v5  ;;  %2582 = vset.pattern.permute.xlu1 %v2916_v2  ;;  %s2921_s30 = smov 48   ;;  %s2922_s19 = smov 32  }
   0xf   :  { %141 = vmatpush.msra.mxu1 %v3061_v7  ;;  %399 = vmatpush.msra.mxu3 %v3052_v5 }
  0x10   :  { %269 = vmatpush.msra.mxu2 %v3061_v7 }
  0x11   :  { %v85_v3 = vld [vmem:[%s4986_s20 + $0x30] sm:$0x3]  ;;  %v84_v4 = vld [vmem:[%s4986_s20 + $0x28] sm:$0xff]  ;;  %v83_v6 = vld [vmem:[%s4986_s20 + $0x20] sm:$0xff]  ;;  %142 = vmatpush.msra.mxu1 %v3066_v8  ;;  %400 = vmatpush.msra.mxu3 %v3061_v7 }
  0x12   :  { %2434 = vmatpush.msk.msra.mxu0 %vm4979_vm0, %v85_v3  ;;  %v82_v9 = vld [vmem:[%s4986_s20 + $0x18] sm:$0xff]  ;;  %v81_v11 = vld [vmem:[%s4986_s20 + $0x10] sm:$0xff]  ;;  %270 = vmatpush.msra.mxu2 %v3066_v8  ;;  %v80_v12 = vld [vmem:[%s4986_s20 + $0x8] sm:$0xff] }
  0x13   :  { %401 = vmatpush.msra.mxu3 %v3066_v8  ;;  %v79_v13 = vld [vmem:[%s4986_s20] sm:$0xff]  ;;  %143 = vmatpush.msra.mxu1 %v3095_v14  ;;  %s2919_s20 = smov 16  }
  0x14   :  { %107 = vmatpush.msra.mxu0 %v84_v4  ;;  %144 = vmatmul.f32.vlgmr.msra.gmra.mxu1 %v2917_v15  ;;  %v3134_v60 = vld [vmem:[%s4987_s28] sm:$0x3] }
  0x15   :  { %71 = vperm.xlu0 %2580, %v64_v10   ;;  %271 = vmatpush.msra.mxu2 %v3095_v14  ;;  %vm227_vm12 = vcmp.gt.s32.totalorder %v3134_v60, 0  ;;  %vm228_vm13 = vcmp.gt.s32.totalorder %v3134_v60, 7 }
  0x16   :  { %108 = vmatpush.msra.mxu0 %v83_v6  ;;  %402 = vmatpush.msra.mxu3 %v3095_v14  ;;  %v229_v61 = vsel %vm227_vm12, 1, %v2916_v2  ;;  %vm358_vm12 = vcmp.gt.s32.totalorder %v3134_v60, 6 }
  0x17   :  { %529 = vmatpush.msrb.mxu1 %v3052_v5  ;;  %657 = vmatpush.msrb.mxu2 %v3052_v5 }
  0x18   :  { %109 = vmatpush.msra.mxu0 %v82_v9  ;;  %771 = vmatpush.msrb.mxu3 %v3052_v5  ;;  %v236_v9 = vsel %vm228_vm13, 1, %v2916_v2 }
  0x19   :  { %530 = vmatpush.msrb.mxu1 %v3061_v7  ;;  %658 = vmatpush.msrb.mxu2 %v3061_v7 }
  0x1a   :  { %110 = vmatpush.msra.mxu0 %v81_v11  ;;  %772 = vmatpush.msrb.mxu3 %v3061_v7 }
  0x1b   :  { %531 = vmatpush.msrb.mxu1 %v3066_v8  ;;  %659 = vmatpush.msrb.mxu2 %v3066_v8 }
  0x1c   :  { %111 = vmatpush.msra.mxu0 %v80_v12  ;;  %773 = vmatpush.msrb.mxu3 %v3066_v8 }
  0x1d   :  { %532 = vmatpush.msrb.mxu1 %v3095_v14  ;;  %660 = vmatpush.msrb.mxu2 %v3095_v14 }
  0x1e   :  { %112 = vmatpush.msra.mxu0 %v79_v13  ;;  %774 = vmatpush.msrb.mxu3 %v3095_v14 }
  0x1f   :  { %885 = vmatpush.msra.mxu1 %v3052_v5 }
  0x21   :  { %886 = vmatpush.msra.mxu1 %v3061_v7 }
  0x23   :  { %887 = vmatpush.msra.mxu1 %v3066_v8 }
  0x25   :  { %888 = vmatpush.msra.mxu1 %v3095_v14 }
  0x7f   :  { %v69_v18 = vpop.permute.xlu0 %68 }
  0x80   :  { %vm73_vm2 = vcmp.eq.s32.totalorder %v3116_v17, %v69_v18 }
  0x81   :  { %v2432_v19 = vsel %vm73_vm2, 1.0, %v2917_v15  ;;  %vm124_vm2 = vcmask 261120  }
  0x82   :  { %2435 = vmatmul.msk.f32.vlgmr.msra.gmra.mxu0 %vm86_vm1, %v2432_v19 }
  0x87   :  { %v72_v20 = vpop.permute.xlu0 %71 }
  0x88   :  { %vm74_vm3 = vcmp.eq.s32.totalorder %v3116_v17, %v72_v20 }
  0x89   :  { %v2433_v21 = vsel %vm74_vm3, 1.0, %v2917_v15 }
  0x8a   :  { %2436 = vmatmul.msk.f32.gmra.mxu0 %vm86_vm1, %v2433_v21  ;;  %vm251_vm1 = vcmask 130048  }
  0x91   :  { %v145_v22 = vpop.f32.mrf.mxu1 }
  0xff   :  { %v3120_v23 = vpop.f32.mrf.mxu0 }
 0x100   :  { %v148_v24 = vadd.f32 %v145_v22, %v3120_v23 }
 0x102   :  { %2616 = vtanh.f32 %v148_v24  ;;  %v2437_v30 = vmul.f32 -1.442695, %v148_v24 }
 0x107   :  { %v3123_v25 = vpop.f32.mrf.mxu0 }
 0x108   :  { %v2617_v26 = vpop.eup %2616  ;;  %v150_v27 = vrot.slane %v3123_v25, 6 }
 0x109   :  { %175 = vrot.lane.b32.xlu1 %v2617_v26, %s2918_s3  ;;  %v277_v26 = vrot.slane %v3120_v23, 2 }
 0x10a   :  { %v152_v28 = vadd.f32 %v150_v27, %v145_v22 }
 0x10c   :  { %2618 = vtanh.f32 %v152_v28  ;;  %v2438_v32 = vmul.f32 -1.442695, %v152_v28  ;;  %v280_v28 = vrot.slane %v3123_v25, 4 }
 0x10d   :  { %2620 = vpow2.f32 %v2437_v30 }
 0x10e   :  { %2622 = vpow2.f32 %v2438_v32 }
 0x112   :  { %v2619_v29 = vpop.eup %2618 }
 0x113   :  { %212 = vrot.lane.b32.xlu1 %v2619_v29, %s2918_s3  ;;  %v2621_v31 = vpop.eup %2620 }
 0x114   :  { %v156_v33 = vadd.f32 1.0, %v2621_v31  ;;  %v2623_v34 = vpop.eup %2622 }
 0x115   :  { %v193_v36 = vadd.f32 1.0, %v2623_v34 }
 0x116   :  { %2624 = vrcp.f32 %v156_v33  ;;  %v168_v43 = vand.u32 2147483648, %v156_v33  ;;  %vm162_vm5 = vweird.f32 %v156_v33  ;;  %v166_v44 = vand.u32 2147483647, %v156_v33 }
 0x117   :  { %2626 = vrcp.f32 %v193_v36  ;;  %v205_v53 = vand.u32 2147483648, %v193_v36  ;;  %vm199_vm9 = vweird.f32 %v193_v36  ;;  %v203_v54 = vand.u32 2147483647, %v193_v36 }
 0x118   :  { %v169_v47 = vor.u32 1.1754944e-38, %v168_v43  ;;  %vm167_vm7 = vcmp.eq.f32.partialorder %v166_v44, 8.507059e+37 }
 0x119   :  { %v206_v56 = vor.u32 1.1754944e-38, %v205_v53  ;;  %vm204_vm11 = vcmp.eq.f32.partialorder %v203_v54, 8.507059e+37 }
 0x11c   :  { %v2625_v35 = vpop.eup %2624 }
 0x11d   :  { %v158_v37 = vmul.f32 %v2625_v35, %v156_v33  ;;  %v2627_v39 = vpop.eup %2626  ;;  %vm163_vm4 = vweird.f32 %v2625_v35 }
 0x11e   :  { %v195_v41 = vmul.f32 %v2627_v39, %v193_v36  ;;  %vm164_vm6 = vmor %vm162_vm5, %vm163_vm4  ;;  %vm200_vm8 = vweird.f32 %v2627_v39 }
 0x11f   :  { %v159_v38 = vsub.f32 1.0, %v158_v37  ;;  %vm201_vm10 = vmor %vm199_vm9, %vm200_vm8 }
 0x120   :  { %v196_v45 = vsub.f32 1.0, %v195_v41 }
 0x121   :  { %v160_v40 = vmul.f32 %v2625_v35, %v159_v38 }
 0x122   :  { %v197_v48 = vmul.f32 %v2627_v39, %v196_v45 }
 0x123   :  { %v161_v42 = vadd.f32 %v2625_v35, %v160_v40 }
 0x124   :  { %v198_v52 = vadd.f32 %v2627_v39, %v197_v48 }
 0x125   :  { %v165_v46 = vsel %vm164_vm6, %v2625_v35, %v161_v42 }
 0x126   :  { %v170_v50 = vsel %vm167_vm7, %v169_v47, %v165_v46  ;;  %v202_v55 = vsel %vm201_vm10, %v2627_v39, %v198_v52 }
 0x127   :  { %v207_v58 = vsel %vm204_vm11, %v206_v56, %v202_v55  ;;  %v173_v62 = vmul.f32 0.0, %v170_v50  ;;  %vm357_vm11 = vcmp.gt.s32.totalorder %v3134_v60, 1 }
 0x128   :  { %v210_v3 = vmul.f32 0.0, %v207_v58 }
 0x17b   :  { %v176_v49 = vpop.permute.xlu1 %175 }
 0x17c   :  { %v178_v51 = vmul.f32 %v176_v49, %v170_v50 }
 0x17e   :  { %180 = vrot.lane.b32.xlu2 %v178_v51, %s2919_s20 }
 0x185   :  { %v213_v57 = vpop.permute.xlu1 %212 }
 0x186   :  { %v215_v59 = vmul.f32 %v213_v57, %v207_v58 }
 0x188   :  { %217 = vrot.lane.b32.xlu2 %v215_v59, %s2919_s20 }
 0x190   :  { %231 = vperm.xlu2 %2581, %v229_v61   ;;  %v359_v61 = vsel %vm357_vm11, 1, %v2916_v2 }
 0x1d8   :  { %v181_v63 = vpop.permute.xlu2 %180 }
 0x1d9   :  { %v3139_v0 = vadd.f32 %v181_v63, %v173_v62 }
 0x1db   :  { %2628 = vtanh.f32 %v3139_v0 }
 0x1e1   :  { %v2629_v1 = vpop.eup %2628 }
 0x1e2   :  { %186 = vrot.lane.b32.xlu0 %v2629_v1, %s2919_s20  ;;  %v218_v4 = vpop.permute.xlu2 %217 }
 0x1e3   :  { %v3143_v6 = vadd.f32 %v218_v4, %v210_v3 }
 0x1e5   :  { %2630 = vtanh.f32 %v3143_v6 }
 0x1ea   :  { %238 = vperm.xlu0 %2580, %v236_v9   ;;  %v3149_v11 = vpop.permute.xlu2 %231  ;;  %v366_v9 = vsel %vm358_vm12, 1, %v2916_v2 }
 0x1eb   :  { %v2631_v10 = vpop.eup %2630  ;;  %vm4980_vm14 = vcmp.eq.s32.totalorder %v3149_v11, 1 }
 0x1ec   :  { %223 = vrot.lane.b32.xlu1 %v2631_v10, %s2919_s20  ;;  %v3191_v62 = vsel %vm4980_vm14, %v3139_v0, 0.0 }
 0x254   :  { %v187_v12 = vpop.permute.xlu0 %186 }
 0x255   :  { %v189_v13 = vmul.f32 %v187_v12, %v170_v50 }
 0x257   :  { %v3154_v15 = vsel %vm4980_vm14, %v189_v13, 0.0 }
 0x258   :  { %244 = vrot.lane.b32.xlu1 %v3154_v15, %s2920_s29 }
 0x25c   :  { %v3158_v16 = vpop.permute.xlu0 %238 }
 0x25d   :  { %vm4981_vm15 = vcmp.eq.s32.totalorder %v3158_v16, 1 }
 0x25e   :  { %v224_v18 = vpop.permute.xlu1 %223  ;;  %v3203_v0 = vsel %vm4981_vm15, %v3143_v6, 0.0 }
 0x25f   :  { %v226_v19 = vmul.f32 %v224_v18, %v207_v58 }
 0x261   :  { %v3163_v20 = vsel %vm4981_vm15, %v226_v19, 0.0 }
 0x262   :  { %248 = vrot.lane.b32.xlu2 %v3163_v20, %s2921_s30 }
 0x2bc   :  { %v249_v21 = vpop.permute.xlu2 %248 }
 0x2ca   :  { %v3167_v22 = vpop.permute.xlu1 %244 }
 0x2cb   :  { %v252_v24 = vsel %vm251_vm1, %v3167_v22, %v249_v21 }
 0x2cc   :  { %2439 = vmatmul.msk.f32.vlgmr.msra.gmra.mxu2 %vm124_vm2, %v252_v24 }
 0x2cd   :  { %999 = vmatpush.msra.mxu2 %v3052_v5 }
 0x2cf   :  { %1000 = vmatpush.msra.mxu2 %v3061_v7 }
 0x2d1   :  { %1001 = vmatpush.msra.mxu2 %v3066_v8 }
 0x2d3   :  { %1002 = vmatpush.msra.mxu2 %v3095_v14 }
 0x34f   :  { %v273_v29 = vpop.f32.mrf.mxu2 }
 0x350   :  { %v279_v30 = vadd.f32 %v277_v26, %v273_v29  ;;  %v282_v31 = vadd.f32 %v280_v28, %v273_v29 }
 0x352   :  { %2632 = vtanh.f32 %v279_v30  ;;  %v2440_v7 = vmul.f32 -1.442695, %v279_v30  ;;  %v2441_v8 = vmul.f32 -1.442695, %v282_v31 }
 0x353   :  { %2634 = vtanh.f32 %v282_v31 }
 0x354   :  { %2636 = vpow2.f32 %v2440_v7 }
 0x355   :  { %2638 = vpow2.f32 %v2441_v8  ;;  %v407_v8 = vrot.slane %v3120_v23, 4 }
 0x358   :  { %v2633_v5 = vpop.eup %2632 }
 0x359   :  { %v2635_v32 = vpop.eup %2634  ;;  %305 = vrot.lane.b32.xlu0 %v2633_v5, %s2918_s3 }
 0x35a   :  { %342 = vrot.lane.b32.xlu1 %v2635_v32, %s2918_s3  ;;  %v2637_v14 = vpop.eup %2636 }
 0x35b   :  { %v2639_v33 = vpop.eup %2638  ;;  %v286_v34 = vadd.f32 1.0, %v2637_v14  ;;  %v410_v14 = vrot.slane %v3123_v25, 2 }
 0x35c   :  { %v323_v35 = vadd.f32 1.0, %v2639_v33 }
 0x35d   :  { %2640 = vrcp.f32 %v286_v34  ;;  %v298_v46 = vand.u32 2147483648, %v286_v34  ;;  %vm292_vm5 = vweird.f32 %v286_v34  ;;  %v296_v48 = vand.u32 2147483647, %v286_v34 }
 0x35e   :  { %2642 = vrcp.f32 %v323_v35  ;;  %v335_v47 = vand.u32 2147483648, %v323_v35  ;;  %vm329_vm6 = vweird.f32 %v323_v35  ;;  %v333_v49 = vand.u32 2147483647, %v323_v35 }
 0x35f   :  { %v299_v52 = vor.u32 1.1754944e-38, %v298_v46  ;;  %vm297_vm9 = vcmp.eq.f32.partialorder %v296_v48, 8.507059e+37 }
 0x360   :  { %v336_v53 = vor.u32 1.1754944e-38, %v335_v47  ;;  %vm334_vm10 = vcmp.eq.f32.partialorder %v333_v49, 8.507059e+37 }
 0x363   :  { %v2641_v36 = vpop.eup %2640 }
 0x364   :  { %v2643_v37 = vpop.eup %2642  ;;  %v288_v38 = vmul.f32 %v2641_v36, %v286_v34  ;;  %vm293_vm3 = vweird.f32 %v2641_v36 }
 0x365   :  { %v325_v39 = vmul.f32 %v2643_v37, %v323_v35  ;;  %vm330_vm4 = vweird.f32 %v2643_v37  ;;  %vm294_vm7 = vmor %vm292_vm5, %vm293_vm3 }
 0x366   :  { %v289_v40 = vsub.f32 1.0, %v288_v38  ;;  %vm331_vm8 = vmor %vm329_vm6, %vm330_vm4 }
 0x367   :  { %v326_v41 = vsub.f32 1.0, %v325_v39 }
 0x368   :  { %v290_v42 = vmul.f32 %v2641_v36, %v289_v40 }
 0x369   :  { %v327_v43 = vmul.f32 %v2643_v37, %v326_v41 }
 0x36a   :  { %v291_v44 = vadd.f32 %v2641_v36, %v290_v42 }
 0x36b   :  { %v328_v45 = vadd.f32 %v2643_v37, %v327_v43 }
 0x36c   :  { %v295_v50 = vsel %vm294_vm7, %v2641_v36, %v291_v44 }
 0x36d   :  { %v332_v51 = vsel %vm331_vm8, %v2643_v37, %v328_v45  ;;  %v300_v55 = vsel %vm297_vm9, %v299_v52, %v295_v50  ;;  %vm487_vm8 = vcmp.gt.s32.totalorder %v3134_v60, 2 }
 0x36e   :  { %v337_v57 = vsel %vm334_vm10, %v336_v53, %v332_v51  ;;  %v303_v63 = vmul.f32 %v300_v55, %v3191_v62 }
 0x36f   :  { %v340_v10 = vmul.f32 %v337_v57, %v3203_v0 }
 0x3cb   :  { %v306_v54 = vpop.permute.xlu0 %305 }
 0x3cc   :  { %v343_v56 = vpop.permute.xlu1 %342  ;;  %v308_v58 = vmul.f32 %v306_v54, %v300_v55 }
 0x3cd   :  { %v345_v59 = vmul.f32 %v343_v56, %v337_v57 }
 0x3ce   :  { %310 = vrot.lane.b32.xlu2 %v308_v58, %s2919_s20  ;;  %v489_v58 = vsel %vm487_vm8, 1, %v2916_v2 }
 0x3cf   :  { %347 = vrot.lane.b32.xlu0 %v345_v59, %s2919_s20 }
 0x3d7   :  { %361 = vperm.xlu0 %2580, %v359_v61  }
 0x428   :  { %v311_v1 = vpop.permute.xlu2 %310 }
 0x429   :  { %v3194_v3 = vadd.f32 %v311_v1, %v303_v63 }
 0x42b   :  { %2644 = vtanh.f32 %v3194_v3 }
 0x431   :  { %v2645_v4 = vpop.eup %2644 }
 0x432   :  { %316 = vrot.lane.b32.xlu1 %v2645_v4, %s2919_s20 }
 0x43a   :  { %368 = vperm.xlu1 %2582, %v366_v9  }
 0x441   :  { %v348_v12 = vpop.permute.xlu0 %347 }
 0x442   :  { %v3206_v13 = vadd.f32 %v348_v12, %v340_v10 }
 0x444   :  { %2646 = vtanh.f32 %v3206_v13 }
 0x449   :  { %v3210_v19 = vpop.permute.xlu0 %361 }
 0x44a   :  { %v2647_v18 = vpop.eup %2646  ;;  %vm363_vm13 = vcmp.eq.s32.totalorder %v3210_v19, 1 }
 0x44b   :  { %353 = vrot.lane.b32.xlu2 %v2647_v18, %s2919_s20 }
 0x4a4   :  { %v317_v21 = vpop.permute.xlu1 %316 }
 0x4a5   :  { %v3212_v24 = vmul.f32 %v317_v21, %v300_v55  ;;  %v354_v29 = vpop.permute.xlu2 %353 }
 0x4a6   :  { %v3223_v30 = vmul.f32 %v354_v29, %v337_v57 }
 0x4a7   :  { %v3219_v6 = vsel %vm363_vm13, %v3212_v24, %v3154_v15 }
 0x4a8   :  { %376 = vrot.lane.b32.xlu2 %v3219_v6, %s2920_s29 }
 0x4ac   :  { %v3225_v31 = vpop.permute.xlu1 %368 }
 0x4ad   :  { %vm370_vm3 = vcmp.eq.s32.totalorder %v3225_v31, 1 }
 0x4ae   :  { %v3232_v5 = vsel %vm370_vm3, %v3223_v30, %v3163_v20  ;;  %v3254_v29 = vsel %vm370_vm3, %v3206_v13, %v3203_v0 }
 0x4af   :  { %380 = vrot.lane.b32.xlu0 %v3232_v5, %s2921_s30 }
 0x502   :  { %v377_v15 = vpop.permute.xlu2 %376 }
 0x521   :  { %v381_v32 = vpop.permute.xlu0 %380 }
 0x522   :  { %v383_v7 = vsel %vm251_vm1, %v377_v15, %v381_v32 }
 0x523   :  { %2442 = vmatmul.msk.f32.vlgmr.msra.gmra.mxu3 %vm124_vm2, %v383_v7 }
 0x5a6   :  { %v404_v33 = vpop.f32.mrf.mxu3 }
 0x5a7   :  { %v409_v34 = vadd.f32 %v407_v8, %v404_v33  ;;  %v412_v35 = vadd.f32 %v410_v14, %v404_v33 }
 0x5a9   :  { %2648 = vtanh.f32 %v409_v34  ;;  %v2444_v38 = vmul.f32 -1.442695, %v412_v35  ;;  %v2443_v42 = vmul.f32 -1.442695, %v409_v34  ;;  %v3265_v34 = vsel %vm363_vm13, %v3194_v3, %v3191_v62 }
 0x5aa   :  { %2650 = vtanh.f32 %v412_v35 }
 0x5ab   :  { %2652 = vpow2.f32 %v2444_v38 }
 0x5af   :  { %v2649_v36 = vpop.eup %2648 }
 0x5b0   :  { %v2651_v37 = vpop.eup %2650  ;;  %435 = vrot.lane.b32.xlu1 %v2649_v36, %s2918_s3 }
 0x5b1   :  { %472 = vrot.lane.b32.xlu2 %v2651_v37, %s2918_s3  ;;  %v2653_v39 = vpop.eup %2652 }
 0x5b2   :  { %v453_v40 = vadd.f32 1.0, %v2653_v39 }
 0x5b4   :  { %2654 = vrcp.f32 %v453_v40  ;;  %v465_v49 = vand.u32 2147483648, %v453_v40  ;;  %vm459_vm5 = vweird.f32 %v453_v40  ;;  %v463_v50 = vand.u32 2147483647, %v453_v40 }
 0x5b5   :  { %2656 = vpow2.f32 %v2443_v42 }
 0x5b6   :  { %v466_v52 = vor.u32 1.1754944e-38, %v465_v49  ;;  %vm464_vm7 = vcmp.eq.f32.partialorder %v463_v50, 8.507059e+37 }
 0x5ba   :  { %v2655_v41 = vpop.eup %2654 }
 0x5bb   :  { %v455_v43 = vmul.f32 %v2655_v41, %v453_v40  ;;  %v2657_v45 = vpop.eup %2656  ;;  %vm460_vm4 = vweird.f32 %v2655_v41 }
 0x5bc   :  { %v416_v47 = vadd.f32 1.0, %v2657_v45  ;;  %vm461_vm6 = vmor %vm459_vm5, %vm460_vm4  ;;  %vm488_vm4 = vcmp.gt.s32.totalorder %v3134_v60, 5 }
 0x5bd   :  { %v456_v44 = vsub.f32 1.0, %v455_v43  ;;  %v496_v37 = vsel %vm488_vm4, 1, %v2916_v2 }
 0x5be   :  { %2658 = vrcp.f32 %v416_v47  ;;  %v428_v1 = vand.u32 2147483648, %v416_v47  ;;  %vm422_vm10 = vweird.f32 %v416_v47  ;;  %v426_v4 = vand.u32 2147483647, %v416_v47 }
 0x5bf   :  { %v457_v46 = vmul.f32 %v2655_v41, %v456_v44 }
 0x5c0   :  { %v429_v10 = vor.u32 1.1754944e-38, %v428_v1  ;;  %vm427_vm12 = vcmp.eq.f32.partialorder %v426_v4, 8.507059e+37 }
 0x5c1   :  { %v458_v48 = vadd.f32 %v2655_v41, %v457_v46  ;;  %v537_v46 = vrot.slane %v3120_v23, 6 }
 0x5c3   :  { %v462_v51 = vsel %vm461_vm6, %v2655_v41, %v458_v48 }
 0x5c4   :  { %v467_v54 = vsel %vm464_vm7, %v466_v52, %v462_v51  ;;  %v2659_v55 = vpop.eup %2658 }
 0x5c5   :  { %v418_v57 = vmul.f32 %v2659_v55, %v416_v47  ;;  %vm423_vm9 = vweird.f32 %v2659_v55  ;;  %v470_v15 = vmul.f32 %v467_v54, %v3254_v29 }
 0x5c6   :  { %vm424_vm11 = vmor %vm422_vm10, %vm423_vm9 }
 0x5c7   :  { %v419_v59 = vsub.f32 1.0, %v418_v57 }
 0x5c9   :  { %v420_v61 = vmul.f32 %v2659_v55, %v419_v59 }
 0x5cb   :  { %v421_v63 = vadd.f32 %v2659_v55, %v420_v61 }
 0x5cd   :  { %v425_v9 = vsel %vm424_vm11, %v2659_v55, %v421_v63 }
 0x5ce   :  { %v430_v18 = vsel %vm427_vm12, %v429_v10, %v425_v9 }
 0x5cf   :  { %v433_v35 = vmul.f32 %v430_v18, %v3265_v34 }
 0x60b   :  { %v473_v53 = vpop.permute.xlu2 %472 }
 0x60c   :  { %v475_v56 = vmul.f32 %v473_v53, %v467_v54 }
 0x60e   :  { %477 = vrot.lane.b32.xlu1 %v475_v56, %s2919_s20 }
 0x616   :  { %491 = vperm.xlu1 %2582, %v489_v58  }
 0x622   :  { %v436_v12 = vpop.permute.xlu1 %435 }
 0x623   :  { %v438_v21 = vmul.f32 %v436_v12, %v430_v18 }
 0x625   :  { %440 = vrot.lane.b32.xlu0 %v438_v21, %s2919_s20 }
 0x680   :  { %v478_v32 = vpop.permute.xlu1 %477 }
 0x681   :  { %v3257_v7 = vadd.f32 %v478_v32, %v470_v15 }
 0x683   :  { %2660 = vtanh.f32 %v3257_v7 }
 0x688   :  { %v3274_v38 = vpop.permute.xlu1 %491 }
 0x689   :  { %v2661_v33 = vpop.eup %2660  ;;  %vm493_vm5 = vcmp.eq.s32.totalorder %v3274_v38, 1 }
 0x68a   :  { %483 = vrot.lane.b32.xlu0 %v2661_v33, %s2919_s20 }
 0x697   :  { %v441_v0 = vpop.permute.xlu0 %440 }
 0x698   :  { %v3268_v13 = vadd.f32 %v441_v0, %v433_v35 }
 0x69a   :  { %2662 = vtanh.f32 %v3268_v13 }
 0x6a0   :  { %v2663_v36 = vpop.eup %2662 }
 0x6a1   :  { %446 = vrot.lane.b32.xlu2 %v2663_v36, %s2919_s20 }
 0x6a9   :  { %498 = vperm.xlu2 %2581, %v496_v37  }
 0x6fb   :  { %v447_v39 = vpop.permute.xlu2 %446 }
 0x6fc   :  { %v3276_v62 = vmul.f32 %v447_v39, %v430_v18  ;;  %v484_v40 = vpop.permute.xlu0 %483 }
 0x6fd   :  { %v3287_v41 = vmul.f32 %v484_v40, %v467_v54 }
 0x6fe   :  { %v3283_v3 = vsel %vm493_vm5, %v3276_v62, %v3219_v6 }
 0x6ff   :  { %506 = vrot.lane.b32.xlu0 %v3283_v3, %s2920_s29 }
 0x703   :  { %v3289_v42 = vpop.permute.xlu2 %498 }
 0x704   :  { %vm500_vm6 = vcmp.eq.s32.totalorder %v3289_v42, 1  ;;  %v1322_v42 = vld [vmem:[%s4966_s8 + $0x2e8] sm:$0xff] }
 0x705   :  { %v3296_v43 = vsel %vm500_vm6, %v3287_v41, %v3232_v5 }
 0x706   :  { %510 = vrot.lane.b32.xlu1 %v3296_v43, %s2921_s30 }
 0x771   :  { %v507_v6 = vpop.permute.xlu0 %506 }
 0x778   :  { %v511_v44 = vpop.permute.xlu1 %510 }
 0x779   :  { %v513_v45 = vsel %vm251_vm1, %v507_v6, %v511_v44 }
 0x77a   :  { %2445 = vmatmul.msk.f32.vlgmr.msrb.gmra.mxu1 %vm124_vm2, %v513_v45 }
 0x7f7   :  { %v534_v47 = vpop.f32.mrf.mxu1 }
 0x7f8   :  { %v539_v48 = vadd.f32 %v537_v46, %v534_v47  ;;  %v540_v49 = vadd.f32 %v534_v47, %v3123_v25 }
 0x7fa   :  { %2664 = vtanh.f32 %v539_v48  ;;  %v2446_v51 = vmul.f32 -1.442695, %v539_v48  ;;  %v2447_v55 = vmul.f32 -1.442695, %v540_v49  ;;  %v3316_v48 = vsel %vm493_vm5, %v3268_v13, %v3265_v34 }
 0x7fb   :  { %2666 = vtanh.f32 %v540_v49  ;;  %v3322_v49 = vsel %vm500_vm6, %v3257_v7, %v3254_v29 }
 0x7fc   :  { %2668 = vpow2.f32 %v2446_v51 }
 0x800   :  { %v2665_v5 = vpop.eup %2664 }
 0x801   :  { %v2667_v50 = vpop.eup %2666  ;;  %563 = vrot.lane.b32.xlu2 %v2665_v5, %s2918_s3 }
 0x802   :  { %600 = vrot.lane.b32.xlu0 %v2667_v50, %s2918_s3  ;;  %v2669_v52 = vpop.eup %2668 }
 0x803   :  { %v544_v53 = vadd.f32 1.0, %v2669_v52 }
 0x805   :  { %2670 = vrcp.f32 %v544_v53  ;;  %v556_v1 = vand.u32 2147483648, %v544_v53  ;;  %vm550_vm8 = vweird.f32 %v544_v53  ;;  %v554_v4 = vand.u32 2147483647, %v544_v53 }
 0x806   :  { %2672 = vpow2.f32 %v2447_v55 }
 0x807   :  { %v557_v10 = vor.u32 1.1754944e-38, %v556_v1  ;;  %vm555_vm10 = vcmp.eq.f32.partialorder %v554_v4, 8.507059e+37 }
 0x80b   :  { %v2671_v54 = vpop.eup %2670 }
 0x80c   :  { %v546_v56 = vmul.f32 %v2671_v54, %v544_v53  ;;  %v2673_v59 = vpop.eup %2672  ;;  %vm551_vm7 = vweird.f32 %v2671_v54 }
 0x80d   :  { %v581_v61 = vadd.f32 1.0, %v2673_v59  ;;  %vm552_vm9 = vmor %vm550_vm8, %vm551_vm7  ;;  %vm615_vm8 = vcmp.gt.s32.totalorder %v3134_v60, 3 }
 0x80e   :  { %v547_v57 = vsub.f32 1.0, %v546_v56  ;;  %v617_v47 = vsel %vm615_vm8, 1, %v2916_v2 }
 0x80f   :  { %2674 = vrcp.f32 %v581_v61  ;;  %v593_v36 = vand.u32 2147483648, %v581_v61  ;;  %vm587_vm12 = vweird.f32 %v581_v61  ;;  %v591_v37 = vand.u32 2147483647, %v581_v61 }
 0x810   :  { %v548_v58 = vmul.f32 %v2671_v54, %v547_v57 }
 0x811   :  { %v594_v40 = vor.u32 1.1754944e-38, %v593_v36  ;;  %vm592_vm7 = vcmp.eq.f32.partialorder %v591_v37, 8.507059e+37 }
 0x812   :  { %v549_v63 = vadd.f32 %v2671_v54, %v548_v58 }
 0x814   :  { %v553_v9 = vsel %vm552_vm9, %v2671_v54, %v549_v63  ;;  %vm616_vm9 = vcmp.gt.s32.totalorder %v3134_v60, 4 }
 0x815   :  { %v558_v18 = vsel %vm555_vm10, %v557_v10, %v553_v9  ;;  %v2675_v15 = vpop.eup %2674  ;;  %v624_v29 = vsel %vm616_vm9, 1, %v2916_v2 }
 0x816   :  { %v583_v32 = vmul.f32 %v2675_v15, %v581_v61  ;;  %vm588_vm11 = vweird.f32 %v2675_v15  ;;  %v561_v5 = vmul.f32 %v558_v18, %v3316_v48 }
 0x817   :  { %vm589_vm4 = vmor %vm587_vm12, %vm588_vm11 }
 0x818   :  { %v584_v33 = vsub.f32 1.0, %v583_v32 }
 0x81a   :  { %v585_v35 = vmul.f32 %v2675_v15, %v584_v33 }
 0x81c   :  { %v586_v0 = vadd.f32 %v2675_v15, %v585_v35 }
 0x81e   :  { %v590_v39 = vsel %vm589_vm4, %v2675_v15, %v586_v0 }
 0x81f   :  { %v595_v44 = vsel %vm592_vm7, %v594_v40, %v590_v39 }
 0x820   :  { %v598_v50 = vmul.f32 %v595_v44, %v3322_v49 }
 0x85b   :  { %v564_v12 = vpop.permute.xlu2 %563 }
 0x85c   :  { %v566_v21 = vmul.f32 %v564_v12, %v558_v18 }
 0x85e   :  { %568 = vrot.lane.b32.xlu1 %v566_v21, %s2919_s20 }
 0x874   :  { %v601_v6 = vpop.permute.xlu0 %600 }
 0x875   :  { %v603_v45 = vmul.f32 %v601_v6, %v595_v44 }
 0x877   :  { %605 = vrot.lane.b32.xlu2 %v603_v45, %s2919_s20 }
 0x87f   :  { %619 = vperm.xlu2 %2581, %v617_v47  }
 0x8d0   :  { %v569_v51 = vpop.permute.xlu1 %568 }
 0x8d1   :  { %v606_v52 = vpop.permute.xlu2 %605  ;;  %v3326_v53 = vadd.f32 %v569_v51, %v561_v5 }
 0x8d2   :  { %v3328_v54 = vadd.f32 %v606_v52, %v598_v50 }
 0x8d3   :  { %2676 = vtanh.f32 %v3326_v53 }
 0x8d4   :  { %2678 = vtanh.f32 %v3328_v54 }
 0x8d9   :  { %v2677_v34 = vpop.eup %2676  ;;  %v3336_v7 = vpop.permute.xlu2 %619 }
 0x8da   :  { %v2679_v13 = vpop.eup %2678  ;;  %574 = vrot.lane.b32.xlu0 %v2677_v34, %s2919_s20  ;;  %vm621_vm10 = vcmp.eq.s32.totalorder %v3336_v7, 1  ;;  %v1439_v7 = vld [vmem:[%s4966_s8 + $0x690] sm:$0xff] }
 0x8db   :  { %611 = vrot.lane.b32.xlu1 %v2679_v13, %s2919_s20 }
 0x8e2   :  { %626 = vperm.xlu0 %2580, %v624_v29  }
 0x94c   :  { %v575_v55 = vpop.permute.xlu0 %574 }
 0x94d   :  { %v3338_v56 = vmul.f32 %v575_v55, %v558_v18  ;;  %v612_v60 = vpop.permute.xlu1 %611 }
 0x94e   :  { %v3349_v58 = vmul.f32 %v612_v60, %v595_v44 }
 0x94f   :  { %v3345_v57 = vsel %vm621_vm10, %v3338_v56, %v3283_v3 }
 0x950   :  { %634 = vrot.lane.b32.xlu1 %v3345_v57, %s2920_s29 }
 0x954   :  { %v3351_v2 = vpop.permute.xlu0 %626 }
 0x955   :  { %vm628_vm11 = vcmp.eq.s32.totalorder %v3351_v2, 1 }
 0x956   :  { %v3358_v59 = vsel %vm628_vm11, %v3349_v58, %v3296_v43 }
 0x957   :  { %638 = vrot.lane.b32.xlu2 %v3358_v59, %s2921_s30 }
 0x9b1   :  { %v639_v3 = vpop.permute.xlu2 %638 }
 0x9c2   :  { %v635_v61 = vpop.permute.xlu1 %634 }
 0x9c3   :  { %v641_v63 = vsel %vm251_vm1, %v635_v61, %v639_v3 }
 0x9c4   :  { %2448 = vmatmul.msk.f32.vlgmr.msrb.gmra.mxu2 %vm124_vm2, %v641_v63 }
 0xa47   :  { %v662_v1 = vpop.f32.mrf.mxu2 }
 0xa48   :  { %v665_v4 = vadd.f32 %v662_v1, %v3123_v25  ;;  %v666_v9 = vadd.f32 %v662_v1, %v537_v46 }
 0xa4a   :  { %2680 = vtanh.f32 %v665_v4  ;;  %v2449_v12 = vmul.f32 -1.442695, %v665_v4  ;;  %v2450_v18 = vmul.f32 -1.442695, %v666_v9  ;;  %v3375_v4 = vsel %vm621_vm10, %v3326_v53, %v3316_v48 }
 0xa4b   :  { %2682 = vtanh.f32 %v666_v9 }
 0xa4c   :  { %2684 = vpow2.f32 %v2449_v12 }
 0xa4d   :  { %2686 = vpow2.f32 %v2450_v18  ;;  %v3386_v18 = vsel %vm628_vm11, %v3328_v54, %v3322_v49 }
 0xa50   :  { %v2681_v10 = vpop.eup %2680 }
 0xa51   :  { %v2683_v43 = vpop.eup %2682  ;;  %689 = vrot.lane.b32.xlu0 %v2681_v10, %s2918_s3 }
 0xa52   :  { %726 = vrot.lane.b32.xlu1 %v2683_v43, %s2918_s3  ;;  %v2685_v21 = vpop.eup %2684 }
 0xa53   :  { %v2687_v15 = vpop.eup %2686  ;;  %v670_v32 = vadd.f32 1.0, %v2685_v21 }
 0xa54   :  { %v707_v33 = vadd.f32 1.0, %v2687_v15 }
 0xa55   :  { %2688 = vrcp.f32 %v670_v32  ;;  %v682_v47 = vand.u32 2147483648, %v670_v32  ;;  %vm676_vm7 = vweird.f32 %v670_v32  ;;  %v680_v50 = vand.u32 2147483647, %v670_v32 }
 0xa56   :  { %2690 = vrcp.f32 %v707_v33  ;;  %v719_v5 = vand.u32 2147483648, %v707_v33  ;;  %vm713_vm8 = vweird.f32 %v707_v33  ;;  %v717_v51 = vand.u32 2147483647, %v707_v33 }
 0xa57   :  { %v683_v13 = vor.u32 1.1754944e-38, %v682_v47  ;;  %vm681_vm14 = vcmp.eq.f32.partialorder %v680_v50, 8.507059e+37 }
 0xa58   :  { %v720_v29 = vor.u32 1.1754944e-38, %v719_v5  ;;  %vm718_vm15 = vcmp.eq.f32.partialorder %v717_v51, 8.507059e+37 }
 0xa5b   :  { %v2689_v35 = vpop.eup %2688 }
 0xa5c   :  { %v2691_v46 = vpop.eup %2690  ;;  %v672_v0 = vmul.f32 %v2689_v35, %v670_v32  ;;  %vm677_vm12 = vweird.f32 %v2689_v35 }
 0xa5d   :  { %v709_v36 = vmul.f32 %v2691_v46, %v707_v33  ;;  %vm714_vm4 = vweird.f32 %v2691_v46  ;;  %vm678_vm9 = vmor %vm676_vm7, %vm677_vm12 }
 0xa5e   :  { %v673_v37 = vsub.f32 1.0, %v672_v0  ;;  %vm715_vm0 = vmor %vm713_vm8, %vm714_vm4 }
 0xa5f   :  { %v710_v39 = vsub.f32 1.0, %v709_v36 }
 0xa60   :  { %v674_v40 = vmul.f32 %v2689_v35, %v673_v37 }
 0xa61   :  { %v711_v6 = vmul.f32 %v2691_v46, %v710_v39 }
 0xa62   :  { %v675_v44 = vadd.f32 %v2689_v35, %v674_v40 }
 0xa63   :  { %v712_v45 = vadd.f32 %v2691_v46, %v711_v6 }
 0xa64   :  { %v679_v52 = vsel %vm678_vm9, %v2689_v35, %v675_v44 }
 0xa65   :  { %v716_v34 = vsel %vm715_vm0, %v2691_v46, %v712_v45  ;;  %v684_v60 = vsel %vm681_vm14, %v683_v13, %v679_v52 }
 0xa66   :  { %v721_v61 = vsel %vm718_vm15, %v720_v29, %v716_v34  ;;  %v687_v9 = vmul.f32 %v684_v60, %v3375_v4 }
 0xa67   :  { %v724_v21 = vmul.f32 %v721_v61, %v3386_v18 }
 0xac3   :  { %v690_v55 = vpop.permute.xlu0 %689 }
 0xac4   :  { %v727_v3 = vpop.permute.xlu1 %726  ;;  %v692_v63 = vmul.f32 %v690_v55, %v684_v60 }
 0xac5   :  { %v729_v1 = vmul.f32 %v727_v3, %v721_v61 }
 0xac6   :  { %694 = vrot.lane.b32.xlu2 %v692_v63, %s2919_s20 }
 0xac7   :  { %731 = vrot.lane.b32.xlu0 %v729_v1, %s2919_s20 }
 0xb20   :  { %v695_v10 = vpop.permute.xlu2 %694 }
 0xb21   :  { %v3378_v43 = vadd.f32 %v695_v10, %v687_v9 }
 0xb23   :  { %2692 = vtanh.f32 %v3378_v43 }
 0xb29   :  { %v2693_v12 = vpop.eup %2692 }
 0xb2a   :  { %700 = vrot.lane.b32.xlu1 %v2693_v12, %s2919_s20 }
 0xb39   :  { %v732_v48 = vpop.permute.xlu0 %731 }
 0xb3a   :  { %v3389_v53 = vadd.f32 %v732_v48, %v724_v21 }
 0xb3c   :  { %2694 = vtanh.f32 %v3389_v53 }
 0xb42   :  { %v2695_v15 = vpop.eup %2694 }
 0xb43   :  { %737 = vrot.lane.b32.xlu2 %v2695_v15, %s2919_s20 }
 0xb9c   :  { %v701_v32 = vpop.permute.xlu1 %700 }
 0xb9d   :  { %v738_v33 = vpop.permute.xlu2 %737  ;;  %v3393_v35 = vmul.f32 %v701_v32, %v684_v60 }
 0xb9e   :  { %v3395_v46 = vmul.f32 %v738_v33, %v721_v61 }
 0xb9f   :  { %v3401_v49 = vsel %vm628_vm11, %v3393_v35, %v3345_v57 }
 0xba0   :  { %v3407_v54 = vsel %vm621_vm10, %v3395_v46, %v3358_v59  ;;  %748 = vrot.lane.b32.xlu0 %v3401_v49, %s2920_s29 }
 0xba1   :  { %752 = vrot.lane.b32.xlu1 %v3407_v54, %s2921_s30 }
 0xc12   :  { %v749_v0 = vpop.permute.xlu0 %748 }
 0xc13   :  { %v753_v36 = vpop.permute.xlu1 %752 }
 0xc14   :  { %v755_v37 = vsel %vm251_vm1, %v749_v0, %v753_v36 }
 0xc15   :  { %2451 = vmatmul.msk.f32.vlgmr.msrb.gmra.mxu3 %vm124_vm2, %v755_v37 }
 0xc98   :  { %v776_v57 = vpop.f32.mrf.mxu3 }
 0xc99   :  { %v779_v39 = vadd.f32 %v776_v57, %v410_v14  ;;  %v780_v59 = vadd.f32 %v776_v57, %v407_v8 }
 0xc9b   :  { %2696 = vtanh.f32 %v779_v39  ;;  %v2452_v44 = vmul.f32 -1.442695, %v779_v39  ;;  %v2453_v50 = vmul.f32 -1.442695, %v780_v59  ;;  %v3427_v39 = vsel %vm628_vm11, %v3378_v43, %v3375_v4 }
 0xc9c   :  { %2698 = vtanh.f32 %v780_v59  ;;  %v3433_v59 = vsel %vm621_vm10, %v3389_v53, %v3386_v18 }
 0xc9d   :  { %2700 = vpow2.f32 %v2452_v44 }
 0xca1   :  { %v2697_v40 = vpop.eup %2696 }
 0xca2   :  { %v2699_v6 = vpop.eup %2698  ;;  %803 = vrot.lane.b32.xlu2 %v2697_v40, %s2918_s3 }
 0xca3   :  { %840 = vrot.lane.b32.xlu0 %v2699_v6, %s2918_s3  ;;  %v2701_v45 = vpop.eup %2700 }
 0xca4   :  { %v784_v47 = vadd.f32 1.0, %v2701_v45 }
 0xca6   :  { %2702 = vrcp.f32 %v784_v47  ;;  %v796_v29 = vand.u32 2147483648, %v784_v47  ;;  %vm790_vm14 = vweird.f32 %v784_v47  ;;  %v794_v55 = vand.u32 2147483647, %v784_v47 }
 0xca7   :  { %2704 = vpow2.f32 %v2453_v50 }
 0xca8   :  { %v797_v3 = vor.u32 1.1754944e-38, %v796_v29  ;;  %vm795_vm12 = vcmp.eq.f32.partialorder %v794_v55, 8.507059e+37 }
 0xcac   :  { %v2703_v5 = vpop.eup %2702 }
 0xcad   :  { %v786_v51 = vmul.f32 %v2703_v5, %v784_v47  ;;  %v2705_v8 = vpop.eup %2704  ;;  %vm791_vm0 = vweird.f32 %v2703_v5 }
 0xcae   :  { %v821_v34 = vadd.f32 1.0, %v2705_v8  ;;  %vm792_vm15 = vmor %vm790_vm14, %vm791_vm0 }
 0xcaf   :  { %v787_v14 = vsub.f32 1.0, %v786_v51 }
 0xcb0   :  { %2706 = vrcp.f32 %v821_v34  ;;  %v833_v15 = vand.u32 2147483648, %v821_v34  ;;  %vm827_vm7 = vweird.f32 %v821_v34  ;;  %v831_v32 = vand.u32 2147483647, %v821_v34 }
 0xcb1   :  { %v788_v52 = vmul.f32 %v2703_v5, %v787_v14 }
 0xcb2   :  { %v834_v0 = vor.u32 1.1754944e-38, %v833_v15  ;;  %vm832_vm9 = vcmp.eq.f32.partialorder %v831_v32, 8.507059e+37 }
 0xcb3   :  { %v789_v13 = vadd.f32 %v2703_v5, %v788_v52  ;;  %v3456_v52 = vsel %vm370_vm3, %v3223_v30, 0.0 }
 0xcb5   :  { %v793_v60 = vsel %vm792_vm15, %v2703_v5, %v789_v13 }
 0xcb6   :  { %v798_v63 = vsel %vm795_vm12, %v797_v3, %v793_v60  ;;  %v2707_v9 = vpop.eup %2706 }
 0xcb7   :  { %v823_v10 = vmul.f32 %v2707_v9, %v821_v34  ;;  %vm828_vm4 = vweird.f32 %v2707_v9  ;;  %v801_v40 = vmul.f32 %v798_v63, %v3427_v39 }
 0xcb8   :  { %vm829_vm8 = vmor %vm827_vm7, %vm828_vm4 }
 0xcb9   :  { %v824_v12 = vsub.f32 1.0, %v823_v10 }
 0xcbb   :  { %v825_v21 = vmul.f32 %v2707_v9, %v824_v12 }
 0xcbd   :  { %v826_v48 = vadd.f32 %v2707_v9, %v825_v21 }
 0xcbf   :  { %v830_v33 = vsel %vm829_vm8, %v2707_v9, %v826_v48 }
 0xcc0   :  { %v835_v37 = vsel %vm832_vm9, %v834_v0, %v830_v33 }
 0xcc1   :  { %v838_v6 = vmul.f32 %v835_v37, %v3433_v59 }
 0xcfc   :  { %v804_v61 = vpop.permute.xlu2 %803 }
 0xcfd   :  { %v806_v1 = vmul.f32 %v804_v61, %v798_v63 }
 0xcff   :  { %808 = vrot.lane.b32.xlu1 %v806_v1, %s2919_s20 }
 0xd15   :  { %v841_v36 = vpop.permute.xlu0 %840 }
 0xd16   :  { %v843_v57 = vmul.f32 %v841_v36, %v835_v37 }
 0xd18   :  { %845 = vrot.lane.b32.xlu2 %v843_v57, %s2919_s20 }
 0xd71   :  { %v809_v44 = vpop.permute.xlu1 %808 }
 0xd72   :  { %v846_v45 = vpop.permute.xlu2 %845  ;;  %v3437_v47 = vadd.f32 %v809_v44, %v801_v40 }
 0xd73   :  { %v3439_v5 = vadd.f32 %v846_v45, %v838_v6 }
 0xd74   :  { %2708 = vtanh.f32 %v3437_v47 }
 0xd75   :  { %2710 = vtanh.f32 %v3439_v5 }
 0xd7a   :  { %v2709_v4 = vpop.eup %2708 }
 0xd7b   :  { %v2711_v43 = vpop.eup %2710  ;;  %814 = vrot.lane.b32.xlu0 %v2709_v4, %s2919_s20 }
 0xd7c   :  { %851 = vrot.lane.b32.xlu1 %v2711_v43, %s2919_s20 }
 0xded   :  { %v815_v18 = vpop.permute.xlu0 %814 }
 0xdee   :  { %v852_v53 = vpop.permute.xlu1 %851  ;;  %v3445_v50 = vmul.f32 %v815_v18, %v798_v63 }
 0xdef   :  { %v854_v51 = vmul.f32 %v852_v53, %v835_v37 }
 0xdf0   :  { %v3451_v14 = vsel %vm500_vm6, %v3445_v50, %v3401_v49 }
 0xdf1   :  { %v3460_v8 = vsel %vm493_vm5, %v854_v51, 0.0  ;;  %v3465_v34 = vsel %vm493_vm5, %v854_v51, %v3407_v54  ;;  %862 = vrot.lane.b32.xlu2 %v3451_v14, %s2920_s29 }
 0xdf2   :  { %v2598_v49 = vpack.i.bf16 %v3456_v52, %v3460_v8  ;;  %866 = vrot.lane.b32.xlu0 %v3465_v34, %s2921_s30  ;;  %v1429_v52 = vld [vmem:[%s4966_s8 + $0x640] sm:$0xff]  ;;  %v1320_v8 = vld [vmem:[%s4966_s8 + $0x2d8] sm:$0xff] }
 0xe4b   :  { %v863_v30 = vpop.permute.xlu2 %862 }
 0xe64   :  { %v867_v13 = vpop.permute.xlu0 %866 }
 0xe65   :  { %v869_v29 = vsel %vm251_vm1, %v863_v30, %v867_v13 }
 0xe66   :  { %2454 = vmatmul.msk.f32.vlgmr.msra.gmra.mxu1 %vm124_vm2, %v869_v29 }
 0xee3   :  { %v890_v55 = vpop.f32.mrf.mxu1 }
 0xee4   :  { %v893_v54 = vadd.f32 %v890_v55, %v280_v28  ;;  %v894_v60 = vadd.f32 %v890_v55, %v277_v26 }
 0xee6   :  { %2712 = vtanh.f32 %v893_v54  ;;  %v2456_v63 = vmul.f32 -1.442695, %v894_v60  ;;  %v2455_v12 = vmul.f32 -1.442695, %v893_v54 }
 0xee7   :  { %2714 = vtanh.f32 %v894_v60  ;;  %v3487_v60 = vsel %vm493_vm5, %v3439_v5, %v3433_v59 }
 0xee8   :  { %2716 = vpow2.f32 %v2456_v63 }
 0xeec   :  { %v2713_v3 = vpop.eup %2712 }
 0xeed   :  { %v2715_v61 = vpop.eup %2714  ;;  %917 = vrot.lane.b32.xlu1 %v2713_v3, %s2918_s3 }
 0xeee   :  { %954 = vrot.lane.b32.xlu2 %v2715_v61, %s2918_s3  ;;  %v2717_v1 = vpop.eup %2716 }
 0xeef   :  { %v935_v9 = vadd.f32 1.0, %v2717_v1 }
 0xef1   :  { %2718 = vrcp.f32 %v935_v9  ;;  %v947_v33 = vand.u32 2147483648, %v935_v9  ;;  %vm941_vm14 = vweird.f32 %v935_v9  ;;  %v945_v0 = vand.u32 2147483647, %v935_v9 }
 0xef2   :  { %2720 = vpow2.f32 %v2455_v12 }
 0xef3   :  { %v948_v37 = vor.u32 1.1754944e-38, %v947_v33  ;;  %vm946_vm12 = vcmp.eq.f32.partialorder %v945_v0, 8.507059e+37 }
 0xef7   :  { %v2719_v10 = vpop.eup %2718 }
 0xef8   :  { %v937_v21 = vmul.f32 %v2719_v10, %v935_v9  ;;  %v2721_v48 = vpop.eup %2720  ;;  %vm942_vm0 = vweird.f32 %v2719_v10  ;;  %v3498_v9 = vsel %vm500_vm6, %v3437_v47, %v3427_v39 }
 0xef9   :  { %v898_v15 = vadd.f32 1.0, %v2721_v48  ;;  %vm943_vm15 = vmor %vm941_vm14, %vm942_vm0 }
 0xefa   :  { %v938_v28 = vsub.f32 1.0, %v937_v21 }
 0xefb   :  { %2722 = vrcp.f32 %v898_v15  ;;  %v910_v53 = vand.u32 2147483648, %v898_v15  ;;  %vm904_vm7 = vweird.f32 %v898_v15  ;;  %v908_v51 = vand.u32 2147483647, %v898_v15 }
 0xefc   :  { %v939_v26 = vmul.f32 %v2719_v10, %v938_v28 }
 0xefd   :  { %v911_v13 = vor.u32 1.1754944e-38, %v910_v53  ;;  %vm909_vm9 = vcmp.eq.f32.partialorder %v908_v51, 8.507059e+37 }
 0xefe   :  { %v940_v32 = vadd.f32 %v2719_v10, %v939_v26 }
 0xf00   :  { %v944_v36 = vsel %vm943_vm15, %v2719_v10, %v940_v32  ;;  %v3522_v32 = vsel %vm500_vm6, %v3287_v41, 0.0 }
 0xf01   :  { %v949_v40 = vsel %vm946_vm12, %v948_v37, %v944_v36  ;;  %v2723_v6 = vpop.eup %2722 }
 0xf02   :  { %v900_v45 = vmul.f32 %v2723_v6, %v898_v15  ;;  %vm905_vm4 = vweird.f32 %v2723_v6  ;;  %v952_v3 = vmul.f32 %v949_v40, %v3487_v60  ;;  %v3508_v15 = vsel %vm493_vm5, %v3276_v62, 0.0 }
 0xf03   :  { %vm906_vm8 = vmor %vm904_vm7, %vm905_vm4 }
 0xf04   :  { %v901_v4 = vsub.f32 1.0, %v900_v45 }
 0xf06   :  { %v902_v43 = vmul.f32 %v2723_v6, %v901_v4 }
 0xf08   :  { %v903_v18 = vadd.f32 %v2723_v6, %v902_v43 }
 0xf0a   :  { %v907_v30 = vsel %vm906_vm8, %v2723_v6, %v903_v18 }
 0xf0b   :  { %v912_v55 = vsel %vm909_vm9, %v911_v13, %v907_v30  ;;  %vm4989_vm9 = vcmp.eq.s32.totalorder %v3149_v11, 1  ;;  %v1449_v11 = vld [vmem:[%s4966_s8 + $0x6e0] sm:$0xff] }
 0xf0c   :  { %v915_v10 = vmul.f32 %v912_v55, %v3498_v9 }
 0xf48   :  { %v955_v57 = vpop.permute.xlu2 %954 }
 0xf49   :  { %v957_v44 = vmul.f32 %v955_v57, %v949_v40 }
 0xf4b   :  { %959 = vrot.lane.b32.xlu1 %v957_v44, %s2919_s20 }
 0xf5f   :  { %v918_v29 = vpop.permute.xlu1 %917 }
 0xf60   :  { %v920_v54 = vmul.f32 %v918_v29, %v912_v55 }
 0xf62   :  { %922 = vrot.lane.b32.xlu0 %v920_v54, %s2919_s20 }
 0xfbd   :  { %v960_v61 = vpop.permute.xlu1 %959 }
 0xfbe   :  { %v3490_v63 = vadd.f32 %v960_v61, %v952_v3 }
 0xfc0   :  { %2724 = vtanh.f32 %v3490_v63 }
 0xfc6   :  { %v2725_v1 = vpop.eup %2724 }
 0xfc7   :  { %965 = vrot.lane.b32.xlu0 %v2725_v1, %s2919_s20 }
 0xfd4   :  { %v923_v59 = vpop.permute.xlu0 %922 }
 0xfd5   :  { %v3501_v5 = vadd.f32 %v923_v59, %v915_v10 }
 0xfd7   :  { %2726 = vtanh.f32 %v3501_v5 }
 0xfdd   :  { %v2727_v12 = vpop.eup %2726 }
 0xfde   :  { %928 = vrot.lane.b32.xlu2 %v2727_v12, %s2919_s20 }
0x1038   :  { %v929_v21 = vpop.permute.xlu2 %928 }
0x1039   :  { %v966_v28 = vpop.permute.xlu0 %965  ;;  %v931_v48 = vmul.f32 %v929_v21, %v912_v55 }
0x103a   :  { %v968_v26 = vmul.f32 %v966_v28, %v949_v40 }
0x103b   :  { %v3512_v39 = vsel %vm370_vm3, %v931_v48, 0.0  ;;  %v3517_v47 = vsel %vm370_vm3, %v931_v48, %v3451_v14 }
0x103c   :  { %v3526_v33 = vsel %vm363_vm13, %v968_v26, 0.0  ;;  %v2588_v38 = vpack.i.bf16 %v3512_v39, %v3508_v15  ;;  %v3533_v62 = vsel %vm363_vm13, %v968_v26, %v3465_v34  ;;  %976 = vrot.lane.b32.xlu1 %v3517_v47, %s2920_s29  ;;  %v1099_v15 = vld [vmem:[%s4962_s4 + $0x18] sm:$0xff]  ;;  %v1359_v39 = vld [vmem:[%s4966_s8 + $0x410] sm:$0xff] }
0x103d   :  { %v2583_v14 = vpack.i.bf16 %v3522_v32, %v3526_v33  ;;  %980 = vrot.lane.b32.xlu2 %v3533_v62, %s2921_s30  ;;  %1119 = vmatpush.msra.mxu3 %v1099_v15  ;;  %v1419_v32 = vld [vmem:[%s4966_s8 + $0x5f0] sm:$0xff]  ;;  %v1310_v33 = vld [vmem:[%s4966_s8 + $0x288] sm:$0xff]  ;;  %v1381_v15 = vld [vmem:[%s4966_s8 + $0x4c0] sm:$0xff] }
0x1097   :  { %v981_v41 = vpop.permute.xlu2 %980 }
0x10ae   :  { %v977_v0 = vpop.permute.xlu1 %976 }
0x10af   :  { %v983_v36 = vsel %vm251_vm1, %v977_v0, %v981_v41 }
0x10b0   :  { %2457 = vmatmul.msk.f32.vlgmr.msra.gmra.mxu2 %vm124_vm2, %v983_v36 }
0x1133   :  { %v1004_v37 = vpop.f32.mrf.mxu2 }
0x1134   :  { %v1007_v34 = vadd.f32 %v1004_v37, %v150_v27  ;;  %v1008_v57 = vadd.f32 %v1004_v37, %v3120_v23 }
0x1136   :  { %2728 = vtanh.f32 %v1007_v34  ;;  %v2458_v44 = vmul.f32 -1.442695, %v1007_v34  ;;  %v2459_v45 = vmul.f32 -1.442695, %v1008_v57 }
0x1137   :  { %2730 = vtanh.f32 %v1008_v57  ;;  %v970_v57 = vsel %vm370_vm3, %v3501_v5, %v3498_v9  ;;  %v1379_v9 = vld [vmem:[%s4966_s8 + $0x4b0] sm:$0xff]  ;;  %v1529_v5 = vld [vmem:[%s4966_s8 + $0x960] sm:$0xff]  ;;  %vm4988_vm3 = vcmp.eq.s32.totalorder %v3158_v16, 1 }
0x1138   :  { %2732 = vpow2.f32 %v2458_v44  ;;  %1549 = vmatpush.msrb.mxu1 %v1379_v9  ;;  %v1279_v16 = vld [vmem:[%s4966_s8 + $0x190] sm:$0xff]  ;;  %v1290_v9 = vld [vmem:[%s4966_s8 + $0x1e8] sm:$0xff] }
0x1139   :  { %2734 = vpow2.f32 %v2459_v45 }
0x113c   :  { %v2729_v40 = vpop.eup %2728 }
0x113d   :  { %v2731_v6 = vpop.eup %2730  ;;  %1031 = vrot.lane.b32.xlu0 %v2729_v40, %s2918_s3 }
0x113e   :  { %1068 = vrot.lane.b32.xlu1 %v2731_v6, %s2918_s3  ;;  %v2733_v4 = vpop.eup %2732 }
0x113f   :  { %v2735_v43 = vpop.eup %2734  ;;  %v1012_v18 = vadd.f32 1.0, %v2733_v4  ;;  %v972_v4 = vsel %vm363_vm13, %v3490_v63, %v3487_v60  ;;  %v1539_v60 = vld [vmem:[%s4966_s8 + $0x9b0] sm:$0xff]  ;;  %v1369_v63 = vld [vmem:[%s4966_s8 + $0x460] sm:$0xff] }
0x1140   :  { %v1049_v53 = vadd.f32 1.0, %v2735_v43  ;;  %1569 = vmatpush.msrb.mxu2 %v1539_v60  ;;  %1550 = vmatpush.msrb.mxu1 %v1369_v63  ;;  %v1229_v60 = vld [vmem:[%s4966_s8] sm:$0xff] }
0x1141   :  { %2736 = vrcp.f32 %v1012_v18  ;;  %v1024_v61 = vand.u32 2147483648, %v1012_v18  ;;  %vm1018_vm14 = vweird.f32 %v1012_v18  ;;  %v1022_v10 = vand.u32 2147483647, %v1012_v18  ;;  %v1389_v63 = vld [vmem:[%s4966_s8 + $0x500] sm:$0xff] }
0x1142   :  { %2738 = vrcp.f32 %v1049_v53  ;;  %v1061_v1 = vand.u32 2147483648, %v1049_v53  ;;  %vm1055_vm15 = vweird.f32 %v1049_v53  ;;  %v1059_v59 = vand.u32 2147483647, %v1049_v53  ;;  %1570 = vmatpush.msrb.mxu2 %v1529_v5  ;;  %1551 = vmatpush.msrb.mxu1 %v1359_v39  ;;  %v1280_v5 = vld [vmem:[%s4966_s8 + $0x198] sm:$0xff]  ;;  %v1541_v39 = vld [vmem:[%s4966_s8 + $0x9c0] sm:$0xff] }
0x1143   :  { %v1025_v28 = vor.u32 1.1754944e-38, %v1024_v61  ;;  %vm1023_vm7 = vcmp.eq.f32.partialorder %v1022_v10, 8.507059e+37  ;;  %v1370_v61 = vld [vmem:[%s4966_s8 + $0x468] sm:$0xff]  ;;  %v1479_v10 = vld [vmem:[%s4966_s8 + $0x7d0] sm:$0xff] }
0x1144   :  { %v1062_v48 = vor.u32 1.1754944e-38, %v1061_v1  ;;  %vm1060_vm8 = vcmp.eq.f32.partialorder %v1059_v59, 8.507059e+37  ;;  %v1319_v1 = vld [vmem:[%s4966_s8 + $0x2d0] sm:$0xff] }
0x1147   :  { %v2737_v25 = vpop.eup %2736 }
0x1148   :  { %v2739_v23 = vpop.eup %2738  ;;  %v1014_v27 = vmul.f32 %v2737_v25, %v1012_v18  ;;  %vm1019_vm5 = vweird.f32 %v2737_v25 }
0x1149   :  { %v1051_v51 = vmul.f32 %v2739_v23, %v1049_v53  ;;  %vm1056_vm0 = vweird.f32 %v2739_v23  ;;  %vm1020_vm12 = vmor %vm1018_vm14, %vm1019_vm5 }
0x114a   :  { %v1015_v30 = vsub.f32 1.0, %v1014_v27  ;;  %vm1057_vm4 = vmor %vm1055_vm15, %vm1056_vm0  ;;  %v1349_v27 = vld [vmem:[%s4966_s8 + $0x3c0] sm:$0xff] }
0x114b   :  { %v1052_v13 = vsub.f32 1.0, %v1051_v51  ;;  %v1509_v51 = vld [vmem:[%s4966_s8 + $0x8c0] sm:$0xff]  ;;  %1552 = vmatpush.msrb.mxu1 %v1349_v27  ;;  %vm4990_vm5 = vmmov %vm4989_vm9  ;;  %v1260_v27 = vld [vmem:[%s4966_s8 + $0xf8] sm:$0xff] }
0x114c   :  { %v1016_v29 = vmul.f32 %v2737_v25, %v1015_v30  ;;  %v1096_v30 = vld [vmem:[%s4962_s4] sm:$0xff]  ;;  %vm4991_vm0 = vmmov %vm4988_vm3 }
0x114d   :  { %v1053_v55 = vmul.f32 %v2739_v23, %v1052_v13  ;;  %v1339_v13 = vld [vmem:[%s4966_s8 + $0x370] sm:$0xff] }
0x114e   :  { %v1017_v54 = vadd.f32 %v2737_v25, %v1016_v29  ;;  %v1499_v29 = vld [vmem:[%s4966_s8 + $0x870] sm:$0xff]  ;;  %1553 = vmatpush.msrb.mxu1 %v1339_v13  ;;  %v1250_v13 = vld [vmem:[%s4966_s8 + $0xa8] sm:$0xff] }
0x114f   :  { %v1054_v3 = vadd.f32 %v2739_v23, %v1053_v55  ;;  %v1380_v55 = vld [vmem:[%s4966_s8 + $0x4b8] sm:$0xff] }
0x1150   :  { %v1021_v12 = vsel %vm1020_vm12, %v2737_v25, %v1017_v54  ;;  %v1098_v25 = vld [vmem:[%s4962_s4 + $0x10] sm:$0xff]  ;;  %v1329_v54 = vld [vmem:[%s4966_s8 + $0x320] sm:$0xff] }
0x1151   :  { %v1058_v21 = vsel %vm1057_vm4, %v2739_v23, %v1054_v3  ;;  %v3548_v41 = vsel %vm1023_vm7, %v1025_v28, %v1021_v12  ;;  %v1097_v23 = vld [vmem:[%s4962_s4 + $0x8] sm:$0xff]  ;;  %1120 = vmatpush.msra.mxu3 %v1098_v25  ;;  %v1489_v3 = vld [vmem:[%s4966_s8 + $0x820] sm:$0xff]  ;;  %1554 = vmatpush.msrb.mxu1 %v1329_v54  ;;  %v1360_v12 = vld [vmem:[%s4966_s8 + $0x418] sm:$0xff] }
0x1152   :  { %v3550_v36 = vsel %vm1060_vm8, %v1062_v48, %v1058_v21  ;;  %v1029_v40 = vmul.f32 %v3548_v41, %v970_v57  ;;  %v1309_v48 = vld [vmem:[%s4966_s8 + $0x280] sm:$0xff]  ;;  %v1371_v25 = vld [vmem:[%s4966_s8 + $0x470] sm:$0xff]  ;;  %v1240_v54 = vld [vmem:[%s4966_s8 + $0x58] sm:$0xff] }
0x1153   :  { %v1066_v43 = vmul.f32 %v3550_v36, %v972_v4  ;;  %1121 = vmatpush.msra.mxu3 %v1097_v23  ;;  %1555 = vmatpush.msrb.mxu1 %v1319_v1  ;;  %v1531_v23 = vld [vmem:[%s4966_s8 + $0x970] sm:$0xff]  ;;  %v1230_v1 = vld [vmem:[%s4966_s8 + $0x8] sm:$0xff] }
0x1155   :  { %1122 = vmatpush.msra.mxu3 %v1096_v30  ;;  %1556 = vmatpush.msrb.mxu1 %v1309_v48  ;;  %v1521_v30 = vld [vmem:[%s4966_s8 + $0x920] sm:$0xff]  ;;  %v1471_v48 = vld [vmem:[%s4966_s8 + $0x790] sm:$0xff] }
0x1157   :  { %1589 = vmatpush.msrb.mxu3 %v1380_v55  ;;  %v1511_v55 = vld [vmem:[%s4966_s8 + $0x8d0] sm:$0xff] }
0x1159   :  { %1590 = vmatpush.msrb.mxu3 %v1370_v61  ;;  %v1501_v61 = vld [vmem:[%s4966_s8 + $0x880] sm:$0xff] }
0x115b   :  { %1591 = vmatpush.msrb.mxu3 %v1360_v12  ;;  %v1321_v12 = vld [vmem:[%s4966_s8 + $0x2e0] sm:$0xff] }
0x11af   :  { %v1032_v26 = vpop.permute.xlu0 %1031 }
0x11b0   :  { %v1069_v0 = vpop.permute.xlu1 %1068  ;;  %v1034_v37 = vmul.f32 %v1032_v26, %v3548_v41 }
0x11b1   :  { %v1071_v34 = vmul.f32 %v1069_v0, %v3550_v36  ;;  %v1469_v0 = vld [vmem:[%s4966_s8 + $0x780] sm:$0xff] }
0x11b2   :  { %1036 = vrot.lane.b32.xlu2 %v1034_v37, %s2919_s20 }
0x11b3   :  { %1073 = vrot.lane.b32.xlu0 %v1071_v34, %s2919_s20  ;;  %v1350_v34 = vld [vmem:[%s4966_s8 + $0x3c8] sm:$0xff] }
0x11b4   :  { %1592 = vmatpush.msrb.mxu3 %v1350_v34  ;;  %v1281_v34 = vld [vmem:[%s4966_s8 + $0x1a0] sm:$0xff] }
0x120c   :  { %v1037_v6 = vpop.permute.xlu2 %1036 }
0x120d   :  { %v1039_v44 = vadd.f32 %v1037_v6, %v1029_v40  ;;  %v1459_v40 = vld [vmem:[%s4966_s8 + $0x730] sm:$0xff] }
0x120f   :  { %2740 = vtanh.f32 %v1039_v44  ;;  %v745_v44 = vsel %vm628_vm11, %v3393_v35, 0.0  ;;  %v1269_v35 = vld [vmem:[%s4966_s8 + $0x140] sm:$0xff] }
0x1215   :  { %v2741_v45 = vpop.eup %2740 }
0x1216   :  { %1042 = vrot.lane.b32.xlu1 %v2741_v45, %s2919_s20 }
0x1225   :  { %v1074_v18 = vpop.permute.xlu0 %1073 }
0x1226   :  { %v1076_v53 = vadd.f32 %v1074_v18, %v1066_v43  ;;  %v1409_v43 = vld [vmem:[%s4966_s8 + $0x5a0] sm:$0xff]  ;;  %v1300_v18 = vld [vmem:[%s4966_s8 + $0x238] sm:$0xff] }
0x1228   :  { %2742 = vtanh.f32 %v1076_v53  ;;  %v1239_v53 = vld [vmem:[%s4966_s8 + $0x50] sm:$0xff] }
0x122e   :  { %v2743_v31 = vpop.eup %2742 }
0x122f   :  { %1079 = vrot.lane.b32.xlu2 %v2743_v31, %s2919_s20  ;;  %v1399_v31 = vld [vmem:[%s4966_s8 + $0x550] sm:$0xff] }
0x1237   :  { %2589 = vrot.lane.b32.xlu2 %v2588_v38, %s2922_s19  ;;  %v1519_v38 = vld [vmem:[%s4966_s8 + $0x910] sm:$0xff] }
0x1238   :  { %1571 = vmatpush.msrb.mxu2 %v1519_v38  ;;  %v1270_v38 = vld [vmem:[%s4966_s8 + $0x148] sm:$0xff] }
0x123a   :  { %1572 = vmatpush.msrb.mxu2 %v1509_v51  ;;  %v1361_v51 = vld [vmem:[%s4966_s8 + $0x420] sm:$0xff] }
0x123c   :  { %1573 = vmatpush.msrb.mxu2 %v1499_v29  ;;  %v1351_v29 = vld [vmem:[%s4966_s8 + $0x3d0] sm:$0xff] }
0x123e   :  { %1574 = vmatpush.msrb.mxu2 %v1489_v3  ;;  %v1341_v3 = vld [vmem:[%s4966_s8 + $0x380] sm:$0xff] }
0x1240   :  { %1575 = vmatpush.msrb.mxu2 %v1479_v10  ;;  %v1331_v10 = vld [vmem:[%s4966_s8 + $0x330] sm:$0xff] }
0x1242   :  { %1576 = vmatpush.msrb.mxu2 %v1469_v0  ;;  %v1461_v0 = vld [vmem:[%s4966_s8 + $0x740] sm:$0xff] }
0x1244   :  { %1577 = vmatpush.msrb.mxu2 %v1459_v40  ;;  %v1261_v40 = vld [vmem:[%s4966_s8 + $0x100] sm:$0xff] }
0x1246   :  { %1578 = vmatpush.msrb.mxu2 %v1449_v11  ;;  %v1411_v11 = vld [vmem:[%s4966_s8 + $0x5b0] sm:$0xff] }
0x1248   :  { %1579 = vmatpush.msrb.mxu2 %v1439_v7 }
0x124a   :  { %1580 = vmatpush.msrb.mxu2 %v1429_v52  ;;  %v1362_v52 = vld [vmem:[%s4966_s8 + $0x428] sm:$0xff] }
0x124c   :  { %1581 = vmatpush.msrb.mxu2 %v1419_v32  ;;  %v1352_v32 = vld [vmem:[%s4966_s8 + $0x3d8] sm:$0xff] }
0x124e   :  { %1582 = vmatpush.msrb.mxu2 %v1409_v43 }
0x1250   :  { %1583 = vmatpush.msrb.mxu2 %v1399_v31 }
0x1252   :  { %1584 = vmatpush.msrb.mxu2 %v1389_v63  ;;  %v1332_v63 = vld [vmem:[%s4966_s8 + $0x338] sm:$0xff] }
0x1254   :  { %1649 = vmatpush.msra.mxu2 %v1541_v39 }
0x1256   :  { %1650 = vmatpush.msra.mxu2 %v1531_v23 }
0x1258   :  { %1651 = vmatpush.msra.mxu2 %v1521_v30 }
0x125a   :  { %1652 = vmatpush.msra.mxu2 %v1511_v55 }
0x125c   :  { %1653 = vmatpush.msra.mxu2 %v1501_v61 }
0x1288   :  { %v1043_v59 = vpop.permute.xlu1 %1042 }
0x1289   :  { %v1080_v21 = vpop.permute.xlu2 %1079  ;;  %v1045_v28 = vmul.f32 %v1043_v59, %v3548_v41  ;;  %v1299_v41 = vld [vmem:[%s4966_s8 + $0x230] sm:$0xff] }
0x128a   :  { %v1082_v26 = vmul.f32 %v1080_v21, %v3550_v36  ;;  %v632_v36 = vsel %vm628_vm11, %v3349_v58, 0.0  ;;  %v1289_v58 = vld [vmem:[%s4966_s8 + $0x1e0] sm:$0xff]  ;;  %1557 = vmatpush.msrb.mxu1 %v1299_v41  ;;  %v1491_v59 = vld [vmem:[%s4966_s8 + $0x830] sm:$0xff]  ;;  %vm1220_vm11 = vcmask 916480  }
0x128b   :  { %v1083_v37 = vsel %vm4988_vm3, %v1045_v28, %v3517_v47  ;;  %v1085_v4 = vsel %vm4991_vm0, %v1045_v28, 0.0  ;;  %1654 = vmatpush.msra.mxu2 %v1491_v59  ;;  %v1481_v21 = vld [vmem:[%s4966_s8 + $0x7e0] sm:$0xff]  ;;  %v1311_v28 = vld [vmem:[%s4966_s8 + $0x290] sm:$0xff] }
0x128c   :  { %v1086_v57 = vsel %vm4989_vm9, %v1082_v26, 0.0  ;;  %v1084_v47 = vsel %vm4990_vm5, %v1082_v26, %v3533_v62  ;;  %1088 = vrot.lane.b32.xlu0 %v1083_v37, %s2920_s29  ;;  %1558 = vmatpush.msrb.mxu1 %v1289_v58  ;;  %v746_v62 = vsel %vm621_vm10, %v3395_v46, 0.0  ;;  %v631_v46 = vsel %vm621_vm10, %v3338_v56, 0.0  ;;  %v1330_v56 = vld [vmem:[%s4966_s8 + $0x328] sm:$0xff]  ;;  %v1301_v26 = vld [vmem:[%s4966_s8 + $0x240] sm:$0xff]  ;;  %v1291_v37 = vld [vmem:[%s4966_s8 + $0x1f0] sm:$0xff] }
0x128d   :  { %v2593_v6 = vpack.i.bf16 %v632_v36, %v1086_v57  ;;  %1092 = vrot.lane.b32.xlu1 %v1084_v47, %s2921_s30  ;;  %v2608_v45 = vpack.i.bf16 %v3163_v20, %v746_v62  ;;  %v2603_v2 = vpack.i.bf16 %v1085_v4, %v631_v46  ;;  %v1340_v20 = vld [vmem:[%s4966_s8 + $0x378] sm:$0xff]  ;;  %1655 = vmatpush.msra.mxu2 %v1481_v21  ;;  %v1451_v41 = vld [vmem:[%s4966_s8 + $0x6f0] sm:$0xff]  ;;  %v1441_v36 = vld [vmem:[%s4966_s8 + $0x6a0] sm:$0xff]  ;;  %vm1212_vm10 = vcmask 392192  }
0x128e   :  { %1593 = vmatpush.msrb.mxu3 %v1340_v20  ;;  %1559 = vmatpush.msrb.mxu1 %v1279_v16  ;;  %v1271_v57 = vld [vmem:[%s4966_s8 + $0x150] sm:$0xff]  ;;  %v1241_v62 = vld [vmem:[%s4966_s8 + $0x60] sm:$0xff]  ;;  %v1382_v16 = vld [vmem:[%s4966_s8 + $0x4c8] sm:$0xff] }
0x128f   :  { %2594 = vrot.lane.b32.xlu2 %v2593_v6, %s2921_s30  ;;  %s2923_s30 = smov 112   ;;  %1656 = vmatpush.msra.mxu2 %v1471_v48  ;;  %v1431_v47 = vld [vmem:[%s4966_s8 + $0x650] sm:$0xff]  ;;  %v1421_v6 = vld [vmem:[%s4966_s8 + $0x600] sm:$0xff] }
0x1290   :  { %1594 = vmatpush.msrb.mxu3 %v1330_v56  ;;  %1560 = vmatpush.msrb.mxu1 %v1269_v35  ;;  %v1251_v58 = vld [vmem:[%s4966_s8 + $0xb0] sm:$0xff]  ;;  %v1372_v56 = vld [vmem:[%s4966_s8 + $0x478] sm:$0xff] }
0x1291   :  { %1657 = vmatpush.msra.mxu2 %v1461_v0  ;;  %v1391_v4 = vld [vmem:[%s4966_s8 + $0x510] sm:$0xff]  ;;  %v2590_v46 = vpop.permute.xlu2 %2589  ;;  %v1282_v0 = vld [vmem:[%s4966_s8 + $0x1a8] sm:$0xff] }
0x1292   :  { %1595 = vmatpush.msrb.mxu3 %v1320_v8  ;;  %v2591_v23 = vunpack.i.l.bf16 %v2590_v46 }
0x1293   :  { %1658 = vmatpush.msra.mxu2 %v1451_v41  ;;  %v1543_v41 = vld [vmem:[%s4966_s8 + $0x9d0] sm:$0xff] }
0x1294   :  { %1184 = vrot.lane.b32.xlu0 %v745_v44, %s2920_s29  ;;  %s2924_s29 = smov 64   ;;  %1596 = vmatpush.msrb.mxu3 %v1310_v33  ;;  %v1401_v44 = vld [vmem:[%s4966_s8 + $0x560] sm:$0xff] }
0x1295   :  { %2584 = vrot.lane.b32.xlu1 %v2583_v14, %s2918_s3  ;;  %v1249_v14 = vld [vmem:[%s4966_s8 + $0xa0] sm:$0xff]  ;;  %1659 = vmatpush.msra.mxu2 %v1441_v36 }
0x1296   :  { %1597 = vmatpush.msrb.mxu3 %v1300_v18  ;;  %v1342_v18 = vld [vmem:[%s4966_s8 + $0x388] sm:$0xff]  ;;  %v1373_v36 = vld [vmem:[%s4966_s8 + $0x480] sm:$0xff] }
0x1297   :  { %2609 = vrot.lane.b32.xlu2 %v2608_v45, %s2919_s20  ;;  %1660 = vmatpush.msra.mxu2 %v1431_v47  ;;  %v1231_v45 = vld [vmem:[%s4966_s8 + $0x10] sm:$0xff]  ;;  %v1262_v47 = vld [vmem:[%s4966_s8 + $0x108] sm:$0xff] }
0x1298   :  { %1598 = vmatpush.msrb.mxu3 %v1290_v9 }
0x1299   :  { %1661 = vmatpush.msra.mxu2 %v1421_v6  ;;  %v1523_v6 = vld [vmem:[%s4966_s8 + $0x930] sm:$0xff] }
0x129a   :  { %1599 = vmatpush.msrb.mxu3 %v1280_v5 }
0x129b   :  { %1662 = vmatpush.msra.mxu2 %v1411_v11  ;;  %v1353_v11 = vld [vmem:[%s4966_s8 + $0x3e0] sm:$0xff] }
0x129c   :  { %2599 = vrot.lane.b32.xlu0 %v2598_v49, %s2923_s30  ;;  %v1259_v49 = vld [vmem:[%s4966_s8 + $0xf0] sm:$0xff]  ;;  %1600 = vmatpush.msrb.mxu3 %v1270_v38  ;;  %v1312_v38 = vld [vmem:[%s4966_s8 + $0x298] sm:$0xff] }
0x129d   :  { %2604 = vrot.lane.b32.xlu1 %v2603_v2, %s2924_s29  ;;  %1561 = vmatpush.msrb.mxu1 %v1259_v49 }
0x129e   :  { %1601 = vmatpush.msrb.mxu3 %v1260_v27  ;;  %1663 = vmatpush.msra.mxu2 %v1401_v44  ;;  %v1242_v44 = vld [vmem:[%s4966_s8 + $0x68] sm:$0xff] }
0x129f   :  { %1562 = vmatpush.msrb.mxu1 %v1249_v14 }
0x12a0   :  { %1602 = vmatpush.msrb.mxu3 %v1250_v13  ;;  %1664 = vmatpush.msra.mxu2 %v1391_v4  ;;  %v1302_v13 = vld [vmem:[%s4966_s8 + $0x248] sm:$0xff]  ;;  %v1503_v4 = vld [vmem:[%s4966_s8 + $0x890] sm:$0xff] }
0x12a1   :  { %1563 = vmatpush.msrb.mxu1 %v1239_v53  ;;  %v859_v53 = vsel %vm500_vm6, %v3445_v50, 0.0  ;;  %vm1216_vm6 = vcmask 654336  }
0x12a2   :  { %1603 = vmatpush.msrb.mxu3 %v1240_v54 }
0x12a3   :  { %1564 = vmatpush.msrb.mxu1 %v1229_v60 }
0x12a4   :  { %1604 = vmatpush.msrb.mxu3 %v1230_v1 }
0x12a5   :  { %1629 = vmatpush.msra.mxu1 %v1381_v15  ;;  %v373_v15 = vsel %vm363_vm13, %v3212_v24, 0.0  ;;  %vm1218_vm13 = vcmask 785408  }
0x12a7   :  { %1630 = vmatpush.msra.mxu1 %v1371_v25  ;;  %v2592_v25 = vunpack.i.h.bf16 %v2590_v46  ;;  %v1232_v46 = vld [vmem:[%s4966_s8 + $0x18] sm:$0xff] }
0x12a9   :  { %1631 = vmatpush.msra.mxu1 %v1361_v51 }
0x12ab   :  { %1632 = vmatpush.msra.mxu1 %v1351_v29 }
0x12ad   :  { %1633 = vmatpush.msra.mxu1 %v1341_v3 }
0x12af   :  { %1634 = vmatpush.msra.mxu1 %v1331_v10 }
0x12b1   :  { %1635 = vmatpush.msra.mxu1 %v1321_v12  ;;  %v1292_v12 = vld [vmem:[%s4966_s8 + $0x1f8] sm:$0xff] }
0x12b3   :  { %1636 = vmatpush.msra.mxu1 %v1311_v28 }
0x12b5   :  { %1637 = vmatpush.msra.mxu1 %v1301_v26 }
0x12b7   :  { %1638 = vmatpush.msra.mxu1 %v1291_v37  ;;  %v1383_v37 = vld [vmem:[%s4966_s8 + $0x4d0] sm:$0xff] }
0x12b9   :  { %1639 = vmatpush.msra.mxu1 %v1281_v34  ;;  %v1272_v34 = vld [vmem:[%s4966_s8 + $0x158] sm:$0xff] }
0x12bb   :  { %1640 = vmatpush.msra.mxu1 %v1271_v57  ;;  %v1533_v57 = vld [vmem:[%s4966_s8 + $0x980] sm:$0xff] }
0x12bd   :  { %1641 = vmatpush.msra.mxu1 %v1261_v40  ;;  %v1363_v40 = vld [vmem:[%s4966_s8 + $0x430] sm:$0xff] }
0x12bf   :  { %1642 = vmatpush.msra.mxu1 %v1251_v58  ;;  %v1252_v58 = vld [vmem:[%s4966_s8 + $0xb8] sm:$0xff] }
0x12c1   :  { %1643 = vmatpush.msra.mxu1 %v1241_v62  ;;  %v1513_v62 = vld [vmem:[%s4966_s8 + $0x8e0] sm:$0xff] }
0x12c3   :  { %1644 = vmatpush.msra.mxu1 %v1231_v45  ;;  %v1343_v45 = vld [vmem:[%s4966_s8 + $0x390] sm:$0xff] }
0x12e9   :  { %v2595_v35 = vpop.permute.xlu2 %2594 }
0x12ea   :  { %v2597_v8 = vunpack.i.h.bf16 %v2595_v35  ;;  %v2596_v49 = vunpack.i.l.bf16 %v2595_v35  ;;  %v1374_v35 = vld [vmem:[%s4966_s8 + $0x488] sm:$0xff] }
0x12ec   :  { %v1210_v31 = vsel %vm251_vm1, %v3167_v22, %v2596_v49  ;;  %v1364_v49 = vld [vmem:[%s4966_s8 + $0x438] sm:$0xff] }
0x12ed   :  { %v1211_v22 = vsel %vm124_vm2, %v1210_v31, %v373_v15  ;;  %v1283_v31 = vld [vmem:[%s4966_s8 + $0x1b0] sm:$0xff]  ;;  %v1324_v15 = vld [vmem:[%s4966_s8 + $0x2f8] sm:$0xff] }
0x12f1   :  { %v2610_v27 = vpop.permute.xlu2 %2609 }
0x12f2   :  { %v2612_v61 = vunpack.i.h.bf16 %v2610_v27  ;;  %v2611_v1 = vunpack.i.l.bf16 %v2610_v27  ;;  %v1403_v27 = vld [vmem:[%s4966_s8 + $0x570] sm:$0xff] }
0x12fe   :  { %v1089_v2 = vpop.permute.xlu0 %1088 }
0x12ff   :  { %v1093_v20 = vpop.permute.xlu1 %1092 }
0x1300   :  { %v1095_v7 = vsel %vm251_vm1, %v1089_v2, %v1093_v20  ;;  %v1333_v2 = vld [vmem:[%s4966_s8 + $0x340] sm:$0xff] }
0x1301   :  { %2460 = vmatmul.msk.f32.vlgmr.msra.gmra.mxu3 %vm124_vm2, %v1095_v7  ;;  %v1493_v20 = vld [vmem:[%s4966_s8 + $0x840] sm:$0xff]  ;;  %v1323_v7 = vld [vmem:[%s4966_s8 + $0x2f0] sm:$0xff] }
0x1302   :  { %1669 = vmatpush.msra.mxu3 %v1382_v16  ;;  %v1384_v16 = vld [vmem:[%s4966_s8 + $0x4d8] sm:$0xff] }
0x1304   :  { %1670 = vmatpush.msra.mxu3 %v1372_v56  ;;  %v1483_v56 = vld [vmem:[%s4966_s8 + $0x7f0] sm:$0xff] }
0x1306   :  { %1671 = vmatpush.msra.mxu3 %v1362_v52  ;;  %v1185_v33 = vpop.permute.xlu0 %1184  ;;  %v1313_v52 = vld [vmem:[%s4966_s8 + $0x2a0] sm:$0xff] }
0x1307   :  { %v1222_v14 = vsel %vm251_vm1, %v1185_v33, %v2597_v8  ;;  %v2585_v43 = vpop.permute.xlu1 %2584  ;;  %vm1214_vm1 = vcmask 523264   ;;  %v1473_v8 = vld [vmem:[%s4966_s8 + $0x7a0] sm:$0xff]  ;;  %v1463_v33 = vld [vmem:[%s4966_s8 + $0x750] sm:$0xff] }
0x1308   :  { %1672 = vmatpush.msra.mxu3 %v1352_v32  ;;  %v2587_v9 = vunpack.i.h.bf16 %v2585_v43  ;;  %v2586_v60 = vunpack.i.l.bf16 %v2585_v43  ;;  %v1223_v5 = vsel %vm124_vm2, %v1222_v14, %v859_v53  ;;  %v1303_v32 = vld [vmem:[%s4966_s8 + $0x250] sm:$0xff]  ;;  %v1354_v14 = vld [vmem:[%s4966_s8 + $0x3e8] sm:$0xff]  ;;  %v1293_v43 = vld [vmem:[%s4966_s8 + $0x200] sm:$0xff] }
0x1309   :  { %v1344_v53 = vld [vmem:[%s4966_s8 + $0x398] sm:$0xff] }
0x130a   :  { %1673 = vmatpush.msra.mxu3 %v1342_v18  ;;  %v1224_v50 = vsel %vm1212_vm10, %v1223_v5, %v2587_v9  ;;  %v1213_v39 = vsel %vm1212_vm10, %v1211_v22, %v2586_v60  ;;  %v1453_v18 = vld [vmem:[%s4966_s8 + $0x700] sm:$0xff]  ;;  %v1443_v9 = vld [vmem:[%s4966_s8 + $0x6b0] sm:$0xff]  ;;  %v1334_v60 = vld [vmem:[%s4966_s8 + $0x348] sm:$0xff] }
0x130b   :  { %v1215_v29 = vsel %vm1214_vm1, %v1213_v39, %v2591_v23  ;;  %v1225_v55 = vsel %vm1214_vm1, %v1224_v50, %v2592_v25  ;;  %v1433_v5 = vld [vmem:[%s4966_s8 + $0x660] sm:$0xff]  ;;  %v1423_v22 = vld [vmem:[%s4966_s8 + $0x610] sm:$0xff]  ;;  %v1314_v50 = vld [vmem:[%s4966_s8 + $0x2a8] sm:$0xff] }
0x130c   :  { %1674 = vmatpush.msra.mxu3 %v1332_v63  ;;  %v1273_v63 = vld [vmem:[%s4966_s8 + $0x160] sm:$0xff]  ;;  %v1304_v25 = vld [vmem:[%s4966_s8 + $0x258] sm:$0xff]  ;;  %v1243_v23 = vld [vmem:[%s4966_s8 + $0x70] sm:$0xff] }
0x130d   :  { %v1253_v39 = vld [vmem:[%s4966_s8 + $0xc0] sm:$0xff] }
0x130e   :  { %1675 = vmatpush.msra.mxu3 %v1322_v42  ;;  %v2600_v19 = vpop.permute.xlu0 %2599  ;;  %v1263_v42 = vld [vmem:[%s4966_s8 + $0x110] sm:$0xff] }
0x130f   :  { %v2602_v24 = vunpack.i.h.bf16 %v2600_v19  ;;  %v2601_v51 = vunpack.i.l.bf16 %v2600_v19  ;;  %v2605_v30 = vpop.permute.xlu1 %2604  ;;  %v1294_v19 = vld [vmem:[%s4966_s8 + $0x208] sm:$0xff] }
0x1310   :  { %1676 = vmatpush.msra.mxu3 %v1312_v38  ;;  %v2607_v54 = vunpack.i.h.bf16 %v2605_v30  ;;  %v2606_v3 = vunpack.i.l.bf16 %v2605_v30  ;;  %v1413_v38 = vld [vmem:[%s4966_s8 + $0x5c0] sm:$0xff]  ;;  %v1284_v30 = vld [vmem:[%s4966_s8 + $0x1b8] sm:$0xff] }
0x1311   :  { %v1217_v10 = vsel %vm1216_vm6, %v1215_v29, %v2601_v51  ;;  %v1226_v59 = vsel %vm1216_vm6, %v1225_v55, %v2602_v24  ;;  %v1233_v24 = vld [vmem:[%s4966_s8 + $0x20] sm:$0xff]  ;;  %v1274_v55 = vld [vmem:[%s4966_s8 + $0x168] sm:$0xff] }
0x1312   :  { %v1219_v21 = vsel %vm1218_vm13, %v1217_v10, %v2606_v3  ;;  %v1227_v28 = vsel %vm1218_vm13, %v1226_v59, %v2607_v54  ;;  %1677 = vmatpush.msra.mxu3 %v1302_v13  ;;  %v1393_v51 = vld [vmem:[%s4966_s8 + $0x520] sm:$0xff]  ;;  %v1375_v54 = vld [vmem:[%s4966_s8 + $0x490] sm:$0xff]  ;;  %v1254_v59 = vld [vmem:[%s4966_s8 + $0xc8] sm:$0xff] }
0x1313   :  { %v3908_v48 = vsel %vm1220_vm11, %v1219_v21, %v2611_v1  ;;  %v3911_v26 = vsel %vm1220_vm11, %v1227_v28, %v2612_v61  ;;  %v1385_v13 = vld [vmem:[%s4966_s8 + $0x4e0] sm:$0xff]  ;;  %v1535_v3 = vld [vmem:[%s4966_s8 + $0x990] sm:$0xff]  ;;  %v1264_v61 = vld [vmem:[%s4966_s8 + $0x118] sm:$0xff] }
0x1314   :  { %1678 = vmatpush.msra.mxu3 %v1292_v12  ;;  %1565 = vmatmul.f32.vlgmr.msrb.gmra.mxu1 %v3908_v48  ;;  %v1545_v29 = vld [vmem:[%s4966_s8 + $0x9e0] sm:$0xff]  ;;  %v1355_v12 = vld [vmem:[%s4966_s8 + $0x3f0] sm:$0xff]  ;;  %v1244_v28 = vld [vmem:[%s4966_s8 + $0x78] sm:$0xff] }
0x1315   :  { %1585 = vmatmul.f32.vlgmr.msrb.gmra.mxu2 %v3911_v26  ;;  %1605 = vmatmul.f32.vlgmr.msrb.gmra.mxu3 %v3908_v48  ;;  %v1365_v1 = vld [vmem:[%s4966_s8 + $0x440] sm:$0xff]  ;;  %v1515_v21 = vld [vmem:[%s4966_s8 + $0x8f0] sm:$0xff] }
0x1316   :  { %1679 = vmatpush.msra.mxu3 %v1282_v0  ;;  %1709 = vmatpush.msrb.mxu1 %v1383_v37  ;;  %v1525_v10 = vld [vmem:[%s4966_s8 + $0x940] sm:$0xff] }
0x1317   :  { %1729 = vmatpush.msrb.mxu2 %v1543_v41  ;;  %v1345_v0 = vld [vmem:[%s4966_s8 + $0x3a0] sm:$0xff]  ;;  %v1234_v41 = vld [vmem:[%s4966_s8 + $0x28] sm:$0xff] }
0x1318   :  { %1680 = vmatpush.msra.mxu3 %v1272_v34  ;;  %1710 = vmatpush.msrb.mxu1 %v1373_v36  ;;  %v1505_v37 = vld [vmem:[%s4966_s8 + $0x8a0] sm:$0xff]  ;;  %v1335_v34 = vld [vmem:[%s4966_s8 + $0x350] sm:$0xff] }
0x1319   :  { %1730 = vmatpush.msrb.mxu2 %v1533_v57  ;;  %v1495_v36 = vld [vmem:[%s4966_s8 + $0x850] sm:$0xff]  ;;  %v1386_v57 = vld [vmem:[%s4966_s8 + $0x4e8] sm:$0xff] }
0x131a   :  { %1681 = vmatpush.msra.mxu3 %v1262_v47  ;;  %1711 = vmatpush.msrb.mxu1 %v1363_v40  ;;  %v1325_v47 = vld [vmem:[%s4966_s8 + $0x300] sm:$0xff] }
0x131b   :  { %1731 = vmatpush.msrb.mxu2 %v1523_v6  ;;  %v1485_v40 = vld [vmem:[%s4966_s8 + $0x800] sm:$0xff]  ;;  %v1376_v6 = vld [vmem:[%s4966_s8 + $0x498] sm:$0xff] }
0x131c   :  { %1682 = vmatpush.msra.mxu3 %v1252_v58  ;;  %1712 = vmatpush.msrb.mxu1 %v1353_v11  ;;  %v1315_v58 = vld [vmem:[%s4966_s8 + $0x2b0] sm:$0xff] }
0x131d   :  { %1732 = vmatpush.msrb.mxu2 %v1513_v62  ;;  %1645 = vmatmul.f32.vlgmr.msra.gmra.mxu1 %v3908_v48  ;;  %v1475_v11 = vld [vmem:[%s4966_s8 + $0x7b0] sm:$0xff]  ;;  %v1366_v62 = vld [vmem:[%s4966_s8 + $0x448] sm:$0xff] }
0x131e   :  { %1665 = vmatmul.f32.vlgmr.msra.gmra.mxu2 %v3911_v26  ;;  %1683 = vmatpush.msra.mxu3 %v1242_v44  ;;  %v1305_v44 = vld [vmem:[%s4966_s8 + $0x260] sm:$0xff] }
0x131f   :  { %1713 = vmatpush.msrb.mxu1 %v1343_v45  ;;  %1733 = vmatpush.msrb.mxu2 %v1503_v4  ;;  %v1465_v45 = vld [vmem:[%s4966_s8 + $0x760] sm:$0xff]  ;;  %v1356_v4 = vld [vmem:[%s4966_s8 + $0x3f8] sm:$0xff] }
0x1320   :  { %1684 = vmatpush.msra.mxu3 %v1232_v46  ;;  %v1295_v46 = vld [vmem:[%s4966_s8 + $0x210] sm:$0xff] }
0x1321   :  { %1714 = vmatpush.msrb.mxu1 %v1333_v2  ;;  %1734 = vmatpush.msrb.mxu2 %v1493_v20  ;;  %v1455_v2 = vld [vmem:[%s4966_s8 + $0x710] sm:$0xff]  ;;  %v1346_v20 = vld [vmem:[%s4966_s8 + $0x3a8] sm:$0xff] }
0x1322   :  { %1685 = vmatmul.f32.vlgmr.msra.gmra.mxu3 %v3908_v48 }
0x1323   :  { %1749 = vmatpush.msrb.mxu3 %v1384_v16  ;;  %1715 = vmatpush.msrb.mxu1 %v1323_v7  ;;  %v1285_v16 = vld [vmem:[%s4966_s8 + $0x1c0] sm:$0xff] }
0x1324   :  { %1735 = vmatpush.msrb.mxu2 %v1483_v56  ;;  %v1445_v7 = vld [vmem:[%s4966_s8 + $0x6c0] sm:$0xff]  ;;  %v1336_v56 = vld [vmem:[%s4966_s8 + $0x358] sm:$0xff] }
0x1325   :  { %1750 = vmatpush.msrb.mxu3 %v1374_v35  ;;  %1716 = vmatpush.msrb.mxu1 %v1313_v52  ;;  %v1275_v35 = vld [vmem:[%s4966_s8 + $0x170] sm:$0xff] }
0x1326   :  { %1736 = vmatpush.msrb.mxu2 %v1473_v8  ;;  %v1435_v52 = vld [vmem:[%s4966_s8 + $0x670] sm:$0xff]  ;;  %v1326_v8 = vld [vmem:[%s4966_s8 + $0x308] sm:$0xff] }
0x1327   :  { %1751 = vmatpush.msrb.mxu3 %v1364_v49  ;;  %1717 = vmatpush.msrb.mxu1 %v1303_v32  ;;  %v1265_v49 = vld [vmem:[%s4966_s8 + $0x120] sm:$0xff] }
0x1328   :  { %1737 = vmatpush.msrb.mxu2 %v1463_v33  ;;  %v1425_v32 = vld [vmem:[%s4966_s8 + $0x620] sm:$0xff]  ;;  %v1131_v33 = vld [vmem:[%s4964_s6 + $0x18] sm:$0xff] }
0x1329   :  { %1752 = vmatpush.msrb.mxu3 %v1354_v14  ;;  %1718 = vmatpush.msrb.mxu1 %v1293_v43  ;;  %v1316_v14 = vld [vmem:[%s4966_s8 + $0x2b8] sm:$0xff]  ;;  %v1255_v43 = vld [vmem:[%s4966_s8 + $0xd0] sm:$0xff] }
0x132a   :  { %1738 = vmatpush.msrb.mxu2 %v1453_v18  ;;  %1151 = vmatpush.msrb.mxu0 %v1131_v33  ;;  %v1415_v18 = vld [vmem:[%s4966_s8 + $0x5d0] sm:$0xff]  ;;  %v1328_v33 = vld [vmem:[%s4966_s8 + $0x318] sm:$0xff] }
0x132b   :  { %1753 = vmatpush.msrb.mxu3 %v1344_v53  ;;  %1719 = vmatpush.msrb.mxu1 %v1283_v31  ;;  %v1130_v53 = vld [vmem:[%s4964_s6 + $0x10] sm:$0xff]  ;;  %v1306_v31 = vld [vmem:[%s4966_s8 + $0x268] sm:$0xff] }
0x132c   :  { %1739 = vmatpush.msrb.mxu2 %v1443_v9  ;;  %v1245_v9 = vld [vmem:[%s4966_s8 + $0x80] sm:$0xff]  ;;  %1152 = vmatpush.msrb.mxu0 %v1130_v53  ;;  %v1318_v53 = vld [vmem:[%s4966_s8 + $0x2c8] sm:$0xff] }
0x132d   :  { %1754 = vmatpush.msrb.mxu3 %v1334_v60  ;;  %1720 = vmatpush.msrb.mxu1 %v1273_v63  ;;  %v1405_v60 = vld [vmem:[%s4966_s8 + $0x580] sm:$0xff]  ;;  %v1129_v63 = vld [vmem:[%s4964_s6 + $0x8] sm:$0xff] }
0x132e   :  { %1740 = vmatpush.msrb.mxu2 %v1433_v5  ;;  %v1296_v5 = vld [vmem:[%s4966_s8 + $0x218] sm:$0xff]  ;;  %1153 = vmatpush.msrb.mxu0 %v1129_v63 }
0x132f   :  { %1755 = vmatpush.msrb.mxu3 %v1324_v15  ;;  %1721 = vmatpush.msrb.mxu1 %v1263_v42  ;;  %v1235_v15 = vld [vmem:[%s4966_s8 + $0x30] sm:$0xff]  ;;  %v1308_v63 = vld [vmem:[%s4966_s8 + $0x278] sm:$0xff] }
0x1330   :  { %1741 = vmatpush.msrb.mxu2 %v1423_v22  ;;  %v1395_v42 = vld [vmem:[%s4966_s8 + $0x530] sm:$0xff]  ;;  %v1128_v22 = vld [vmem:[%s4964_s6] sm:$0xff] }
0x1331   :  { %1756 = vmatpush.msrb.mxu3 %v1314_v50  ;;  %1722 = vmatpush.msrb.mxu1 %v1253_v39  ;;  %v1286_v50 = vld [vmem:[%s4966_s8 + $0x1c8] sm:$0xff]  ;;  %v1387_v39 = vld [vmem:[%s4966_s8 + $0x4f0] sm:$0xff] }
0x1332   :  { %1742 = vmatpush.msrb.mxu2 %v1413_v38  ;;  %1154 = vmatpush.msrb.mxu0 %v1128_v22  ;;  %v1547_v38 = vld [vmem:[%s4966_s8 + $0x9f0] sm:$0xff]  ;;  %v1298_v22 = vld [vmem:[%s4966_s8 + $0x228] sm:$0xff] }
0x1333   :  { %1757 = vmatpush.msrb.mxu3 %v1304_v25  ;;  %1723 = vmatpush.msrb.mxu1 %v1243_v23  ;;  %v1276_v25 = vld [vmem:[%s4966_s8 + $0x178] sm:$0xff] }
0x1334   :  { %1743 = vmatpush.msrb.mxu2 %v1403_v27  ;;  %v1540_v23 = vld [vmem:[%s4966_s8 + $0x9b8] sm:$0xff]  ;;  %v1377_v27 = vld [vmem:[%s4966_s8 + $0x4a0] sm:$0xff] }
0x1335   :  { %1758 = vmatpush.msrb.mxu3 %v1294_v19  ;;  %1724 = vmatpush.msrb.mxu1 %v1233_v24  ;;  %v1537_v19 = vld [vmem:[%s4966_s8 + $0x9a0] sm:$0xff]  ;;  %v1266_v24 = vld [vmem:[%s4966_s8 + $0x128] sm:$0xff] }
0x1336   :  { %1744 = vmatpush.msrb.mxu2 %v1393_v51  ;;  %1725 = vmatmul.f32.vlgmr.msrb.gmra.mxu1 %v3908_v48  ;;  %v1530_v51 = vld [vmem:[%s4966_s8 + $0x968] sm:$0xff] }
0x1337   :  { %1745 = vmatmul.f32.vlgmr.msrb.gmra.mxu2 %v3911_v26  ;;  %1759 = vmatpush.msrb.mxu3 %v1284_v30  ;;  %v1367_v30 = vld [vmem:[%s4966_s8 + $0x450] sm:$0xff] }
0x1338   :  { %1789 = vmatpush.msra.mxu1 %v1385_v13  ;;  %1809 = vmatpush.msra.mxu2 %v1545_v29  ;;  %v1527_v13 = vld [vmem:[%s4966_s8 + $0x950] sm:$0xff]  ;;  %v1256_v29 = vld [vmem:[%s4966_s8 + $0xd8] sm:$0xff] }
0x1339   :  { %1760 = vmatpush.msrb.mxu3 %v1274_v55  ;;  %1609 = vmatpush.msra.mxu0 %v1540_v23  ;;  %v1520_v55 = vld [vmem:[%s4966_s8 + $0x918] sm:$0xff]  ;;  %v1278_v23 = vld [vmem:[%s4966_s8 + $0x188] sm:$0xff] }
0x133a   :  { %1790 = vmatpush.msra.mxu1 %v1375_v54  ;;  %1810 = vmatpush.msra.mxu2 %v1535_v3  ;;  %v1357_v54 = vld [vmem:[%s4966_s8 + $0x400] sm:$0xff] }
0x133b   :  { %1761 = vmatpush.msrb.mxu3 %v1264_v61  ;;  %v1517_v3 = vld [vmem:[%s4966_s8 + $0x900] sm:$0xff]  ;;  %1610 = vmatpush.msra.mxu0 %v1530_v51  ;;  %v1246_v61 = vld [vmem:[%s4966_s8 + $0x88] sm:$0xff] }
0x133c   :  { %1791 = vmatpush.msra.mxu1 %v1365_v1  ;;  %1811 = vmatpush.msra.mxu2 %v1525_v10  ;;  %v1510_v1 = vld [vmem:[%s4966_s8 + $0x8c8] sm:$0xff]  ;;  %v1347_v10 = vld [vmem:[%s4966_s8 + $0x3b0] sm:$0xff] }
0x133d   :  { %1762 = vmatpush.msrb.mxu3 %v1254_v59  ;;  %v1507_v59 = vld [vmem:[%s4966_s8 + $0x8b0] sm:$0xff]  ;;  %1611 = vmatpush.msra.mxu0 %v1520_v55  ;;  %v1238_v51 = vld [vmem:[%s4966_s8 + $0x48] sm:$0xff] }
0x133e   :  { %1792 = vmatpush.msra.mxu1 %v1355_v12  ;;  %1812 = vmatpush.msra.mxu2 %v1515_v21  ;;  %v1236_v12 = vld [vmem:[%s4966_s8 + $0x38] sm:$0xff]  ;;  %v1542_v55 = vld [vmem:[%s4966_s8 + $0x9c8] sm:$0xff] }
0x133f   :  { %1763 = vmatpush.msrb.mxu3 %v1244_v28  ;;  %v1500_v21 = vld [vmem:[%s4966_s8 + $0x878] sm:$0xff]  ;;  %v1337_v28 = vld [vmem:[%s4966_s8 + $0x360] sm:$0xff]  ;;  %1612 = vmatpush.msra.mxu0 %v1510_v1  ;;  %v1502_v1 = vld [vmem:[%s4966_s8 + $0x888] sm:$0xff] }
0x1340   :  { %1793 = vmatpush.msra.mxu1 %v1345_v0  ;;  %1813 = vmatpush.msra.mxu2 %v1505_v37  ;;  %v1497_v0 = vld [vmem:[%s4966_s8 + $0x860] sm:$0xff]  ;;  %v1490_v37 = vld [vmem:[%s4966_s8 + $0x828] sm:$0xff] }
0x1341   :  { %1764 = vmatpush.msrb.mxu3 %v1234_v41  ;;  %v1388_v41 = vld [vmem:[%s4966_s8 + $0x4f8] sm:$0xff]  ;;  %1613 = vmatpush.msra.mxu0 %v1500_v21  ;;  %v1482_v21 = vld [vmem:[%s4966_s8 + $0x7e8] sm:$0xff] }
0x1342   :  { %1794 = vmatpush.msra.mxu1 %v1335_v34  ;;  %1814 = vmatpush.msra.mxu2 %v1495_v36  ;;  %v1327_v34 = vld [vmem:[%s4966_s8 + $0x310] sm:$0xff] }
0x1343   :  { %1765 = vmatmul.f32.vlgmr.msrb.gmra.mxu3 %v3908_v48  ;;  %v1487_v36 = vld [vmem:[%s4966_s8 + $0x810] sm:$0xff]  ;;  %1614 = vmatpush.msra.mxu0 %v1490_v37  ;;  %v1462_v37 = vld [vmem:[%s4966_s8 + $0x748] sm:$0xff] }
0x1344   :  { %1829 = vmatpush.msra.mxu3 %v1386_v57  ;;  %1795 = vmatpush.msra.mxu1 %v1325_v47  ;;  %v1480_v57 = vld [vmem:[%s4966_s8 + $0x7d8] sm:$0xff]  ;;  %v1378_v47 = vld [vmem:[%s4966_s8 + $0x4a8] sm:$0xff] }
0x1345   :  { %1815 = vmatpush.msra.mxu2 %v1485_v40  ;;  %v1317_v40 = vld [vmem:[%s4966_s8 + $0x2c0] sm:$0xff]  ;;  %1615 = vmatpush.msra.mxu0 %v1480_v57 }
0x1346   :  { %1830 = vmatpush.msra.mxu3 %v1376_v6  ;;  %1796 = vmatpush.msra.mxu1 %v1315_v58  ;;  %v1477_v6 = vld [vmem:[%s4966_s8 + $0x7c0] sm:$0xff]  ;;  %v1470_v58 = vld [vmem:[%s4966_s8 + $0x788] sm:$0xff] }
0x1347   :  { %1816 = vmatpush.msra.mxu2 %v1475_v11  ;;  %v1368_v11 = vld [vmem:[%s4966_s8 + $0x458] sm:$0xff]  ;;  %1616 = vmatpush.msra.mxu0 %v1470_v58 }
0x1348   :  { %1831 = vmatpush.msra.mxu3 %v1366_v62  ;;  %1797 = vmatpush.msra.mxu1 %v1305_v44  ;;  %v1307_v62 = vld [vmem:[%s4966_s8 + $0x270] sm:$0xff]  ;;  %v1412_v58 = vld [vmem:[%s4966_s8 + $0x5b8] sm:$0xff] }
0x1349   :  { %1817 = vmatpush.msra.mxu2 %v1465_v45  ;;  %v1467_v44 = vld [vmem:[%s4966_s8 + $0x770] sm:$0xff]  ;;  %v1460_v45 = vld [vmem:[%s4966_s8 + $0x738] sm:$0xff] }
0x134a   :  { %1832 = vmatpush.msra.mxu3 %v1356_v4  ;;  %1798 = vmatpush.msra.mxu1 %v1295_v46  ;;  %v1358_v4 = vld [vmem:[%s4966_s8 + $0x408] sm:$0xff]  ;;  %v1297_v46 = vld [vmem:[%s4966_s8 + $0x220] sm:$0xff] }
0x134b   :  { %1818 = vmatpush.msra.mxu2 %v1455_v2  ;;  %v1457_v2 = vld [vmem:[%s4966_s8 + $0x720] sm:$0xff]  ;;  %1617 = vmatpush.msra.mxu0 %v1460_v45  ;;  %v1534_v45 = vld [vmem:[%s4966_s8 + $0x988] sm:$0xff] }
0x134c   :  { %1833 = vmatpush.msra.mxu3 %v1346_v20  ;;  %1799 = vmatpush.msra.mxu1 %v1285_v16  ;;  %v1450_v20 = vld [vmem:[%s4966_s8 + $0x6e8] sm:$0xff]  ;;  %v1348_v16 = vld [vmem:[%s4966_s8 + $0x3b8] sm:$0xff] }
0x134d   :  { %1819 = vmatpush.msra.mxu2 %v1445_v7  ;;  %v1287_v7 = vld [vmem:[%s4966_s8 + $0x1d0] sm:$0xff]  ;;  %1618 = vmatpush.msra.mxu0 %v1450_v20  ;;  %v1494_v20 = vld [vmem:[%s4966_s8 + $0x848] sm:$0xff] }
0x134e   :  { %1834 = vmatpush.msra.mxu3 %v1336_v56  ;;  %1800 = vmatpush.msra.mxu1 %v1275_v35  ;;  %v1447_v56 = vld [vmem:[%s4966_s8 + $0x6d0] sm:$0xff]  ;;  %v1440_v35 = vld [vmem:[%s4966_s8 + $0x698] sm:$0xff] }
0x134f   :  { %1820 = vmatpush.msra.mxu2 %v1435_v52  ;;  %v1338_v52 = vld [vmem:[%s4966_s8 + $0x368] sm:$0xff]  ;;  %1619 = vmatpush.msra.mxu0 %v1440_v35 }
0x1350   :  { %1835 = vmatpush.msra.mxu3 %v1326_v8  ;;  %1801 = vmatpush.msra.mxu1 %v1265_v49  ;;  %v1277_v8 = vld [vmem:[%s4966_s8 + $0x180] sm:$0xff]  ;;  %v1474_v35 = vld [vmem:[%s4966_s8 + $0x7a8] sm:$0xff] }
0x1351   :  { %1821 = vmatpush.msra.mxu2 %v1425_v32  ;;  %v1437_v49 = vld [vmem:[%s4966_s8 + $0x680] sm:$0xff]  ;;  %v1430_v32 = vld [vmem:[%s4966_s8 + $0x648] sm:$0xff] }
0x1352   :  { %1836 = vmatpush.msra.mxu3 %v1316_v14  ;;  %1802 = vmatpush.msra.mxu1 %v1255_v43  ;;  %v1267_v14 = vld [vmem:[%s4966_s8 + $0x130] sm:$0xff] }
0x1353   :  { %1822 = vmatpush.msra.mxu2 %v1415_v18  ;;  %v1427_v43 = vld [vmem:[%s4966_s8 + $0x630] sm:$0xff]  ;;  %v1420_v18 = vld [vmem:[%s4966_s8 + $0x5f8] sm:$0xff]  ;;  %1620 = vmatpush.msra.mxu0 %v1430_v32 }
0x1354   :  { %1837 = vmatpush.msra.mxu3 %v1306_v31  ;;  %1803 = vmatpush.msra.mxu1 %v1245_v9  ;;  %v1257_v31 = vld [vmem:[%s4966_s8 + $0xe0] sm:$0xff]  ;;  %v1444_v32 = vld [vmem:[%s4966_s8 + $0x6b8] sm:$0xff] }
0x1355   :  { %1823 = vmatpush.msra.mxu2 %v1405_v60  ;;  %v1417_v9 = vld [vmem:[%s4966_s8 + $0x5e0] sm:$0xff]  ;;  %v1410_v60 = vld [vmem:[%s4966_s8 + $0x5a8] sm:$0xff]  ;;  %1621 = vmatpush.msra.mxu0 %v1420_v18  ;;  %v1404_v18 = vld [vmem:[%s4966_s8 + $0x578] sm:$0xff] }
0x1356   :  { %1838 = vmatpush.msra.mxu3 %v1296_v5  ;;  %1804 = vmatpush.msra.mxu1 %v1235_v15  ;;  %v1247_v5 = vld [vmem:[%s4966_s8 + $0x90] sm:$0xff] }
0x1357   :  { %1824 = vmatpush.msra.mxu2 %v1395_v42  ;;  %1805 = vmatmul.f32.vlgmr.msra.gmra.mxu1 %v3908_v48  ;;  %v1407_v15 = vld [vmem:[%s4966_s8 + $0x590] sm:$0xff]  ;;  %v1400_v42 = vld [vmem:[%s4966_s8 + $0x558] sm:$0xff] }
0x1358   :  { %1825 = vmatmul.f32.vlgmr.msra.gmra.mxu2 %v3911_v26  ;;  %1839 = vmatpush.msra.mxu3 %v1286_v50  ;;  %v1237_v50 = vld [vmem:[%s4966_s8 + $0x40] sm:$0xff] }
0x1359   :  { %1869 = vmatpush.msrb.mxu1 %v1387_v39  ;;  %1889 = vmatpush.msrb.mxu2 %v1547_v38  ;;  %v1397_v39 = vld [vmem:[%s4966_s8 + $0x540] sm:$0xff]  ;;  %v1288_v38 = vld [vmem:[%s4966_s8 + $0x1d8] sm:$0xff] }
0x135a   :  { %1840 = vmatpush.msra.mxu3 %v1276_v25  ;;  %1622 = vmatpush.msra.mxu0 %v1410_v60  ;;  %v1390_v25 = vld [vmem:[%s4966_s8 + $0x508] sm:$0xff] }
0x135b   :  { %1870 = vmatpush.msrb.mxu1 %v1377_v27  ;;  %1890 = vmatpush.msrb.mxu2 %v1537_v19  ;;  %v1268_v27 = vld [vmem:[%s4966_s8 + $0x138] sm:$0xff]  ;;  %v1258_v19 = vld [vmem:[%s4966_s8 + $0xe8] sm:$0xff] }
0x135c   :  { %1841 = vmatpush.msra.mxu3 %v1266_v24  ;;  %1623 = vmatpush.msra.mxu0 %v1400_v42  ;;  %v1248_v24 = vld [vmem:[%s4966_s8 + $0x98] sm:$0xff]  ;;  %v1526_v60 = vld [vmem:[%s4966_s8 + $0x948] sm:$0xff] }
0x135d   :  { %1871 = vmatpush.msrb.mxu1 %v1367_v30  ;;  %1891 = vmatpush.msrb.mxu2 %v1527_v13  ;;  %v2613_v30 = vld [vmem:[%s4963_s5] ss:$0 sm:$0xff]  ;;  %v1486_v42 = vld [vmem:[%s4966_s8 + $0x808] sm:$0xff] }
0x135e   :  { %1842 = vmatpush.msra.mxu3 %v1256_v29  ;;  %1624 = vmatpush.msra.mxu0 %v1390_v25  ;;  %v1466_v25 = vld [vmem:[%s4966_s8 + $0x768] sm:$0xff] }
0x135f   :  { %1872 = vmatpush.msrb.mxu1 %v1357_v54  ;;  %1892 = vmatpush.msrb.mxu2 %v1517_v3  ;;  %v1532_v3 = vld [vmem:[%s4966_s8 + $0x978] sm:$0xff] }
0x1360   :  { %1843 = vmatpush.msra.mxu3 %v1246_v61  ;;  %v1522_v61 = vld [vmem:[%s4966_s8 + $0x928] sm:$0xff] }
0x1361   :  { %1873 = vmatpush.msrb.mxu1 %v1347_v10  ;;  %1893 = vmatpush.msrb.mxu2 %v1507_v59  ;;  %v1492_v10 = vld [vmem:[%s4966_s8 + $0x838] sm:$0xff] }
0x1362   :  { %1844 = vmatpush.msra.mxu3 %v1236_v12 }
0x1363   :  { %1874 = vmatpush.msrb.mxu1 %v1337_v28  ;;  %1894 = vmatpush.msrb.mxu2 %v1497_v0  ;;  %v1472_v0 = vld [vmem:[%s4966_s8 + $0x798] sm:$0xff] }
0x1364   :  { %1845 = vmatmul.f32.vlgmr.msra.gmra.mxu3 %v3908_v48 }
0x1365   :  { %1909 = vmatpush.msrb.mxu3 %v1388_v41  ;;  %1875 = vmatpush.msrb.mxu1 %v1327_v34  ;;  %v1452_v41 = vld [vmem:[%s4966_s8 + $0x6f8] sm:$0xff]  ;;  %v1442_v34 = vld [vmem:[%s4966_s8 + $0x6a8] sm:$0xff] }
0x1366   :  { %1895 = vmatpush.msrb.mxu2 %v1487_v36 }
0x1367   :  { %1910 = vmatpush.msrb.mxu3 %v1378_v47  ;;  %1876 = vmatpush.msrb.mxu1 %v1317_v40  ;;  %v1432_v40 = vld [vmem:[%s4966_s8 + $0x658] sm:$0xff] }
0x1368   :  { %1896 = vmatpush.msrb.mxu2 %v1477_v6  ;;  %v1422_v6 = vld [vmem:[%s4966_s8 + $0x608] sm:$0xff] }
0x1369   :  { %1911 = vmatpush.msrb.mxu3 %v1368_v11  ;;  %1877 = vmatpush.msrb.mxu1 %v1307_v62  ;;  %v1402_v11 = vld [vmem:[%s4966_s8 + $0x568] sm:$0xff]  ;;  %v1392_v62 = vld [vmem:[%s4966_s8 + $0x518] sm:$0xff] }
0x136a   :  { %1897 = vmatpush.msrb.mxu2 %v1467_v44  ;;  %v1544_v44 = vld [vmem:[%s4966_s8 + $0x9d8] sm:$0xff] }
0x136b   :  { %1912 = vmatpush.msrb.mxu3 %v1358_v4  ;;  %1878 = vmatpush.msrb.mxu1 %v1297_v46  ;;  %v1524_v4 = vld [vmem:[%s4966_s8 + $0x938] sm:$0xff]  ;;  %v1514_v46 = vld [vmem:[%s4966_s8 + $0x8e8] sm:$0xff] }
0x136c   :  { %1898 = vmatpush.msrb.mxu2 %v1457_v2  ;;  %v1504_v2 = vld [vmem:[%s4966_s8 + $0x898] sm:$0xff] }
0x136d   :  { %1913 = vmatpush.msrb.mxu3 %v1348_v16  ;;  %1879 = vmatpush.msrb.mxu1 %v1287_v7  ;;  %v1484_v16 = vld [vmem:[%s4966_s8 + $0x7f8] sm:$0xff] }
0x136e   :  { %1899 = vmatpush.msrb.mxu2 %v1447_v56 }
0x136f   :  { %1914 = vmatpush.msrb.mxu3 %v1338_v52  ;;  %1880 = vmatpush.msrb.mxu1 %v1277_v8  ;;  %v1464_v8 = vld [vmem:[%s4966_s8 + $0x758] sm:$0xff] }
0x1370   :  { %1900 = vmatpush.msrb.mxu2 %v1437_v49  ;;  %v1454_v49 = vld [vmem:[%s4966_s8 + $0x708] sm:$0xff] }
0x1371   :  { %1915 = vmatpush.msrb.mxu3 %v1328_v33  ;;  %1881 = vmatpush.msrb.mxu1 %v1267_v14  ;;  %v1434_v33 = vld [vmem:[%s4966_s8 + $0x668] sm:$0xff]  ;;  %v1424_v14 = vld [vmem:[%s4966_s8 + $0x618] sm:$0xff] }
0x1372   :  { %1901 = vmatpush.msrb.mxu2 %v1427_v43  ;;  %v1414_v43 = vld [vmem:[%s4966_s8 + $0x5c8] sm:$0xff] }
0x1373   :  { %1916 = vmatpush.msrb.mxu3 %v1318_v53  ;;  %1882 = vmatpush.msrb.mxu1 %v1257_v31  ;;  %v1394_v53 = vld [vmem:[%s4966_s8 + $0x528] sm:$0xff] }
0x1374   :  { %1902 = vmatpush.msrb.mxu2 %v1417_v9  ;;  %v1546_v31 = vld [vmem:[%s4966_s8 + $0x9e8] sm:$0xff]  ;;  %v1536_v9 = vld [vmem:[%s4966_s8 + $0x998] sm:$0xff] }
0x1375   :  { %1917 = vmatpush.msrb.mxu3 %v1308_v63  ;;  %1883 = vmatpush.msrb.mxu1 %v1247_v5  ;;  %v1516_v63 = vld [vmem:[%s4966_s8 + $0x8f8] sm:$0xff]  ;;  %v1506_v5 = vld [vmem:[%s4966_s8 + $0x8a8] sm:$0xff] }
0x1376   :  { %1903 = vmatpush.msrb.mxu2 %v1407_v15  ;;  %v1496_v15 = vld [vmem:[%s4966_s8 + $0x858] sm:$0xff] }
0x1377   :  { %1918 = vmatpush.msrb.mxu3 %v1298_v22  ;;  %1884 = vmatpush.msrb.mxu1 %v1237_v50  ;;  %v1476_v22 = vld [vmem:[%s4966_s8 + $0x7b8] sm:$0xff] }
0x1378   :  { %1904 = vmatpush.msrb.mxu2 %v1397_v39  ;;  %1885 = vmatmul.f32.vlgmr.msrb.gmra.mxu1 %v3908_v48 }
0x1379   :  { %1905 = vmatmul.f32.vlgmr.msrb.gmra.mxu2 %v3911_v26  ;;  %1919 = vmatpush.msrb.mxu3 %v1288_v38 }
0x137b   :  { %1920 = vmatpush.msrb.mxu3 %v1278_v23  ;;  %v1456_v23 = vld [vmem:[%s4966_s8 + $0x718] sm:$0xff] }
0x137d   :  { %1921 = vmatpush.msrb.mxu3 %v1268_v27  ;;  %v1446_v27 = vld [vmem:[%s4966_s8 + $0x6c8] sm:$0xff] }
0x137f   :  { %1922 = vmatpush.msrb.mxu3 %v1258_v19  ;;  %v1436_v19 = vld [vmem:[%s4966_s8 + $0x678] sm:$0xff] }
0x1381   :  { %1923 = vmatpush.msrb.mxu3 %v1248_v24  ;;  %v1426_v24 = vld [vmem:[%s4966_s8 + $0x628] sm:$0xff] }
0x1383   :  { %1924 = vmatpush.msrb.mxu3 %v1238_v51  ;;  %v1416_v51 = vld [vmem:[%s4966_s8 + $0x5d8] sm:$0xff] }
0x1384   :  { %1925 = vmatmul.f32.vlgmr.msrb.gmra.mxu3 %v3908_v48  ;;  %v1124_v13 = vpop.f32.mrf.mxu3  ;;  %v1512_v48 = vld [vmem:[%s4966_s8 + $0x8d8] sm:$0xff] }
0x1385   :  { %v1125_v29 = vadd.f32 %v2613_v30, %v1124_v13  ;;  %v1406_v30 = vld [vmem:[%s4966_s8 + $0x588] sm:$0xff]  ;;  %v1396_v13 = vld [vmem:[%s4966_s8 + $0x538] sm:$0xff] }
0x1387   :  { %2744 = vtanh.f32 %v1125_v29  ;;  %v1548_v29 = vld [vmem:[%s4966_s8 + $0x9f8] sm:$0xff] }
0x138d   :  { %v2745_v54 = vpop.eup %2744 }
0x138e   :  { %2461 = vmatmul.msk.f32.vlgmr.msrb.gmra.mxu0 %vm124_vm2, %v2745_v54  ;;  %v1528_v54 = vld [vmem:[%s4966_s8 + $0x958] sm:$0xff] }
0x138f   :  { %1689 = vmatpush.msrb.mxu0 %v1542_v55  ;;  %v1538_v55 = vld [vmem:[%s4966_s8 + $0x9a8] sm:$0xff] }
0x1391   :  { %1690 = vmatpush.msrb.mxu0 %v1532_v3  ;;  %v1566_v59 = vpop.f32.mrf.mxu1  ;;  %v1518_v3 = vld [vmem:[%s4966_s8 + $0x908] sm:$0xff] }
0x1393   :  { %1691 = vmatpush.msrb.mxu0 %v1522_v61  ;;  %v1508_v61 = vld [vmem:[%s4966_s8 + $0x8b8] sm:$0xff] }
0x1395   :  { %1692 = vmatpush.msrb.mxu0 %v1512_v48  ;;  %v1498_v48 = vld [vmem:[%s4966_s8 + $0x868] sm:$0xff] }
0x1396   :  { %1625 = vmatmul.f32.vlgmr.msra.gmra.mxu0 %v3911_v26 }
0x1397   :  { %1693 = vmatpush.msrb.mxu0 %v1502_v1  ;;  %v1488_v1 = vld [vmem:[%s4966_s8 + $0x818] sm:$0xff] }
0x1398   :  { %v1586_v12 = vpop.f32.mrf.mxu2 }
0x1399   :  { %v4464_v28 = vadd.f32 %v1586_v12, %v1566_v59  ;;  %1694 = vmatpush.msrb.mxu0 %v1492_v10  ;;  %v1478_v10 = vld [vmem:[%s4966_s8 + $0x7c8] sm:$0xff]  ;;  %v2614_v59 = vld [vmem:[%s4967_s9] ss:$0 sm:$0xff] }
0x139a   :  { %v1646_v36 = vpop.f32.mrf.mxu1 }
0x139b   :  { %1695 = vmatpush.msrb.mxu0 %v1482_v21 }
0x139d   :  { %1696 = vmatpush.msrb.mxu0 %v1472_v0  ;;  %v1468_v0 = vld [vmem:[%s4966_s8 + $0x778] sm:$0xff] }
0x139f   :  { %1697 = vmatpush.msrb.mxu0 %v1462_v37 }
0x13a1   :  { %v1666_v57 = vpop.f32.mrf.mxu2  ;;  %1698 = vmatpush.msrb.mxu0 %v1452_v41  ;;  %v1458_v41 = vld [vmem:[%s4966_s8 + $0x728] sm:$0xff] }
0x13a2   :  { %v4478_v47 = vadd.f32 %v1666_v57, %v1646_v36  ;;  %v1448_v36 = vld [vmem:[%s4966_s8 + $0x6d8] sm:$0xff]  ;;  %v1438_v57 = vld [vmem:[%s4966_s8 + $0x688] sm:$0xff] }
0x13a3   :  { %1699 = vmatpush.msrb.mxu0 %v1442_v34 }
0x13a5   :  { %1700 = vmatpush.msrb.mxu0 %v1432_v40  ;;  %v1428_v40 = vld [vmem:[%s4966_s8 + $0x638] sm:$0xff] }
0x13a7   :  { %1701 = vmatpush.msrb.mxu0 %v1422_v6  ;;  %v1418_v6 = vld [vmem:[%s4966_s8 + $0x5e8] sm:$0xff] }
0x13a9   :  { %1702 = vmatpush.msrb.mxu0 %v1412_v58  ;;  %v1408_v58 = vld [vmem:[%s4966_s8 + $0x598] sm:$0xff] }
0x13ab   :  { %1703 = vmatpush.msrb.mxu0 %v1402_v11  ;;  %v2615_v11 = vld [vmem:[%s4965_s7] ss:$0 sm:$0xff]  ;;  %s4672_s7 = smov 0  }
0x13ad   :  { %1704 = vmatpush.msrb.mxu0 %v1392_v62  ;;  %v1398_v62 = vld [vmem:[%s4966_s8 + $0x548] sm:$0xff]  ;;  %s4686_s8 = smov 0  }
0x13ae   :  { %1705 = vmatmul.f32.vlgmr.msrb.gmra.mxu0 %v3911_v26 }
0x13af   :  { %1769 = vmatpush.msra.mxu0 %v1544_v44 }
0x13b1   :  { %1770 = vmatpush.msra.mxu0 %v1534_v45 }
0x13b3   :  { %1771 = vmatpush.msra.mxu0 %v1524_v4  ;;  %v1726_v7 = vpop.f32.mrf.mxu1  ;;  %v1606_v4 = vpop.f32.mrf.mxu3 }
0x13b5   :  { %1772 = vmatpush.msra.mxu0 %v1514_v46 }
0x13b7   :  { %1773 = vmatpush.msra.mxu0 %v1504_v2 }
0x13b9   :  { %1774 = vmatpush.msra.mxu0 %v1494_v20 }
0x13ba   :  { %v1746_v56 = vpop.f32.mrf.mxu2 }
0x13bb   :  { %v4520_v52 = vadd.f32 %v1746_v56, %v1726_v7  ;;  %1775 = vmatpush.msra.mxu0 %v1484_v16  ;;  %v1686_v20 = vpop.f32.mrf.mxu3 }
0x13bd   :  { %1776 = vmatpush.msra.mxu0 %v1474_v35 }
0x13bf   :  { %1777 = vmatpush.msra.mxu0 %v1464_v8 }
0x13c1   :  { %1778 = vmatpush.msra.mxu0 %v1454_v49 }
0x13c3   :  { %1779 = vmatpush.msra.mxu0 %v1444_v32 }
0x13c5   :  { %1780 = vmatpush.msra.mxu0 %v1434_v33 }
0x13c6   :  { %v1766_v56 = vpop.f32.mrf.mxu3 }
0x13c7   :  { %1781 = vmatpush.msra.mxu0 %v1424_v14 }
0x13c9   :  { %1782 = vmatpush.msra.mxu0 %v1414_v43 }
0x13cb   :  { %1783 = vmatpush.msra.mxu0 %v1404_v18 }
0x13cd   :  { %1784 = vmatpush.msra.mxu0 %v1394_v53  ;;  %v4670_v53 = vmov 0  }
0x13ce   :  { %1785 = vmatmul.f32.vlgmr.msra.gmra.mxu0 %v3911_v26 }
0x13cf   :  { %1849 = vmatpush.msrb.mxu0 %v1546_v31  ;;  %v4674_v31 = vmov 1  }
0x13d1   :  { %1850 = vmatpush.msrb.mxu0 %v1536_v9  ;;  %v4676_v9 = vmov 0.0  }
0x13d3   :  { %1851 = vmatpush.msrb.mxu0 %v1526_v60  ;;  %v4678_v60 = vmov 0.0  }
0x13d4   :  { %v1806_v50 = vpop.f32.mrf.mxu1 }
0x13d5   :  { %1852 = vmatpush.msrb.mxu0 %v1516_v63  ;;  %v4680_v63 = vmov 0.0  }
0x13d7   :  { %1853 = vmatpush.msrb.mxu0 %v1506_v5  ;;  %v4682_v5 = vmov 0.0  }
0x13d9   :  { %1854 = vmatpush.msrb.mxu0 %v1496_v15  ;;  %v4684_v15 = vmov 48  }
0x13db   :  { %v1826_v39 = vpop.f32.mrf.mxu2  ;;  %1855 = vmatpush.msrb.mxu0 %v1486_v42 }
0x13dc   :  { %v4571_v38 = vadd.f32 %v1826_v39, %v1806_v50 }
0x13dd   :  { %1856 = vmatpush.msrb.mxu0 %v1476_v22 }
0x13df   :  { %1857 = vmatpush.msrb.mxu0 %v1466_v25 }
0x13e1   :  { %1858 = vmatpush.msrb.mxu0 %v1456_v23 }
0x13e3   :  { %1859 = vmatpush.msrb.mxu0 %v1446_v27 }
0x13e5   :  { %1860 = vmatpush.msrb.mxu0 %v1436_v19 }
0x13e7   :  { %1861 = vmatpush.msrb.mxu0 %v1426_v24  ;;  %v1846_v49 = vpop.f32.mrf.mxu3 }
0x13e9   :  { %1862 = vmatpush.msrb.mxu0 %v1416_v51 }
0x13eb   :  { %1863 = vmatpush.msrb.mxu0 %v1406_v30 }
0x13ed   :  { %1864 = vmatpush.msrb.mxu0 %v1396_v13 }
0x13ee   :  { %1865 = vmatmul.f32.vlgmr.msrb.gmra.mxu0 %v3911_v26 }
0x13ef   :  { %1929 = vmatpush.msra.mxu0 %v1548_v29 }
0x13f1   :  { %1930 = vmatpush.msra.mxu0 %v1538_v55 }
0x13f3   :  { %1931 = vmatpush.msra.mxu0 %v1528_v54 }
0x13f5   :  { %1932 = vmatpush.msra.mxu0 %v1518_v3  ;;  %v1886_v12 = vpop.f32.mrf.mxu1 }
0x13f7   :  { %1933 = vmatpush.msra.mxu0 %v1508_v61 }
0x13f9   :  { %1934 = vmatpush.msra.mxu0 %v1498_v48 }
0x13fb   :  { %1935 = vmatpush.msra.mxu0 %v1488_v1 }
0x13fc   :  { %v1906_v21 = vpop.f32.mrf.mxu2 }
0x13fd   :  { %v1907_v37 = vadd.f32 %v1906_v21, %v1886_v12  ;;  %1936 = vmatpush.msra.mxu0 %v1478_v10 }
0x13ff   :  { %v4631_v34 = vadd.f32 %v2614_v59, %v1907_v37  ;;  %1937 = vmatpush.msra.mxu0 %v1468_v0 }
0x1401   :  { %1938 = vmatpush.msra.mxu0 %v1458_v41 }
0x1403   :  { %1939 = vmatpush.msra.mxu0 %v1448_v36 }
0x1405   :  { %1940 = vmatpush.msra.mxu0 %v1438_v57 }
0x1407   :  { %1941 = vmatpush.msra.mxu0 %v1428_v40  ;;  %v1926_v14 = vpop.f32.mrf.mxu3 }
0x1409   :  { %1942 = vmatpush.msra.mxu0 %v1418_v6 }
0x140b   :  { %1943 = vmatpush.msra.mxu0 %v1408_v58  ;;  %v1156_v44 = vpop.f32.mrf.mxu0 }
0x140c   :  { %v4654_v45 = vadd.f32 %v2615_v11, %v1156_v44 }
0x140d   :  { %1944 = vmatpush.msra.mxu0 %v1398_v62 }
0x140e   :  { %1945 = vmatmul.f32.vlgmr.msra.gmra.mxu0 %v3911_v26  ;;  %v4668_v26 = vmov 0.0  }
0x1413   :  { %v1626_v46 = vpop.f32.mrf.mxu0 }
0x1414   :  { %v4657_v2 = vadd.f32 %v1626_v46, %v1606_v4 }
0x142b   :  { %v1706_v16 = vpop.f32.mrf.mxu0 }
0x142c   :  { %v4659_v7 = vadd.f32 %v1706_v16, %v1686_v20 }
0x144b   :  { %v1786_v35 = vpop.f32.mrf.mxu0 }
0x144c   :  { %v4661_v8 = vadd.f32 %v1786_v35, %v1766_v56 }
0x146b   :  { %v1866_v32 = vpop.f32.mrf.mxu0 }
0x146c   :  { %v4663_v33 = vadd.f32 %v1866_v32, %v1846_v49 }
0x148b   :  { %v1946_v43 = vpop.f32.mrf.mxu0 }
0x148c   :  { %v4665_v18 = vadd.f32 %v1946_v43, %v1926_v14 }
0x148e   :  { %vm1954_vm14 = vcmp.ne.f32.partialorder %v4665_v18, 0.0 }
0x148f LB: > { %v2001_v42 = vld [vmem:[%s4968_s10 + $0x70] sm:$0x3]  ;;  %v2000_v22 = vld [vmem:[%s4968_s10 + $0x68] sm:$0xff]  ;;  %vm4992_vm15 = vcmask 1041408   ;;  %s2925_s28 = smov 64   ;;  %vm1970_vm12 = vcmp.eq.s32.totalorder %v3116_v17, %v2910_v15  ;;  %v1999_v50 = vld [vmem:[%s4968_s10 + $0x60] sm:$0xff]  ;;  %s2914_s8 = sphi %s4686_s8, %s1960_s8   ;;  %v2910_v15 = vphi %v4684_v15, %v2341_v15   ;;  %v2906_v5 = vphi %v4682_v5, %v4815_v5   ;;  %v2902_v63 = vphi %v4680_v63, %v4769_v63   ;;  %v2898_v60 = vphi %v4678_v60, %v4910_v60   ;;  %v2894_v9 = vphi %v4676_v9, %v4894_v9   ;;  %v2890_v31 = vphi %v4674_v31, %v2340_v31   ;;  %s2886_s7 = sphi %s4672_s7, %s4996_s7   ;;  %v2882_v53 = vphi %v4670_v53, %v4994_v53   ;;  %v2878_v26 = vphi %v4668_v26, %v4993_v26  }
0x1490   : > { %2463 = vmatpush.msk.msra.mxu0 %vm4992_vm15, %v2001_v42  ;;  %1974 = vrot.lane.b32.xlu0 %v2898_v60, %s2925_s28  ;;  %v2926_v39 = vmov 0.0   ;;  %v1998_v23 = vld [vmem:[%s4968_s10 + $0x58] sm:$0xff]  ;;  %v1997_v27 = vld [vmem:[%s4968_s10 + $0x50] sm:$0xff]  ;;  %v1996_v19 = vld [vmem:[%s4968_s10 + $0x48] sm:$0xff]  ;;  %s2927_s14 = smov 96   ;;  %vm2002_vm4 = vcmask 932864  }
0x1491   : > { %v2462_v25 = vsel %vm1970_vm12, 1.0, %v2926_v39  ;;  %v1995_v24 = vld [vmem:[%s4968_s10 + $0x40] sm:$0xff]  ;;  %v1994_v51 = vld [vmem:[%s4968_s10 + $0x38] sm:$0xff]  ;;  %v1993_v30 = vld [vmem:[%s4968_s10 + $0x30] sm:$0xff]  ;;  %s2928_s22 = smov 32   ;;  %vm2179_vm5 = vcmask 58368  }
0x1492   : > { %2011 = vmatpush.msra.mxu0 %v2000_v22  ;;  %1982 = vrot.lane.b32.xlu1 %v2462_v25, %s2925_s28  ;;  %v1992_v13 = vld [vmem:[%s4968_s10 + $0x28] sm:$0xff]  ;;  %v1991_v29 = vld [vmem:[%s4968_s10 + $0x20] sm:$0xff]  ;;  %v1990_v55 = vld [vmem:[%s4968_s10 + $0x18] sm:$0xff]  ;;  %vm2315_vm11 = vcmask 402432   ;;  %p2345_p0 = scmp.eq.s32.totalorder %s2886_s7, 1 }
0x1493   : > { %v1989_v54 = vld [vmem:[%s4968_s10 + $0x10] sm:$0xff]  ;;  %v1988_v3 = vld [vmem:[%s4968_s10 + $0x8] sm:$0xff]  ;;  %v1987_v61 = vld [vmem:[%s4968_s10] sm:$0xff] }
0x1494   : > { %2012 = vmatpush.msra.mxu0 %v1999_v50  ;;  %v2088_v43 = vld [vmem:[%s4969_s11 + $0x70] sm:$0xff]  ;;  %v2087_v15 = vld [vmem:[%s4969_s11 + $0x68] sm:$0xff]  ;;  %v2085_v22 = vld [vmem:[%s4969_s11 + $0x58] sm:$0xff] }
0x1495   : > { %2101 = vmatpush.msra.mxu1 %v2088_v43  ;;  %v2084_v42 = vld [vmem:[%s4969_s11 + $0x50] sm:$0xff]  ;;  %v2082_v50 = vld [vmem:[%s4969_s11 + $0x40] sm:$0xff]  ;;  %v2083_v39 = vld [vmem:[%s4969_s11 + $0x48] sm:$0xff]  ;;  %v2931_v43 = vmov 7  }
0x1496   : > { %2013 = vmatpush.msra.mxu0 %v1998_v23  ;;  %v2080_v25 = vld [vmem:[%s4969_s11 + $0x30] sm:$0xff]  ;;  %v2081_v23 = vld [vmem:[%s4969_s11 + $0x38] sm:$0xff]  ;;  %2753 = vset.pattern.permute.xlu1 %v2931_v43 }
0x1498   : > { %2014 = vmatpush.msra.mxu0 %v1997_v27  ;;  %1978 = vrot.lane.b32.xlu0 %v2906_v5, %s2927_s14  ;;  %v2086_v5 = vld [vmem:[%s4969_s11 + $0x60] sm:$0xff] }
0x1499   : > { %2102 = vmatpush.msra.mxu1 %v2086_v5  ;;  %v2078_v27 = vld [vmem:[%s4969_s11 + $0x20] sm:$0xff] }
0x149a   : > { %2015 = vmatpush.msra.mxu0 %v1996_v19  ;;  %v2079_v19 = vld [vmem:[%s4969_s11 + $0x28] sm:$0xff] }
0x149b   : > { %2103 = vmatpush.msra.mxu1 %v2084_v42 }
0x149c   : > { %2016 = vmatpush.msra.mxu0 %v1995_v24  ;;  %v2076_v24 = vld [vmem:[%s4969_s11 + $0x10] sm:$0xff] }
0x149d   : > { %2104 = vmatpush.msra.mxu1 %v2082_v50 }
0x149e   : > { %2017 = vmatpush.msra.mxu0 %v1994_v51  ;;  %v2077_v51 = vld [vmem:[%s4969_s11 + $0x18] sm:$0xff] }
0x149f   : > { %2105 = vmatpush.msra.mxu1 %v2080_v25  ;;  %v2933_v25 = vmov 2  }
0x14a0   : > { %2018 = vmatpush.msra.mxu0 %v1993_v30 }
0x14a1   : > { %2106 = vmatpush.msra.mxu1 %v2078_v27  ;;  %v2935_v27 = vmov 4  }
0x14a2   : > { %2019 = vmatpush.msra.mxu0 %v1992_v13  ;;  %v2074_v13 = vld [vmem:[%s4969_s11] sm:$0xff] }
0x14a3   : > { %2107 = vmatpush.msra.mxu1 %v2076_v24 }
0x14a4   : > { %2020 = vmatpush.msra.mxu0 %v1991_v29  ;;  %v2075_v29 = vld [vmem:[%s4969_s11 + $0x8] sm:$0xff] }
0x14a5   : > { %2108 = vmatpush.msra.mxu1 %v2074_v13 }
0x14a6   : > { %2021 = vmatpush.msra.mxu0 %v1990_v55  ;;  %v2150_v55 = vld [vmem:[%s4971_s13 + $0x78] sm:$0xff] }
0x14a7   : > { %2158 = vmatpush.msra.mxu3 %v2150_v55 }
0x14a8   : > { %2022 = vmatpush.msra.mxu0 %v1989_v54  ;;  %v2149_v54 = vld [vmem:[%s4971_s13 + $0x70] sm:$0xff] }
0x14a9   : > { %2159 = vmatpush.msra.mxu3 %v2149_v54 }
0x14aa   : > { %2023 = vmatpush.msra.mxu0 %v1988_v3  ;;  %v2148_v3 = vld [vmem:[%s4971_s13 + $0x68] sm:$0xff] }
0x14ab   : > { %2160 = vmatpush.msra.mxu3 %v2148_v3 }
0x14ac   : > { %2024 = vmatpush.msra.mxu0 %v1987_v61  ;;  %v2147_v61 = vld [vmem:[%s4971_s13 + $0x60] sm:$0xff] }
0x14ad   : > { %2161 = vmatpush.msra.mxu3 %v2147_v61 }
0x1502   : > { %v1975_v48 = vpop.permute.xlu0 %1974 }
0x1504   : > { %v1983_v1 = vpop.permute.xlu1 %1982 }
0x150a   : > { %v1979_v10 = vpop.permute.xlu0 %1978 }
0x150b   : > { %v1985_v59 = vsel %vm124_vm2, %v1975_v48, %v1979_v10  ;;  %v2146_v48 = vld [vmem:[%s4971_s13 + $0x58] sm:$0xff]  ;;  %v2144_v10 = vld [vmem:[%s4971_s13 + $0x48] sm:$0xff] }
0x150c   : > { %v1986_v12 = vsel %vm1214_vm1, %v1985_v59, %v1983_v1  ;;  %v2145_v1 = vld [vmem:[%s4971_s13 + $0x50] sm:$0xff]  ;;  %2162 = vmatpush.msra.mxu3 %v2146_v48  ;;  %v2143_v59 = vld [vmem:[%s4971_s13 + $0x40] sm:$0xff] }
0x150d   : > { %2464 = vmatmul.msk.f32.vlgmr.msra.gmra.mxu0 %vm2002_vm4, %v1986_v12 }
0x150e   : > { %2163 = vmatpush.msra.mxu3 %v2145_v1 }
0x1510   : > { %2164 = vmatpush.msra.mxu3 %v2144_v10 }
0x1512   : > { %2165 = vmatpush.msra.mxu3 %v2143_v59 }
0x158a   : > { %v2026_v21 = vpop.f32.mrf.mxu0 }
0x158b   : > { %v2027_v0 = vadd.f32 %v2026_v21, %v4654_v45 }
0x158d   : > { %2758 = vtanh.f32 %v2027_v0  ;;  %v2465_v41 = vmul.f32 -1.442695, %v2027_v0 }
0x158f   : > { %2760 = vpow2.f32 %v2465_v41  ;;  %v2141_v41 = vld [vmem:[%s4971_s13 + $0x30] sm:$0xff] }
0x1593   : > { %v2759_v37 = vpop.eup %2758 }
0x1594   : > { %2051 = vrot.lane.b32.xlu1 %v2759_v37, %s2928_s22  ;;  %v2142_v37 = vld [vmem:[%s4971_s13 + $0x38] sm:$0xff] }
0x1595   : > { %v2761_v36 = vpop.eup %2760  ;;  %2166 = vmatpush.msra.mxu3 %v2142_v37 }
0x1596   : > { %v2032_v57 = vadd.f32 1.0, %v2761_v36  ;;  %v2140_v36 = vld [vmem:[%s4971_s13 + $0x28] sm:$0xff] }
0x1597   : > { %2167 = vmatpush.msra.mxu3 %v2141_v41 }
0x1598   : > { %2762 = vrcp.f32 %v2032_v57  ;;  %v2044_v44 = vand.u32 2147483648, %v2032_v57  ;;  %vm2038_vm8 = vweird.f32 %v2032_v57  ;;  %v2042_v4 = vand.u32 2147483647, %v2032_v57 }
0x1599   : > { %2168 = vmatpush.msra.mxu3 %v2140_v36 }
0x159a   : > { %v2045_v20 = vor.u32 1.1754944e-38, %v2044_v44  ;;  %vm2043_vm9 = vcmp.eq.f32.partialorder %v2042_v4, 8.507059e+37  ;;  %v2929_v44 = vmov 0  }
0x159b   : > { %2746 = vset.pattern.permute.xlu2 %v2929_v44 }
0x159c   : > { %2070 = vrot.lane.b32.xlu1 %v2898_v60, %s2927_s14  ;;  %v2089_v60 = vld [vmem:[%s4969_s11 + $0x78] sm:$0xff] }
0x159d   : > { %2121 = vmatpush.msra.mxu2 %v2089_v60 }
0x159e   : > { %v2763_v40 = vpop.eup %2762 }
0x159f   : > { %v2034_v6 = vmul.f32 %v2763_v40, %v2032_v57  ;;  %vm2039_vm7 = vweird.f32 %v2763_v40  ;;  %2122 = vmatpush.msra.mxu2 %v2087_v15  ;;  %v2139_v57 = vld [vmem:[%s4971_s13 + $0x20] sm:$0xff] }
0x15a0   : > { %vm2040_vm3 = vmor %vm2038_vm8, %vm2039_vm7  ;;  %2169 = vmatpush.msra.mxu3 %v2139_v57  ;;  %vm2352_vm8 = vcmask 1024  }
0x15a1   : > { %v2035_v58 = vsub.f32 1.0, %v2034_v6  ;;  %2123 = vmatpush.msra.mxu2 %v2085_v22  ;;  %v2137_v6 = vld [vmem:[%s4971_s13 + $0x10] sm:$0xff] }
0x15a3   : > { %v2036_v11 = vmul.f32 %v2763_v40, %v2035_v58  ;;  %2124 = vmatpush.msra.mxu2 %v2083_v39  ;;  %v2136_v58 = vld [vmem:[%s4971_s13 + $0x8] sm:$0xff]  ;;  %v2932_v39 = vmov 1  }
0x15a5   : > { %v2037_v62 = vadd.f32 %v2763_v40, %v2036_v11  ;;  %2125 = vmatpush.msra.mxu2 %v2081_v23  ;;  %v2135_v11 = vld [vmem:[%s4971_s13] sm:$0xff]  ;;  %v2934_v23 = vmov 3  }
0x15a7   : > { %v2041_v46 = vsel %vm2040_vm3, %v2763_v40, %v2037_v62  ;;  %2126 = vmatpush.msra.mxu2 %v2079_v19  ;;  %v2138_v40 = vld [vmem:[%s4971_s13 + $0x18] sm:$0xff]  ;;  %v2755_v62 = vld [vmem:[#allocation2] ss:$0 sm:$0xff]  ;;  %v2936_v19 = vmov 5  }
0x15a8   : > { %v2046_v56 = vsel %vm2043_vm9, %v2045_v20, %v2041_v46  ;;  %2170 = vmatpush.msra.mxu3 %v2138_v40 }
0x15a9   : > { %v2049_v49 = vmul.f32 %v2902_v63, %v2046_v56  ;;  %2127 = vmatpush.msra.mxu2 %v2077_v51 }
0x15aa   : > { %2171 = vmatpush.msra.mxu3 %v2137_v6 }
0x15ab   : > { %2128 = vmatpush.msra.mxu2 %v2075_v29 }
0x15ac   : > { %2172 = vmatpush.msra.mxu3 %v2136_v58 }
0x15ae   : > { %2173 = vmatpush.msra.mxu3 %v2135_v11 }
0x1606   : > { %v2052_v16 = vpop.permute.xlu1 %2051 }
0x1607   : > { %v2054_v35 = vmul.f32 %v2052_v16, %v2046_v56 }
0x1609   : > { %2056 = vrot.lane.b32.xlu2 %v2054_v35, %s2928_s22 }
0x160e   : > { %v2071_v12 = vpop.permute.xlu1 %2070 }
0x1663   : > { %v2057_v32 = vpop.permute.xlu2 %2056 }
0x1664   : > { %v4769_v63 = vadd.f32 %v2057_v32, %v2049_v49  }
0x1666   : > { %2764 = vtanh.f32 %v4769_v63 }
0x166c   : > { %v2765_v14 = vpop.eup %2764 }
0x166d   : > { %2062 = vrot.lane.b32.xlu2 %v2765_v14, %s2928_s22  ;;  %v2930_v14 = vmov 6  }
0x166e   : > { %2752 = vset.pattern.permute.xlu0 %v2930_v14 }
0x1675   : > { %2155 = vperm.xlu2 %2746, %v2755_v62  }
0x16c7   : > { %v2063_v30 = vpop.permute.xlu2 %2062 }
0x16c8   : > { %v4815_v5 = vmul.f32 %v2063_v30, %v2046_v56  }
0x16ca   : > { %2067 = vrot.lane.b32.xlu0 %v4815_v5, %s2925_s28 }
0x16cf   : > { %v2156_v16 = vpop.permute.xlu2 %2155 }
0x173c   : > { %v2068_v21 = vpop.permute.xlu0 %2067 }
0x173d   : > { %v2073_v0 = vsel %vm124_vm2, %v2068_v21, %v2071_v12 }
0x173e   : > { %2466 = vmatmul.msk.f32.vlgmr.msra.gmra.mxu1 %vm1214_vm1, %v2073_v0  ;;  %2467 = vmatmul.msk.f32.vlgmr.msra.gmra.mxu2 %vm1214_vm1, %v2073_v0 }
0x17c1   : > { %v2130_v4 = vpop.f32.mrf.mxu2 }
0x17c2   : > { %v2133_v46 = vadd.f32 %v2130_v4, %v4631_v34  ;;  %v2756_v4 = vld [vmem:[%s4970_s12] ss:$0 sm:$0xff] }
0x17c4   : > { %2766 = vtanh.f32 %v2133_v46 }
0x17ca   : > { %v2767_v20 = vpop.eup %2766 }
0x17cb   : > { %2174 = vmatmul.f32.vlgmr.msra.gmra.mxu3 %v2767_v20  ;;  %v2110_v20 = vpop.f32.mrf.mxu1 }
0x184e   : > { %v2175_v56 = vpop.f32.mrf.mxu3 }
0x184f   : > { %v2176_v35 = vadd.f32 %v2175_v56, %v2156_v16 }
0x1851   : > { %v2178_v49 = vsel %vm1954_vm14, %v2176_v35, -1e+10 }
0x1852   : > { %v2180_v32 = vsel %vm2179_vm5, %v2178_v49, -inf }
0x1853   : > { %2181 = vmax.xlane.f32.xlu0 %v2180_v32 }
0x18c6   : > { %v2182_v60 = vpop.xlane.xlu0 %2181 }
0x18c7   : > { %v2183_v15 = vsub.f32 %v2178_v49, %v2182_v60 }
0x18c9   : > { %v2184_v42 = vmul.f32 1.442695, %v2183_v15 }
0x18cb   : > { %2768 = vpow2.f32 %v2184_v42 }
0x18d1   : > { %v2769_v22 = vpop.eup %2768 }
0x18d2   : > { %2222 = vperm.xlu0 %2752, %v2769_v22   ;;  %2192 = vperm.xlu2 %2746, %v2769_v22   ;;  %v2186_v50 = vsel %vm2179_vm5, %v2769_v22, 0.0 }
0x18d3   : > { %2187 = vadd.xlane.f32.xlu1 %v2186_v50 }
0x18da   : > { %2747 = vset.pattern.permute.xlu2 %v2932_v39  ;;  %2754 = vset.pattern.permute.xlu0 %v2931_v43 }
0x18db   : > { %2197 = vperm.xlu2 %2747, %v2769_v22  }
0x18e3   : > { %2748 = vset.pattern.permute.xlu2 %v2933_v25 }
0x18e4   : > { %2202 = vperm.xlu2 %2748, %v2769_v22  }
0x18ec   : > { %2749 = vset.pattern.permute.xlu2 %v2934_v23  ;;  %2227 = vperm.xlu1 %2753, %v2769_v22  }
0x18ed   : > { %2207 = vperm.xlu2 %2749, %v2769_v22  }
0x18f5   : > { %2750 = vset.pattern.permute.xlu2 %v2935_v27 }
0x18f6   : > { %2212 = vperm.xlu2 %2750, %v2769_v22  }
0x18fe   : > { %2751 = vset.pattern.permute.xlu2 %v2936_v19 }
0x18ff   : > { %2217 = vperm.xlu2 %2751, %v2769_v22  }
0x192c   : > { %v2193_v24 = vpop.permute.xlu2 %2192 }
0x192d   : > { %v2195_v59 = vmul.f32 %v2193_v24, %v4464_v28 }
0x1935   : > { %v2198_v51 = vpop.permute.xlu2 %2197 }
0x1936   : > { %v2200_v48 = vmul.f32 %v2198_v51, %v4657_v2 }
0x1938   : > { %v2231_v36 = vadd.f32 %v2200_v48, %v2195_v59 }
0x193e   : > { %v2203_v30 = vpop.permute.xlu2 %2202 }
0x193f   : > { %v2205_v1 = vmul.f32 %v2203_v30, %v4478_v47 }
0x1944   : > { %v2223_v61 = vpop.permute.xlu0 %2222 }
0x1945   : > { %v2225_v21 = vmul.f32 %v2223_v61, %v4571_v38 }
0x1946   : > { %v2188_v55 = vpop.xlane.xlu1 %2187 }
0x1947   : > { %v2208_v13 = vpop.permute.xlu2 %2207  ;;  %2770 = vrcp.f32 %v2188_v55  ;;  %v2284_v55 = vld [vmem:[%s4973_s15 + $0x10] sm:$0xff] }
0x1948   : > { %v2210_v3 = vmul.f32 %v2208_v13, %v4659_v7 }
0x194a   : > { %v2232_v0 = vadd.f32 %v2210_v3, %v2205_v1  ;;  %v2282_v3 = vld [vmem:[%s4973_s15] sm:$0xff] }
0x194b   : > { %v2757_v1 = vld [vmem:[%s4974_s16] ss:$0 sm:$0xff] }
0x194c   : > { %v2235_v6 = vadd.f32 %v2232_v0, %v2231_v36 }
0x194d   : > { %v2771_v62 = vpop.eup %2770 }
0x1950   : > { %v2213_v29 = vpop.permute.xlu2 %2212 }
0x1951   : > { %v2215_v37 = vmul.f32 %v2213_v29, %v4520_v52  ;;  %v2285_v29 = vld [vmem:[%s4973_s15 + $0x18] sm:$0xff] }
0x1952   : > { %2307 = vmatpush.msrb.mxu1 %v2285_v29 }
0x1954   : > { %2308 = vmatpush.msrb.mxu1 %v2284_v55 }
0x1959   : > { %v2218_v54 = vpop.permute.xlu2 %2217 }
0x195a   : > { %v2220_v10 = vmul.f32 %v2218_v54, %v4661_v8  ;;  %v2283_v54 = vld [vmem:[%s4973_s15 + $0x8] sm:$0xff] }
0x195b   : > { %2309 = vmatpush.msrb.mxu1 %v2283_v54 }
0x195c   : > { %v2233_v57 = vadd.f32 %v2220_v10, %v2215_v37 }
0x195d   : > { %2310 = vmatpush.msrb.mxu1 %v2282_v3 }
0x195e   : > { %v2228_v12 = vpop.permute.xlu1 %2227 }
0x195f   : > { %v2230_v41 = vmul.f32 %v2228_v12, %v4663_v33 }
0x1961   : > { %v2234_v40 = vadd.f32 %v2230_v41, %v2225_v21  ;;  %v2330_v21 = vcvt.s32.f32 %v3116_v17 }
0x1963   : > { %v2236_v58 = vadd.f32 %v2234_v40, %v2233_v57 }
0x1965   : > { %v2237_v11 = vadd.f32 %v2236_v58, %v2235_v6 }
0x1967   : > { %v2238_v46 = vmul.f32 %v2771_v62, %v2237_v11 }
0x1969   : > { %v2239_v16 = vadd.f32 %v2238_v46, %v2110_v20 }
0x196b   : > { %v2244_v56 = vadd.f32 %v2756_v4, %v2239_v16  ;;  %v2342_v16 = vstv %s2914_s8  ;;  %s1960_s8 = sadd.s32 1, %s2914_s8  }
0x196c   : > { %vm2343_vm3 = vcmp.eq.s32.totalorder %v3116_v17, %v2342_v16  ;;  %p1957_p2 = scmp.ge.s32.totalorder %s1960_s8, 18  }
0x196d   : > { %2772 = vtanh.f32 %v2244_v56  ;;  %v2468_v49 = vmul.f32 -1.442695, %v2244_v56  ;;  %vm2365_vm5 = vcmask (%p1957_p2), 140288   ;;  %s2375_s5 = sshll.u32 (%p1957_p2), %s4975_s17, 4  ;;  %s2937_s20 = smov (%p1957_p2), [#allocation3]   ;;  %s2376_s5 = int_to_ptr.hbm [resolvable:$true] %s2375_s5 }
0x196e   :  { %s2373_s2 = sshll.u32 (%p1957_p2), %s2937_s20, 4  ;;  %s2938_s0 = smov (%p1957_p2), [#allocation5]   ;;  %s2374_s2 = int_to_ptr.vmem [resolvable:$true] %s2373_s2 }
0x196f   : > { %2774 = vpow2.f32 %v2468_v49  ;;  %s2384_s4 = sshll.u32 (%p1957_p2), %s2938_s0, 4  ;;  %s2386_s25 = sshll.u32 (%p1957_p2), %s4976_s18, 4  ;;  %s2385_s4 = int_to_ptr.vmem [resolvable:$true] %s2384_s4  ;;  %s2387_s25 = int_to_ptr.hbm [resolvable:$true] %s2386_s25 }
0x1973   : > { %v2773_v35 = vpop.eup %2772 }
0x1974   : > { %2267 = vrot.lane.b32.xlu2 %v2773_v35, %s2928_s22 }
0x1975   : > { %v2775_v32 = vpop.eup %2774 }
0x1976   : > { %v2248_v14 = vadd.f32 1.0, %v2775_v32 }
0x1978   : > { %2776 = vrcp.f32 %v2248_v14  ;;  %v2260_v50 = vand.u32 2147483648, %v2248_v14  ;;  %vm2254_vm10 = vweird.f32 %v2248_v14  ;;  %v2258_v39 = vand.u32 2147483647, %v2248_v14 }
0x197a   : > { %v2261_v23 = vor.u32 1.1754944e-38, %v2260_v50  ;;  %vm2259_vm13 = vcmp.eq.f32.partialorder %v2258_v39, 8.507059e+37 }
0x197e   : > { %v2777_v43 = vpop.eup %2776 }
0x197f   : > { %v2250_v60 = vmul.f32 %v2777_v43, %v2248_v14  ;;  %vm2255_vm0 = vweird.f32 %v2777_v43 }
0x1980   : > { %vm2256_vm6 = vmor %vm2254_vm10, %vm2255_vm0 }
0x1981   : > { %v2251_v15 = vsub.f32 1.0, %v2250_v60 }
0x1983   : > { %v2252_v42 = vmul.f32 %v2777_v43, %v2251_v15 }
0x1985   : > { %v2253_v22 = vadd.f32 %v2777_v43, %v2252_v42 }
0x1987   : > { %v2257_v25 = vsel %vm2256_vm6, %v2777_v43, %v2253_v22 }
0x1988   : > { %v2262_v19 = vsel %vm2259_vm13, %v2261_v23, %v2257_v25 }
0x1989   : > { %v2265_v51 = vmul.f32 %v2894_v9, %v2262_v19 }
0x19ce   : > { %v2268_v27 = vpop.permute.xlu2 %2267 }
0x19cf   : > { %v2270_v24 = vmul.f32 %v2268_v27, %v2262_v19 }
0x19d1   : > { %2272 = vrot.lane.b32.xlu2 %v2270_v24, %s2928_s22 }
0x1a2b   : > { %v2273_v30 = vpop.permute.xlu2 %2272 }
0x1a2c   : > { %v4894_v9 = vadd.f32 %v2273_v30, %v2265_v51  }
0x1a2e   : > { %2778 = vtanh.f32 %v4894_v9 }
0x1a34   : > { %v2779_v13 = vpop.eup %2778 }
0x1a35   : > { %2278 = vrot.lane.b32.xlu2 %v2779_v13, %s2928_s22 }
0x1a8f   : > { %v2279_v61 = vpop.permute.xlu2 %2278 }
0x1a90   : > { %v4910_v60 = vmul.f32 %v2279_v61, %v2262_v19  }
0x1a92   : > { %2291 = vrot.lane.b32.xlu1 %v4910_v60, %s2925_s28  ;;  %s2346_s28 = scalar_select %p2345_p0, 1, 0 }
0x1a94   : > { %v2347_v22 = vstv %s2346_s28 }
0x1a95   : > { %vm2348_vm9 = vcmp.eq.s32.totalorder %v2347_v22, 1 }
0x1b04   : > { %v2292_v48 = vpop.permute.xlu1 %2291 }
0x1b05   : > { %2469 = vmatmul.msk.f32.vlgmr.msrb.gmra.mxu1 %vm124_vm2, %v2292_v48 }
0x1b82   : > { %v2312_v10 = vpop.f32.mrf.mxu1 }
0x1b83   : > { %v2313_v59 = vadd.f32 %v2757_v1, %v2312_v10 }
0x1b85   : > { %v2316_v12 = vsel %vm2315_vm11, %v2313_v59, -inf }
0x1b86   : > { %2317 = vmax.xlane.f32.xlu2 %v2316_v12 }
0x1bf9   : > { %v2318_v0 = vpop.xlane.xlu2 %2317 }
0x1bfa   : > { %v2319_v37 = vsub.f32 %v2313_v59, %v2318_v0  ;;  %vm2329_vm15 = vcmp.eq.f32.partialorder %v2313_v59, %v2318_v0 }
0x1bfb   : > { %v2331_v41 = vsel %vm2329_vm15, %v2330_v21, 50.0 }
0x1bfc   : > { %v2320_v36 = vmul.f32 1.442695, %v2319_v37  ;;  %v2332_v57 = vsel %vm2315_vm11, %v2331_v41, inf }
0x1bfd   : > { %2333 = vmin.xlane.f32.xlu1 %v2332_v57 }
0x1bfe   : > { %2780 = vpow2.f32 %v2320_v36 }
0x1c04   : > { %v2781_v40 = vpop.eup %2780 }
0x1c05   : > { %v2322_v6 = vsel %vm2315_vm11, %v2781_v40, 0.0 }
0x1c06   : > { %2323 = vadd.xlane.f32.xlu2 %v2322_v6 }
0x1c70   : > { %v2334_v58 = vpop.xlane.xlu1 %2333 }
0x1c71   : > { %vm2470_vm12 = vcmp.lt.s32.totalorder %v2334_v58, 0  ;;  %v2471_v11 = vceil.f32 %v2334_v58  ;;  %v2472_v62 = vfloor.f32 %v2334_v58 }
0x1c73   : > { %v2473_v4 = vsel %vm2470_vm12, %v2471_v11, %v2472_v62 }
0x1c74   : > { %v2474_v46 = vcvt.f32.s32 %v2473_v4 }
0x1c76   : > { %vm2336_vm4 = vcmp.eq.s32.totalorder %v2474_v46, 49 }
0x1c77   : > { %v2337_v20 = vsel %vm2336_vm4, 0, %v2474_v46 }
0x1c78   : > { %vm2338_vm7 = vcmp.gt.s32.totalorder %v2337_v20, 0 }
0x1c79   : > { %v2324_v56 = vpop.xlane.xlu2 %2323  ;;  %v2339_v35 = vsel %vm2338_vm7, 1, %v2929_v44 }
0x1c7a   : > { %2782 = vlog2.f32 %v2324_v56  ;;  %v2340_v31 = vmul.u32 %v2890_v31, %v2339_v35  }
0x1c7c   : > { %v2351_v49 = vcvt.s32.f32 %v2340_v31  ;;  %v2341_v15 = vmul.u32 %v2340_v31, %v2337_v20  }
0x1c7e   : > { %v2353_v32 = vsel %vm2352_vm8, %v2351_v49, 0.0  ;;  %v2344_v14 = vsel %vm2343_vm3, %v2341_v15, %v2882_v53  }
0x1c7f   : > { %2354 = vadd.xlane.f32.xlu0 %v2353_v32  ;;  %v4994_v53 = vmov %v2344_v14  ;;  %2366 = vst.msk [vmem:[#allocation3] sm:$0x3] (%p1957_p2), %vm2365_vm5, %v2344_v14 }
0x1c80   : > { %v2783_v43 = vpop.eup %2782  ;;  %2378 = dma.vmem_to_hbm [thread:$0]  (%p1957_p2), %s2374_s2, 32, %s2376_s5, [#allocation4]  }
0x1c81   : > { %v2326_v42 = vmul.f32 0.6931472, %v2783_v43 }
0x1c83   : > { %v2327_v50 = vadd.f32 %v2326_v42, %v2318_v0 }
0x1c85   : > { %v2328_v44 = vsub.f32 %v2318_v0, %v2327_v50 }
0x1c87   : > { %v2349_v39 = vsel %vm2348_vm9, 0.0, %v2328_v44 }
0x1c88   : > { %v2350_v25 = vsel %vm2343_vm3, %v2349_v39, %v2878_v26  }
0x1c89   : > { %v4993_v26 = vmov %v2350_v25  ;;  %2367 = vst.msk [vmem:[#allocation5] sm:$0x3] (%p1957_p2), %vm2365_vm5, %v2350_v25 }
0x1c8a   :  { %2389 = dma.vmem_to_hbm [thread:$0]  (%p1957_p2), %s2385_s4, 32, %s2387_s25, [#allocation6]  }
0x1cf2   : > { %v2355_v23 = vpop.xlane.xlu0 %2354 }
0x1cf3   : > { %v2356_v27 = vrot.slane %v2355_v23, 4 }
0x1cf5   : > { %v2357_v19 = vadd.f32 %v2356_v27, %v2355_v23 }
0x1cf7   : > { %v2358_v24 = vrot.slane %v2357_v19, 2 }
0x1cf9   : > { %v2359_v51 = vadd.f32 %v2358_v24, %v2357_v19 }
0x1cfb   : > { %v2360_v30 = vrot.slane %v2359_v51, 1 }
0x1cfd   : > { %v2361_v13 = vadd.f32 %v2360_v30, %v2359_v51 }
0x1cff   : > { %2475 = vpush %v2361_v13 }
0x1d2f   :  { %1959 = sbr.rel (!%p1957_p2) target bundleno = 5263 (0x148f), region = 103 }
0x1d30   : > { %s2476_s29 = spop %2475 }
0x1d31   : > { %p2363_p1 = scmp.eq.f32.partialorder %s2476_s29, 0.0 }
0x1d33   : > { %s4996_s7 = smov (%p2363_p1, %s2886_s7), 1 }
0x1d34   :  { %2872 = dma.done.wait [#allocation4], 32  }
0x1d35   :  { %2873 = vsyncadd [#allocation4], 4294967264 }
0x1d36   :  { %2874 = dma.done.wait [#allocation6], 32  }
0x1d37   :  { %2875 = vsyncadd [#allocation6], 4294967264 }
0x1d38   :  { %2398 = vsyncpa [#allocation4], 1 }
0x1d39   :  { %2399 = vsyncpa [#allocation6], 1 }

</bundles_post_ra>
